<compile_context>
chip_gen: v7x
topology: tpu7x:2x2x1
jax: 0.10.0
libtpu: 0.0.40
codegen_flags: <defaults>
</compile_context>

<pallas_src>
import jax
import jax.numpy as jnp
from jax import lax
from jax.experimental import pallas as pl
from jax.experimental.pallas import tpu as pltpu

# Problem sizes (small, consistent with the module's forward).
N = 128   # mesh vertices
K = 8     # max neighbors per vertex
L = 32    # latent code size
H = 128   # decoder hidden width
B = 16    # total batch of codes evaluated in one pallas_call
NUM_STEPS = 2          # grid steps (one chunk per v7x TensorCore)
OUT_LANES = 128        # lane-dense output width


def _casap_kernel(code_ref, w1_ref, b1_ref, w2_ref, b2_ref, a_ref, bterm_ref,
                  cterm_ref, w2t_ref, w1t_ref, oe_ref, og_ref):
    """Fused decoder forward + folded ASAP energy + analytic backward.

    code_ref  : [Bc, L]     chunk of latent codes for this grid step
    w1_ref    : [L, H]      decoder layer-1 weight,  b1_ref: [1, H]
    w2_ref    : [H, 3N]     layer-2 weight, coord-major lanes,  b2_ref: [1, 3N]
    a_ref     : [N, N]      A = S^T diag(wgt) S (symmetric quadratic form)
    bterm_ref : [1, 3N]     b = (eq*wgt) @ S, coord-major flattened
    cterm_ref : [1, 1]      c = sum(wgt * ||eq||^2)
    w2t_ref   : [3N, H]     stacked per-coordinate W2 transpose (backward)
    w1t_ref   : [H, 128]    W1^T zero-padded to 128 lanes (lane-dense grad out)
    oe_ref    : [Bc, 128]   energy per code, broadcast across lanes
    og_ref    : [Bc, 128]   d(energy)/d(code), lanes 0:L valid, rest zero
    """
    f32 = jnp.float32
    hp = lax.Precision.HIGHEST

    n_vert = a_ref.shape[0]          # N
    chunk = code_ref.shape[0]        # codes per step
    lanes = og_ref.shape[1]          # 128

    # ---------------- decoder forward (batched over the chunk) ----------------
    codes = code_ref[...]                                                   # [Bc, L]
    h_act = jnp.tanh(
        jnp.dot(codes, w1_ref[...], preferred_element_type=f32, precision=hp)
        + b1_ref[...])                                                      # [Bc, H]
    p_flat = jnp.dot(h_act, w2_ref[...], preferred_element_type=f32,
                     precision=hp) + b2_ref[...]                            # [Bc, 3N]

    # ---------------- folded ASAP energy + dE/dP ----------------
    # Per coordinate block c: PA_c = P_c @ A (same A for all coords).
    pa_blocks = [
        jnp.dot(p_flat[:, c * n_vert:(c + 1) * n_vert], a_ref[...],
                preferred_element_type=f32, precision=hp)
        for c in range(3)
    ]
    pa = jnp.concatenate(pa_blocks, axis=1)                                 # [Bc, 3N]
    bterm = bterm_ref[...]                                                  # [1, 3N]

    e_sum = jnp.sum(p_flat * (pa - 2.0 * bterm), axis=1, keepdims=True)     # [Bc, 1]
    energy = (e_sum + cterm_ref[...]) * (1.0 / n_vert)                      # [Bc, 1]
    g_p = (pa - bterm) * (2.0 / n_vert)                                     # [Bc, 3N]

    # ---------------- analytic backward through the decoder ----------------
    g_h = jnp.dot(g_p, w2t_ref[...], preferred_element_type=f32,
                  precision=hp)                                             # [Bc, H]
    g_hpre = g_h * (1.0 - h_act * h_act)                                    # tanh'
    g_code = jnp.dot(g_hpre, w1t_ref[...], preferred_element_type=f32,
                     precision=hp)                                          # [Bc, 128]

    # ---------------- lane-dense in-place outputs ----------------
    oe_ref[...] = jnp.broadcast_to(energy, (chunk, lanes))
    og_ref[...] = g_code


def _const_spec(arr):
    nd = arr.ndim
    return pl.BlockSpec(arr.shape, lambda i, _nd=nd: (0,) * _nd)


def casap_energy(codes, w1, b1, w2_h3n, b2_flat, a_mat, b_flat, cterm,
                 w2t_stack, w1t_pad, *, num_steps=NUM_STEPS):
    """Batched wrapper.

    codes: [B, L].  Returns (energy [B], d(energy)/d(code) [B, L]).
    The batch is split into `num_steps` chunks (chunk size must be a multiple
    of 8); the grid axis is "parallel" so v7x runs the chunks on both
    TensorCores.  Constants are DMA'd once and stay resident across steps.
    """
    b_total, l = codes.shape
    assert b_total % num_steps == 0
    chunk = b_total // num_steps
    assert chunk % 8 == 0, "chunk of codes per grid step must be a multiple of 8"

    consts = (w1, b1, w2_h3n, b2_flat, a_mat, b_flat, cterm, w2t_stack, w1t_pad)
    in_specs = [pl.BlockSpec((chunk, l), lambda i: (i, 0))]
    in_specs += [_const_spec(a) for a in consts]

    out_e, out_g = pl.pallas_call(
        _casap_kernel,
        out_shape=(jax.ShapeDtypeStruct((b_total, OUT_LANES), jnp.float32),
                   jax.ShapeDtypeStruct((b_total, OUT_LANES), jnp.float32)),
        grid=(num_steps,),
        in_specs=in_specs,
        out_specs=(pl.BlockSpec((chunk, OUT_LANES), lambda i: (i, 0)),
                   pl.BlockSpec((chunk, OUT_LANES), lambda i: (i, 0))),
        compiler_params=pltpu.CompilerParams(dimension_semantics=("parallel",)),
    )(codes, *consts)

    return out_e[:, 0], out_g[:, :l]


if __name__ == "__main__":
    key = jax.random.PRNGKey(0)
    ks = jax.random.split(key, 12)
    hp = lax.Precision.HIGHEST

    # Deterministic "decoder" parameters.
    w1 = jax.random.normal(ks[0], (L, H), jnp.float32) / jnp.sqrt(L)
    b1 = jax.random.normal(ks[1], (1, H), jnp.float32) * 0.1
    w2_3hn = jax.random.normal(ks[2], (3, H, N), jnp.float32) / jnp.sqrt(H)
    b2_3n = jax.random.normal(ks[3], (3, N), jnp.float32) * 0.1

    # Deterministic mesh / ASAP data (xyz1, neighborsMatrix, numNeighbors,
    # weightMatrix, alpha, area, asapWeight).
    xyz1_nc = jax.random.normal(ks[4], (N, 3), jnp.float32)
    neighbors = jax.random.randint(ks[5], (N, K), 0, N)
    num_nb = jax.random.randint(ks[6], (N,), 1, K + 1)
    weight_mat = jax.random.uniform(ks[7], (N, K), jnp.float32, 0.1, 1.0)
    area = jax.random.uniform(ks[8], (N,), jnp.float32, 0.5, 1.5)
    alpha = 0.8
    asap_weight = 0.5
    codes = jax.random.normal(ks[9], (B, L), jnp.float32)

    # ---- host-side constant preprocessing (all reconstruction-independent) ----
    xyz1_cn = xyz1_nc.T                                                     # [3, N]
    mask = (jnp.arange(K)[None, :] < num_nb[:, None]).astype(jnp.float32)   # [N, K]
    w_nk_masked = weight_mat * mask                                         # [N, K]
    # per-edge weight, edge index e = k*N + i
    wgt = (asap_weight * area[None, :] * w_nk_masked.T).reshape(K * N)      # [K*N]
    # reference edge vectors alpha*(q_i - q_{nbr(i,k)}), coord-major edge index
    q_nbr = xyz1_cn[:, neighbors]                                           # [3, N, K]
    eq = (alpha * (xyz1_cn[:, :, None] - q_nbr)).transpose(0, 2, 1).reshape(3, K * N)
    # signed edge-incidence S[k*N+i, j] = [i==j] - [nbr(i,k)==j]
    eye_n = jnp.eye(N, dtype=jnp.float32)
    onehot_nbr = jax.nn.one_hot(neighbors, N, dtype=jnp.float32)            # [N, K, N]
    S = (eye_n[:, None, :] - onehot_nbr).transpose(1, 0, 2).reshape(K * N, N)
    # quadratic fold:  E_total(P) = sum(P*(P@A)) - 2*sum(P*b) + c
    a_mat = jnp.dot(S.T, wgt[:, None] * S, precision=hp)                    # [N, N]
    b_mat = jnp.dot(eq * wgt[None, :], S, precision=hp)                     # [3, N]
    c_const = jnp.sum(wgt * jnp.sum(eq * eq, axis=0))                       # scalar
    b_flat = b_mat.reshape(1, 3 * N)                                        # [1, 3N]
    cterm = c_const.reshape(1, 1)                                           # [1, 1]
    # decoder weights in kernel-friendly layouts
    w2_h3n = w2_3hn.transpose(1, 0, 2).reshape(H, 3 * N)                    # [H, 3N]
    b2_flat = b2_3n.reshape(1, 3 * N)                                       # [1, 3N]
    w2t_stack = w2_h3n.T                                                    # [3N, H]
    w1t_pad = jnp.zeros((H, OUT_LANES), jnp.float32).at[:, :L].set(w1.T)    # [H, 128]

    # ---- run the fused Pallas kernel ----
    energies, grads = casap_energy(codes, w1, b1, w2_h3n, b2_flat, a_mat,
                                   b_flat, cterm, w2t_stack, w1t_pad)
    jax.block_until_ready((energies, grads))

    # ---- validate against pure-JAX autodiff (exact gathers, fp32 matmuls) ----
    def energy_fn(cv):
        h = jnp.tanh(jnp.dot(cv[None, :], w1, precision=hp) + b1)
        P = jnp.einsum('h,chn->cn', h[0], w2_3hn, precision=hp) + b2_3n     # [3, N]
        pe = P[:, :, None] - P[:, neighbors]                                # [3, N, K]
        qe = xyz1_cn[:, :, None] - q_nbr
        d = pe - alpha * qe
        ev = asap_weight * area * jnp.sum(w_nk_masked[None] * d * d, axis=(0, 2))
        return jnp.mean(ev)

    e_ref, g_ref = jax.vmap(jax.value_and_grad(energy_fn))(codes)
    e_ref, g_ref = jax.block_until_ready((e_ref, g_ref))

    assert jnp.allclose(energies, e_ref, rtol=1e-4, atol=1e-4), \
        float(jnp.max(jnp.abs(energies - e_ref)))
    assert jnp.allclose(grads, g_ref, rtol=1e-4, atol=1e-4), \
        float(jnp.max(jnp.abs(grads - g_ref)))

    # Module returns (asapEnergy, code.grad); here one pair per batched code.
    _result = (jax.device_get(energies), jax.device_get(grads))

    print("KERNEL_OK")
</pallas_src>

<mosaic_0001>
module attributes {stable_mosaic.version = 11 : i64} {
  func.func @_casap_kernel(%arg0: i32, %arg1: memref<8x32xf32, #tpu.memory_space<vmem>>, %arg2: memref<32x128xf32, #tpu.memory_space<vmem>>, %arg3: memref<1x128xf32, #tpu.memory_space<vmem>>, %arg4: memref<128x384xf32, #tpu.memory_space<vmem>>, %arg5: memref<1x384xf32, #tpu.memory_space<vmem>>, %arg6: memref<128x128xf32, #tpu.memory_space<vmem>>, %arg7: memref<1x384xf32, #tpu.memory_space<vmem>>, %arg8: memref<1x1xf32, #tpu.memory_space<vmem>>, %arg9: memref<384x128xf32, #tpu.memory_space<vmem>>, %arg10: memref<128x128xf32, #tpu.memory_space<vmem>>, %arg11: memref<8x128xf32, #tpu.memory_space<vmem>>, %arg12: memref<8x128xf32, #tpu.memory_space<vmem>>) attributes {dimension_semantics = [#tpu.dimension_semantics<parallel>], iteration_bounds = array<i64: 2>, scalar_prefetch = 0 : i64, scratch_operands = 0 : i64, tpu.core_type = #tpu.core_type<tc>, window_params = [{transform_indices = @transform_0, window_bounds = array<i64: 8, 32>}, {pipeline_mode = #tpu.pipeline_mode<synchronous>, transform_indices = @transform_1, window_bounds = array<i64: 32, 128>}, {pipeline_mode = #tpu.pipeline_mode<synchronous>, transform_indices = @transform_2, window_bounds = array<i64: 1, 128>}, {pipeline_mode = #tpu.pipeline_mode<synchronous>, transform_indices = @transform_3, window_bounds = array<i64: 128, 384>}, {pipeline_mode = #tpu.pipeline_mode<synchronous>, transform_indices = @transform_4, window_bounds = array<i64: 1, 384>}, {pipeline_mode = #tpu.pipeline_mode<synchronous>, transform_indices = @transform_5, window_bounds = array<i64: 128, 128>}, {pipeline_mode = #tpu.pipeline_mode<synchronous>, transform_indices = @transform_6, window_bounds = array<i64: 1, 384>}, {pipeline_mode = #tpu.pipeline_mode<synchronous>, transform_indices = @transform_7, window_bounds = array<i64: 1, 1>}, {pipeline_mode = #tpu.pipeline_mode<synchronous>, transform_indices = @transform_8, window_bounds = array<i64: 384, 128>}, {pipeline_mode = #tpu.pipeline_mode<synchronous>, transform_indices = @transform_9, window_bounds = array<i64: 128, 128>}, {transform_indices = @transform_10, window_bounds = array<i64: 8, 128>}, {transform_indices = @transform_11, window_bounds = array<i64: 8, 128>}]} {
    %c0 = arith.constant 0 : index
    %c0_0 = arith.constant 0 : index
    %0 = vector.load %arg1[%c0, %c0_0] : memref<8x32xf32, #tpu.memory_space<vmem>>, vector<8x32xf32>
    %c0_1 = arith.constant 0 : index
    %c0_2 = arith.constant 0 : index
    %1 = vector.load %arg2[%c0_1, %c0_2] : memref<32x128xf32, #tpu.memory_space<vmem>>, vector<32x128xf32>
    %cst = arith.constant dense<0.000000e+00> : vector<8x128xf32>
    %2 = tpu.matmul %0, %1, %cst {dimension_numbers = #tpu.dot_dimension_numbers<[1], [0], [0], [1], [0, 0, 1, 1], [], []>, precision = #tpu.contract_precision<fp32>} : vector<8x32xf32>, vector<32x128xf32>, vector<8x128xf32> -> vector<8x128xf32>
    %c0_3 = arith.constant 0 : index
    %c0_4 = arith.constant 0 : index
    %3 = vector.load %arg3[%c0_3, %c0_4] : memref<1x128xf32, #tpu.memory_space<vmem>>, vector<1x128xf32>
    %4 = vector.broadcast %3 : vector<1x128xf32> to vector<8x128xf32>
    %5 = arith.addf %2, %4 : vector<8x128xf32>
    %6 = math.tanh %5 : vector<8x128xf32>
    %c0_5 = arith.constant 0 : index
    %c0_6 = arith.constant 0 : index
    %7 = vector.load %arg4[%c0_5, %c0_6] : memref<128x384xf32, #tpu.memory_space<vmem>>, vector<128x384xf32>
    %cst_7 = arith.constant dense<0.000000e+00> : vector<8x384xf32>
    %8 = tpu.matmul %6, %7, %cst_7 {dimension_numbers = #tpu.dot_dimension_numbers<[1], [0], [0], [1], [0, 0, 1, 1], [], []>, precision = #tpu.contract_precision<fp32>} : vector<8x128xf32>, vector<128x384xf32>, vector<8x384xf32> -> vector<8x384xf32>
    %c0_8 = arith.constant 0 : index
    %c0_9 = arith.constant 0 : index
    %9 = vector.load %arg5[%c0_8, %c0_9] : memref<1x384xf32, #tpu.memory_space<vmem>>, vector<1x384xf32>
    %10 = vector.broadcast %9 : vector<1x384xf32> to vector<8x384xf32>
    %11 = arith.addf %8, %10 : vector<8x384xf32>
    %12 = vector.extract_strided_slice %11 {offsets = [0, 0], sizes = [8, 128], strides = [1, 1]} : vector<8x384xf32> to vector<8x128xf32>
    %c0_10 = arith.constant 0 : index
    %c0_11 = arith.constant 0 : index
    %13 = vector.load %arg6[%c0_10, %c0_11] : memref<128x128xf32, #tpu.memory_space<vmem>>, vector<128x128xf32>
    %cst_12 = arith.constant dense<0.000000e+00> : vector<8x128xf32>
    %14 = tpu.matmul %12, %13, %cst_12 {dimension_numbers = #tpu.dot_dimension_numbers<[1], [0], [0], [1], [0, 0, 1, 1], [], []>, precision = #tpu.contract_precision<fp32>} : vector<8x128xf32>, vector<128x128xf32>, vector<8x128xf32> -> vector<8x128xf32>
    %15 = vector.extract_strided_slice %11 {offsets = [0, 128], sizes = [8, 128], strides = [1, 1]} : vector<8x384xf32> to vector<8x128xf32>
    %c0_13 = arith.constant 0 : index
    %c0_14 = arith.constant 0 : index
    %16 = vector.load %arg6[%c0_13, %c0_14] : memref<128x128xf32, #tpu.memory_space<vmem>>, vector<128x128xf32>
    %cst_15 = arith.constant dense<0.000000e+00> : vector<8x128xf32>
    %17 = tpu.matmul %15, %16, %cst_15 {dimension_numbers = #tpu.dot_dimension_numbers<[1], [0], [0], [1], [0, 0, 1, 1], [], []>, precision = #tpu.contract_precision<fp32>} : vector<8x128xf32>, vector<128x128xf32>, vector<8x128xf32> -> vector<8x128xf32>
    %18 = vector.extract_strided_slice %11 {offsets = [0, 256], sizes = [8, 128], strides = [1, 1]} : vector<8x384xf32> to vector<8x128xf32>
    %c0_16 = arith.constant 0 : index
    %c0_17 = arith.constant 0 : index
    %19 = vector.load %arg6[%c0_16, %c0_17] : memref<128x128xf32, #tpu.memory_space<vmem>>, vector<128x128xf32>
    %cst_18 = arith.constant dense<0.000000e+00> : vector<8x128xf32>
    %20 = tpu.matmul %18, %19, %cst_18 {dimension_numbers = #tpu.dot_dimension_numbers<[1], [0], [0], [1], [0, 0, 1, 1], [], []>, precision = #tpu.contract_precision<fp32>} : vector<8x128xf32>, vector<128x128xf32>, vector<8x128xf32> -> vector<8x128xf32>
    %21 = tpu.concatenate %14, %17, %20 in 1 : vector<8x128xf32>, vector<8x128xf32>, vector<8x128xf32> -> vector<8x384xf32>
    %c0_19 = arith.constant 0 : index
    %c0_20 = arith.constant 0 : index
    %22 = vector.load %arg7[%c0_19, %c0_20] : memref<1x384xf32, #tpu.memory_space<vmem>>, vector<1x384xf32>
    %cst_21 = arith.constant 2.000000e+00 : f32
    %23 = vector.broadcast %cst_21 : f32 to vector<1x384xf32>
    %24 = arith.mulf %23, %22 : vector<1x384xf32>
    %25 = vector.broadcast %24 : vector<1x384xf32> to vector<8x384xf32>
    %26 = arith.subf %21, %25 : vector<8x384xf32>
    %27 = arith.mulf %11, %26 : vector<8x384xf32>
    %cst_22 = arith.constant dense<0.000000e+00> : vector<8xf32>
    %28 = vector.multi_reduction <add>, %27, %cst_22 [1] : vector<8x384xf32> to vector<8xf32>
    %29 = vector.shape_cast %28 : vector<8xf32> to vector<8x1xf32>
    %c0_23 = arith.constant 0 : index
    %c0_24 = arith.constant 0 : index
    %30 = vector.load %arg8[%c0_23, %c0_24] : memref<1x1xf32, #tpu.memory_space<vmem>>, vector<1x1xf32>
    %31 = vector.broadcast %30 : vector<1x1xf32> to vector<8x1xf32>
    %32 = arith.addf %29, %31 : vector<8x1xf32>
    %cst_25 = arith.constant 7.812500e-03 : f32
    %33 = vector.broadcast %cst_25 : f32 to vector<8x1xf32>
    %34 = arith.mulf %32, %33 : vector<8x1xf32>
    %35 = vector.broadcast %22 : vector<1x384xf32> to vector<8x384xf32>
    %36 = arith.subf %21, %35 : vector<8x384xf32>
    %cst_26 = arith.constant 1.562500e-02 : f32
    %37 = vector.broadcast %cst_26 : f32 to vector<8x384xf32>
    %38 = arith.mulf %36, %37 : vector<8x384xf32>
    %c0_27 = arith.constant 0 : index
    %c0_28 = arith.constant 0 : index
    %39 = vector.load %arg9[%c0_27, %c0_28] : memref<384x128xf32, #tpu.memory_space<vmem>>, vector<384x128xf32>
    %cst_29 = arith.constant dense<0.000000e+00> : vector<8x128xf32>
    %40 = tpu.matmul %38, %39, %cst_29 {dimension_numbers = #tpu.dot_dimension_numbers<[1], [0], [0], [1], [0, 0, 1, 1], [], []>, precision = #tpu.contract_precision<fp32>} : vector<8x384xf32>, vector<384x128xf32>, vector<8x128xf32> -> vector<8x128xf32>
    %41 = arith.mulf %6, %6 : vector<8x128xf32>
    %cst_30 = arith.constant 1.000000e+00 : f32
    %42 = vector.broadcast %cst_30 : f32 to vector<8x128xf32>
    %43 = arith.subf %42, %41 : vector<8x128xf32>
    %44 = arith.mulf %40, %43 : vector<8x128xf32>
    %c0_31 = arith.constant 0 : index
    %c0_32 = arith.constant 0 : index
    %45 = vector.load %arg10[%c0_31, %c0_32] : memref<128x128xf32, #tpu.memory_space<vmem>>, vector<128x128xf32>
    %cst_33 = arith.constant dense<0.000000e+00> : vector<8x128xf32>
    %46 = tpu.matmul %44, %45, %cst_33 {dimension_numbers = #tpu.dot_dimension_numbers<[1], [0], [0], [1], [0, 0, 1, 1], [], []>, precision = #tpu.contract_precision<fp32>} : vector<8x128xf32>, vector<128x128xf32>, vector<8x128xf32> -> vector<8x128xf32>
    %47 = vector.shape_cast %34 : vector<8x1xf32> to vector<8x1xf32>
    %48 = vector.broadcast %47 : vector<8x1xf32> to vector<8x128xf32>
    %c0_34 = arith.constant 0 : index
    %c0_35 = arith.constant 0 : index
    %49 = vector.load %arg11[%c0_34, %c0_35] : memref<8x128xf32, #tpu.memory_space<vmem>>, vector<8x128xf32>
    tpu.vector_store %arg11[%c0_34, %c0_35], %48 {strides = array<i32>} : memref<8x128xf32, #tpu.memory_space<vmem>>, vector<8x128xf32>,
    %c0_36 = arith.constant 0 : index
    %c0_37 = arith.constant 0 : index
    %50 = vector.load %arg12[%c0_36, %c0_37] : memref<8x128xf32, #tpu.memory_space<vmem>>, vector<8x128xf32>
    tpu.vector_store %arg12[%c0_36, %c0_37], %46 {strides = array<i32>} : memref<8x128xf32, #tpu.memory_space<vmem>>, vector<8x128xf32>,
    return
  }
  func.func @transform_0(%arg0: i32) -> (i32, i32) {
    %c0_i32 = arith.constant 0 : i32
    %c0_i32_0 = arith.constant 0 : i32
    return %arg0, %c0_i32 : i32, i32
  }
  func.func @transform_1(%arg0: i32) -> (i32, i32) {
    %c0_i32 = arith.constant 0 : i32
    %c0_i32_0 = arith.constant 0 : i32
    %c0_i32_1 = arith.constant 0 : i32
    return %c0_i32, %c0_i32_0 : i32, i32
  }
  func.func @transform_2(%arg0: i32) -> (i32, i32) {
    %c0_i32 = arith.constant 0 : i32
    %c0_i32_0 = arith.constant 0 : i32
    %c0_i32_1 = arith.constant 0 : i32
    return %c0_i32, %c0_i32_0 : i32, i32
  }
  func.func @transform_3(%arg0: i32) -> (i32, i32) {
    %c0_i32 = arith.constant 0 : i32
    %c0_i32_0 = arith.constant 0 : i32
    %c0_i32_1 = arith.constant 0 : i32
    return %c0_i32, %c0_i32_0 : i32, i32
  }
  func.func @transform_4(%arg0: i32) -> (i32, i32) {
    %c0_i32 = arith.constant 0 : i32
    %c0_i32_0 = arith.constant 0 : i32
    %c0_i32_1 = arith.constant 0 : i32
    return %c0_i32, %c0_i32_0 : i32, i32
  }
  func.func @transform_5(%arg0: i32) -> (i32, i32) {
    %c0_i32 = arith.constant 0 : i32
    %c0_i32_0 = arith.constant 0 : i32
    %c0_i32_1 = arith.constant 0 : i32
    return %c0_i32, %c0_i32_0 : i32, i32
  }
  func.func @transform_6(%arg0: i32) -> (i32, i32) {
    %c0_i32 = arith.constant 0 : i32
    %c0_i32_0 = arith.constant 0 : i32
    %c0_i32_1 = arith.constant 0 : i32
    return %c0_i32, %c0_i32_0 : i32, i32
  }
  func.func @transform_7(%arg0: i32) -> (i32, i32) {
    %c0_i32 = arith.constant 0 : i32
    %c0_i32_0 = arith.constant 0 : i32
    %c0_i32_1 = arith.constant 0 : i32
    return %c0_i32, %c0_i32_0 : i32, i32
  }
  func.func @transform_8(%arg0: i32) -> (i32, i32) {
    %c0_i32 = arith.constant 0 : i32
    %c0_i32_0 = arith.constant 0 : i32
    %c0_i32_1 = arith.constant 0 : i32
    return %c0_i32, %c0_i32_0 : i32, i32
  }
  func.func @transform_9(%arg0: i32) -> (i32, i32) {
    %c0_i32 = arith.constant 0 : i32
    %c0_i32_0 = arith.constant 0 : i32
    %c0_i32_1 = arith.constant 0 : i32
    return %c0_i32, %c0_i32_0 : i32, i32
  }
  func.func @transform_10(%arg0: i32) -> (i32, i32) {
    %c0_i32 = arith.constant 0 : i32
    %c0_i32_0 = arith.constant 0 : i32
    return %arg0, %c0_i32 : i32, i32
  }
  func.func @transform_11(%arg0: i32) -> (i32, i32) {
    %c0_i32 = arith.constant 0 : i32
    %c0_i32_0 = arith.constant 0 : i32
    return %arg0, %c0_i32 : i32, i32
  }
}

</mosaic_0001>

<bundles_post_ra>
// kernel: tpu_custom_call.1
= control target key start
LH: loop header
LB: loop body
LE: loop exit
PB: predicated region body
PF: predicated region fallthrough
CT: control target
= control target key end

     0   :  { %s14172_s0 = inlined_call_operand.hbm [shape: f32[16,32], index: 0, kind: input, shape index: {}]   ;;  %s14173_s1 = inlined_call_operand.hbm [shape: f32[32,128], index: 1, kind: input, shape index: {}]   ;;  %s14174_s2 = inlined_call_operand.vmem [shape: f32[1,128], index: 2, kind: input, shape index: {}]   ;;  %s14175_s3 = inlined_call_operand.hbm [shape: f32[128,384], index: 3, kind: input, shape index: {}]   ;;  %s14176_s4 = inlined_call_operand.vmem [shape: f32[1,384], index: 4, kind: input, shape index: {}]   ;;  %s14177_s5 = inlined_call_operand.hbm [shape: f32[128,128], index: 5, kind: input, shape index: {}]   ;;  %s14178_s6 = inlined_call_operand.vmem [shape: f32[1,384], index: 6, kind: input, shape index: {}]   ;;  %s14179_s7 = inlined_call_operand.<no memory space> [shape: f32[1,1], index: 7, kind: input, shape index: {}]   ;;  %s14180_s8 = inlined_call_operand.hbm [shape: f32[384,128], index: 8, kind: input, shape index: {}]   ;;  %s14181_s9 = inlined_call_operand.hbm [shape: f32[128,128], index: 9, kind: input, shape index: {}]   ;;  %s14182_s10 = inlined_call_operand.hbm [shape: f32[16,128], index: 10, kind: output, shape index: {0}]   ;;  %s14183_s11 = inlined_call_operand.hbm [shape: f32[16,128], index: 11, kind: output, shape index: {1}]  }
   0x1   :  { %14434 = sst [smem:[#allocation69_spill]] %s14172_s0  ;;  %v17_v0 = vstv %s14179_s7 }
   0x2   :  { %14435 = sst [smem:[#allocation70_spill]] %s14173_s1  ;;  %18 = vst [vmem:[#allocation2] sm:$0x1] %v17_v0 }
   0x3   :  { %14436 = sst [smem:[#allocation71_spill]] %s14177_s5 }
   0x4   :  { %14437 = sst [smem:[#allocation72_spill]] %s14182_s10 }
   0x5   :  { %14438 = sst [smem:[#allocation73_spill]] %s14183_s11 }
   0x6   :  { %19 = vsyncpa [#allocation4], 0 }
   0x7   :  { %21 = vsyncpa [#allocation4 + $0x1], 0 }
   0x8   :  { %22 = vsyncpa [#allocation7], 0 }
   0x9   :  { %23 = vsyncpa [#allocation10], 0 }
   0xa   :  { %24 = vsyncpa [#allocation13], 0 }
   0xb   :  { %25 = vsyncpa [#allocation5], 0 }
   0xc   :  { %27 = vsyncpa [#allocation5 + $0x1], 0 }
   0xd   :  { %28 = vsyncpa [#allocation16], 0 }
   0xe   :  { %30 = vsyncpa [#allocation16 + $0x1], 0  ;;  %s10997_s19 = smov 0   ;;  %s10999_s20 = smov 0  }
   0xf   :  { %s11001_s21 = smov 0   ;;  %s11003_s22 = smov 0  }
  0x10 LB: > { %s10918_s7 = smov [#allocation6]   ;;  %s11018_s24 = sadd.s32 4294967295, %s10916_s22   ;;  %s10916_s22 = sphi %s11003_s22, %s14846_s22   ;;  %s10912_s21 = sphi %s11001_s21, %s14845_s21   ;;  %s10908_s20 = sphi %s10999_s20, %s14844_s20   ;;  %s10904_s19 = sphi %s10997_s19, %s14843_s19  }
  0x11   : > { %s320_s23 = sshll.u32 %s10918_s7, 4  ;;  %p6950_p0 = scmp.ge.s32.totalorder %s10916_s22, 1  ;;  %s11023_s23 = int_to_ptr.vmem [resolvable:$true] %s320_s23 }
  0x12   : > { %p14190_p1 = scmp.eq.s32.totalorder %s11018_s24, 0  ;;  %p308_p2 = scmp.lt.s32.totalorder %s10916_s22, 3 }
  0x13   : > { %s10919_s26 = smov [#allocation9]   ;;  %s10920_s29 = smov [#allocation8]  }
  0x14   : > { %p11025_p3 = pnand %p6950_p0, %p308_p2  ;;  %s352_s27 = sshll.u32 %s10919_s26, 4  ;;  %s11038_s27 = int_to_ptr.vmem [resolvable:$true] %s352_s27 }
  0x15   : > { %s336_s30 = sshll.u32 %s10920_s29, 4  ;;  %s14441_s1 = sld [smem:[#allocation70_spill]]  ;;  %s11040_s30 = int_to_ptr.vmem [resolvable:$true] %s336_s30 }
  0x16   : > { %s14439_s25 = scalar_select %p11025_p3, 1, 0 }
  0x17   : > { %p10549_p5 = pneg %p11025_p3 }
  0x19   : > { %p11034_p6 = pnand %p10549_p5, %p14190_p1 }
  0x1b   : > { %s10636_s14 = scalar_lea.hbm %s14441_s1, 512  ;;  %p11050_p8 = pneg %p11034_p6 }
  0x1c   : > { %p10637_p7 = scmp.ne.s32.totalorder %s14441_s1, %s10636_s14  ;;  %p10643_p11 = scmp.lt.u32.totalorder %s10636_s14, %s14441_s1 }
  0x1e   : > { %p10639_p9 = pnand %p11050_p8, %p10637_p7 }
  0x20   : > { %p10640_p10 = pneg %p10639_p9 }
  0x22   : > { %p10645_p12 = pnand %p10643_p11, %p10640_p10 }
  0x24   : > { %10648 = shalt.err (!%p10645_p12)
}
  0x25   : > { %s10649_s26 = scalar_lea.vmem %s11023_s23, 512  ;;  %p10657_p5 = scmp.lt.s32.totalorder %s11023_s23, %s11023_s23 }
  0x26   : > { %p10650_p13 = scmp.ne.s32.totalorder %s11023_s23, %s10649_s26  ;;  %p10658_p4 = scmp.lt.s32.totalorder %s10649_s26, %s10649_s26 }
  0x28   : > { %p10652_p0 = pnand %p10650_p13, %p11050_p8  ;;  %p10659_p7 = por %p10658_p4, %p10657_p5 }
  0x2a   : > { %p10653_p2 = pneg %p10652_p0 }
  0x2c   : > { %p10660_p9 = pnand %p10659_p7, %p10653_p2 }
  0x2e   : > { %10663 = shalt.err (!%p10660_p9)
}
  0x2f   : > { %s14186_s29 = smov 128   ;;  %s14188_s12 = smov 8  }
  0x30   : > { %10552 = dma.hbm_to_vmem [thread:$0]  (!%p11034_p6), %s14441_s1, 512, %s11023_s23, [#allocation7], %s14186_s29, %s14186_s29, %s14188_s12  }
  0x31   : > { %s14443_s5 = sld [smem:[#allocation71_spill]] }
  0x37   : > { %s10664_s18 = scalar_lea.hbm %s14443_s5, 2048 }
  0x38   : > { %p10665_p4 = scmp.ne.s32.totalorder %s14443_s5, %s10664_s18  ;;  %p10671_p12 = scmp.lt.u32.totalorder %s10664_s18, %s14443_s5 }
  0x3a   : > { %p10667_p10 = pnand %p10665_p4, %p11050_p8 }
  0x3c   : > { %p10668_p11 = pneg %p10667_p10 }
  0x3e   : > { %p10673_p13 = pnand %p10671_p12, %p10668_p11 }
  0x40   : > { %10676 = shalt.err (!%p10673_p13)
}
  0x41   : > { %s10677_s23 = scalar_lea.vmem %s11038_s27, 2048  ;;  %p10685_p7 = scmp.lt.s32.totalorder %s11038_s27, %s11038_s27 }
  0x42   : > { %p10678_p0 = scmp.ne.s32.totalorder %s11038_s27, %s10677_s23  ;;  %p10686_p9 = scmp.lt.s32.totalorder %s10677_s23, %s10677_s23 }
  0x44   : > { %p10680_p2 = pnand %p10678_p0, %p11050_p8  ;;  %p10687_p4 = por %p10686_p9, %p10685_p7 }
  0x46   : > { %p10681_p5 = pneg %p10680_p2 }
  0x48   : > { %p10688_p10 = pnand %p10687_p4, %p10681_p5 }
  0x4a   : > { %10691 = shalt.err (!%p10688_p10)
}
  0x4b   : > { %10558 = dma.hbm_to_vmem [thread:$0]  (!%p11034_p6), %s14443_s5, 2048, %s11038_s27, [#allocation10], %s14186_s29, %s14186_s29, %s14188_s12  }
  0x4c   : > { %s10692_s15 = scalar_lea.hbm %s14175_s3, 6144 }
  0x4d   : > { %p10693_p11 = scmp.ne.s32.totalorder %s14175_s3, %s10692_s15  ;;  %p10699_p0 = scmp.lt.u32.totalorder %s10692_s15, %s14175_s3 }
  0x4f   : > { %p10695_p12 = pnand %p10693_p11, %p11050_p8 }
  0x51   : > { %p10696_p13 = pneg %p10695_p12 }
  0x53   : > { %p10701_p2 = pnand %p10699_p0, %p10696_p13 }
  0x55   : > { %10704 = shalt.err (!%p10701_p2)
}
  0x56   : > { %s10705_s27 = scalar_lea.vmem %s11040_s30, 6144  ;;  %p10713_p4 = scmp.lt.s32.totalorder %s11040_s30, %s11040_s30 }
  0x57   : > { %p10706_p5 = scmp.ne.s32.totalorder %s11040_s30, %s10705_s27  ;;  %p10714_p10 = scmp.lt.s32.totalorder %s10705_s27, %s10705_s27 }
  0x59   : > { %p10708_p7 = pnand %p10706_p5, %p11050_p8  ;;  %p10715_p11 = por %p10714_p10, %p10713_p4 }
  0x5b   : > { %p10709_p9 = pneg %p10708_p7 }
  0x5d   : > { %p10716_p12 = pnand %p10715_p11, %p10709_p9 }
  0x5f   : > { %10719 = shalt.err (!%p10716_p12)
}
  0x60   : > { %s10923_s23 = smov 384   ;;  %s10924_s10 = smov 24  }
  0x61   : > { %10555 = dma.hbm_to_vmem [thread:$0]  (!%p11034_p6), %s14175_s3, 6144, %s11040_s30, [#allocation7], %s10923_s23, %s10923_s23, %s10924_s10  }
  0x62   : > { %s10925_s14 = smov [#allocation11]   ;;  %s10926_s16 = smov [#allocation12]  }
  0x63   : > { %s371_s15 = sshll.u32 %s10925_s14, 4  ;;  %s384_s18 = sshll.u32 %s10926_s16, 4  ;;  %s372_s15 = int_to_ptr.vmem [resolvable:$true] %s371_s15  ;;  %s385_s18 = int_to_ptr.vmem [resolvable:$true] %s384_s18 }
  0x64   : > { %s10720_s27 = scalar_lea.hbm %s14180_s8, 6144 }
  0x65   : > { %p10721_p13 = scmp.ne.s32.totalorder %s14180_s8, %s10720_s27  ;;  %p10727_p5 = scmp.lt.u32.totalorder %s10720_s27, %s14180_s8 }
  0x67   : > { %p10723_p0 = pnand %p10721_p13, %p11050_p8 }
  0x69   : > { %p10724_p2 = pneg %p10723_p0 }
  0x6b   : > { %p10729_p7 = pnand %p10727_p5, %p10724_p2 }
  0x6d   : > { %10732 = shalt.err (!%p10729_p7)
}
  0x6e   : > { %s10733_s30 = scalar_lea.vmem %s372_s15, 6144  ;;  %p10741_p11 = scmp.lt.s32.totalorder %s372_s15, %s372_s15 }
  0x6f   : > { %p10734_p9 = scmp.ne.s32.totalorder %s372_s15, %s10733_s30  ;;  %p10742_p12 = scmp.lt.s32.totalorder %s10733_s30, %s10733_s30 }
  0x71   : > { %p10736_p4 = pnand %p10734_p9, %p11050_p8  ;;  %p10743_p1 = por %p10742_p12, %p10741_p11 }
  0x73   : > { %p10737_p10 = pneg %p10736_p4 }
  0x75   : > { %p10744_p3 = pnand %p10743_p1, %p10737_p10 }
  0x77   : > { %10747 = shalt.err (!%p10744_p3)
}
  0x78   : > { %s14444_s29 = smov 8   ;;  %s14445_s12 = smov 128  }
  0x79   : > { %10561 = dma.hbm_to_vmem [thread:$0]  (!%p11034_p6), %s14180_s8, 6144, %s372_s15, [#allocation10], %s14445_s12, %s14445_s12, %s14444_s29  }
  0x7a   : > { %s10748_s11 = scalar_lea.hbm %s14181_s9, 2048 }
  0x7b   : > { %p10749_p1 = scmp.ne.s32.totalorder %s14181_s9, %s10748_s11  ;;  %p10755_p0 = scmp.lt.u32.totalorder %s10748_s11, %s14181_s9 }
  0x7d   : > { %p10751_p3 = pnand %p10749_p1, %p11050_p8 }
  0x7f   : > { %p10752_p13 = pneg %p10751_p3 }
  0x81   : > { %p10757_p2 = pnand %p10755_p0, %p10752_p13 }
  0x83   : > { %10760 = shalt.err (!%p10757_p2)
}
  0x84   : > { %s10761_s26 = scalar_lea.vmem %s385_s18, 2048  ;;  %p10769_p4 = scmp.lt.s32.totalorder %s385_s18, %s385_s18 }
  0x85   : > { %p10762_p5 = scmp.ne.s32.totalorder %s385_s18, %s10761_s26  ;;  %p10770_p10 = scmp.lt.s32.totalorder %s10761_s26, %s10761_s26 }
  0x87   : > { %p10764_p7 = pnand %p10762_p5, %p11050_p8  ;;  %p10771_p11 = por %p10770_p10, %p10769_p4 }
  0x89   : > { %p10765_p9 = pneg %p10764_p7 }
  0x8b   : > { %p10772_p12 = pnand %p10771_p11, %p10765_p9 }
  0x8d   : > { %10775 = shalt.err (!%p10772_p12)
}
  0x8e   : > { %10564 = dma.hbm_to_vmem [thread:$0]  (!%p11034_p6), %s14181_s9, 2048, %s385_s18, [#allocation13], %s14445_s12, %s14445_s12, %s14444_s29  }
  0x8f   : > { %s6949_s28 = sadd.s32 4294967294, %s10916_s22   ;;  %s11167_s17 = sadd.s32 1, %s10916_s22  }
  0x90   : > { %s43_s30 = sadd.s32 1, %s10912_s21  ;;  %s40_s1 = ssub.s32 %s10916_s22, %s11167_s17 }
  0x91   : > { %p50_p8 = scmp.ne.s32.totalorder %s10912_s21, %s10908_s20  ;;  %p41_p1 = scmp.eq.s32.totalorder %s40_s1, 0 }
  0x92   : > { %p51_p3 = scmp.eq.s32.totalorder %s10916_s22, 0  ;;  %p56_p13 = scmp.ne.s32.totalorder %s10908_s20, %s10904_s19 }
  0x93   : > { %p269_p0 = scmp.eq.s32.totalorder %s11018_s24, 1  ;;  %p14446_p5 = scmp.eq.s32.totalorder %s11018_s24, 0 }
  0x94   : > { %s11179_s5 = scalar_select %p41_p1, %s10912_s21, %s43_s30  }
  0x95   : > { %p52_p2 = por %p51_p3, %p50_p8  ;;  %p11183_p7 = por %p14446_p5, %p56_p13 }
  0x96   : > { %p11187_p6 = por %p269_p0, %p50_p8  ;;  %p275_p9 = scmp.eq.s32.totalorder %s6949_s28, 1 }
  0x97   : > { %p10581_p4 = scmp.lt.s32.totalorder %s10916_s22, 2  ;;  %s398_s29 = sand.u32 1, %s10912_s21  }
  0x98   : > { %s14448_s18 = scalar_select %p11187_p6, 1, 0 }
  0x99   : > { %p11193_p10 = por %p275_p9, %p56_p13  ;;  %s6957_s10 = sshll.u32 %s398_s29, 3 }
  0x9a   : > { %s6958_s11 = sshll.u32 %s10916_s22, 7  ;;  %s14450_s0 = sld [smem:[#allocation69_spill]] }
  0x9b   : > { %s14449_s12 = scalar_select %p11193_p10, 1, 0 }
  0x9c   : > { %s402_s7 = scalar_lea.vmem [#allocation3], %s6957_s10  ;;  %p11203_p11 = pnand %p10581_p4, %p52_p2 }
  0x9d   : > { %s409_s26 = sshll.u32 %s402_s7, 4  ;;  %s399_s27 = scalar_lea.sflag [#allocation4], %s398_s29  ;;  %s11207_s26 = int_to_ptr.vmem [resolvable:$true] %s409_s26 }
  0x9e   : > { %p10778_p8 = pneg %p11203_p11 }
  0xa0   : > { %s11201_s16 = scalar_lea.hbm %s14450_s0, %s6958_s11  ;;  %s10781_s10 = scalar_lea.hbm %s14450_s0, 256 }
  0xa1   : > { %s10776_s28 = scalar_lea.hbm %s11201_s16, 128  ;;  %p10782_p13 = scmp.lt.u32.totalorder %s11201_s16, %s14450_s0 }
  0xa2   : > { %p10777_p12 = scmp.ne.s32.totalorder %s11201_s16, %s10776_s28  ;;  %p10783_p0 = scmp.lt.u32.totalorder %s10781_s10, %s10776_s28 }
  0xa3   : > { %p10785_p5 = scmp.lt.u32.totalorder %s10776_s28, %s11201_s16 }
  0xa4   : > { %p10779_p1 = pnand %p10778_p8, %p10777_p12  ;;  %p10784_p2 = por %p10783_p0, %p10782_p13 }
  0xa6   : > { %p10780_p3 = pneg %p10779_p1  ;;  %p10786_p9 = por %p10785_p5, %p10784_p2 }
  0xa8   : > { %p10787_p4 = pnand %p10786_p9, %p10780_p3 }
  0xaa   : > { %10790 = shalt.err (!%p10787_p4)
}
  0xab   : > { %s10791_s29 = scalar_lea.vmem %s11207_s26, 128  ;;  %s10927_s14 = smov [#allocation3]  }
  0xac   : > { %p10792_p12 = scmp.ne.s32.totalorder %s11207_s26, %s10791_s29  ;;  %s10796_s7 = sshll.u32 %s10927_s14, 4  ;;  %s10797_s7 = int_to_ptr.vmem [resolvable:$false] %s10796_s7 }
  0xad   : > { %s10798_s30 = scalar_lea.vmem %s10797_s7, 256  ;;  %p10799_p6 = scmp.lt.s32.totalorder %s11207_s26, %s10797_s7 }
  0xae   : > { %p10794_p1 = pnand %p10792_p12, %p10778_p8  ;;  %p10800_p13 = scmp.lt.s32.totalorder %s10798_s30, %s10791_s29 }
  0xb0   : > { %p10795_p10 = pneg %p10794_p1  ;;  %p10801_p0 = por %p10800_p13, %p10799_p6 }
  0xb2   : > { %p10802_p2 = pnand %p10801_p0, %p10795_p10 }
  0xb4   : > { %10805 = shalt.err (!%p10802_p2)
}
  0xb5   : > { %10568 = dma.hbm_to_vmem [thread:$0]  (!%p11203_p11), %s11201_s16, 128, %s11207_s26, %s399_s27  }
  0xb6   : > { %p14452_p3 = scmp.ne.s32.totalorder %s14439_s25, 0 }
  0xb8   : > { %418 = sbr.rel (%p14452_p3) target bundleno = 2227 (0x8b3), region = 60 }
  0xbf   : > { %s11237_s28 = sand.u32 1, %s10908_s20  }
  0xc0   : > { %s11240_s1 = sshll.u32 %s11237_s28, 3  ;;  %s421_s10 = scalar_lea.sflag [#allocation4], %s11237_s28 }
  0xc1   : > { %s424_s11 = scalar_lea.vmem [#allocation3], %s11240_s1 }
  0xc2   : > { %10879 = dma.done.wait (%p11183_p7), %s421_s10, 128  }
  0xc3   : > { %10881 = vsyncadd (%p11183_p7), %s421_s10, 4294967168  ;;  %p14453_p6 = scmp.eq.s32.totalorder %s11018_s24, 0 }
  0xc5   : > { %10883 = dma.done.wait (%p14453_p6), [#allocation7], 6656   ;;  %p14454_p10 = pmov %p14453_p6 }
  0xc6   : > { %p14455_p11 = pmov %p14453_p6 }
  0xc7   : > { %10885 = vsyncadd (%p14454_p10), [#allocation7], 4294960640 }
  0xc8   : > { %10887 = dma.done.wait (%p14455_p11), [#allocation10], 8192   ;;  %p14456_p8 = pmov %p14453_p6 }
  0xc9   : > { %p14457_p5 = pmov %p14453_p6 }
  0xca   : > { %10889 = vsyncadd (%p14456_p8), [#allocation10], 4294959104 }
  0xcb   : > { %10891 = dma.done.wait (%p14457_p5), [#allocation13], 2048   ;;  %p14458_p9 = pmov %p14457_p5 }
  0xcc   : > { %v14227_v1 = vmov 0.0|0.0   ;;  %vm10929_vm0 = vmmov 0   ;;  %v14193_v2 = vmov 0.0   ;;  %vm500_vm1 = vcmask 261120   ;;  %v489_v3 = vld [vmem:[#allocation6] sm:$0xff]  ;;  %v490_v4 = vld [vmem:[#allocation6 + $0x8] sm:$0xff] }
  0xcd   : > { %10893 = vsyncadd (%p14458_p9), [#allocation13], 4294965248  ;;  %9154 = vmatprep.subr.bf16.mxu0 %v14227_v1  ;;  %7836 = vmatprep.mubr.msk.f32.mxu0 %vm10929_vm0, %v14193_v2  ;;  %v491_v5 = vld [vmem:[#allocation6 + $0x10] sm:$0xff]  ;;  %v505_v6 = vand.u32 4294901760, %v489_v3  ;;  %v508_v7 = vand.u32 4294901760, %v490_v4  ;;  %v492_v8 = vld [vmem:[#allocation6 + $0x18] sm:$0xff] }
  0xce   : > { %1151 = vmatprep.mubr.f32.mxu1 %v14193_v2  ;;  %v511_v9 = vand.u32 4294901760, %v491_v5  ;;  %v488_v10 = vld [vmem:[%s424_s11] sm:$0xff]  ;;  %v991_v11 = vld [vmem:[#allocation8 + $0x8] sm:$0xff]  ;;  %v514_v12 = vand.u32 4294901760, %v492_v8  ;;  %v994_v14 = vld [vmem:[#allocation8 + $0x20] sm:$0xff]  ;;  %s480_s13 = scalar_lea.vmem [#allocation14], %s11240_s1 }
  0xcf   : > { %v502_v13 = vsel %vm500_vm1, %v488_v10, 0  ;;  %v1055_v15 = vand.u32 4294901760, %v991_v11  ;;  %v11264_v16 = vpack.c.bf16 %v508_v7, %v505_v6  ;;  %v11266_v17 = vsub.f32 %v489_v3, %v505_v6  ;;  %v990_v33 = vld [vmem:[#allocation8] sm:$0xff]  ;;  %v993_v34 = vld [vmem:[#allocation8 + $0x18] sm:$0xff]  ;;  %v11305_v38 = vld [vmem:[#allocation8 + $0x10] sm:$0xff]  ;;  %s6786_s29 = sshll.u32 %s480_s13, 4  ;;  %s14097_s29 = int_to_ptr.vmem [resolvable:$true] %s6786_s29 }
  0xd0   : > { %v11268_v18 = vsub.f32 %v490_v4, %v508_v7  ;;  %v11270_v19 = vsub.f32 %v491_v5, %v511_v9  ;;  %v11272_v20 = vsub.f32 %v492_v8, %v514_v12  ;;  %v11274_v21 = vand.u32 4294901760, %v502_v13  ;;  %v11307_v39 = vld [vmem:[#allocation8 + $0x28] sm:$0xff]  ;;  %v997_v44 = vld [vmem:[#allocation8 + $0x38] sm:$0xff]  ;;  %v1000_v49 = vld [vmem:[#allocation8 + $0x50] sm:$0xff]  ;;  %s14433_s14 = sshll.u32 %s11018_s24, 7  ;;  %s14837_s10 = sld [smem:[#allocation72_spill]] }
  0xd1   : > { %v1059_v22 = vand.u32 4294901760, %v994_v14  ;;  %9156 = vmatpush3.bf16.msra.mxu0 %v11264_v16  ;;  %v11277_v23 = vpack.c.bf16 %v514_v12, %v511_v9  ;;  %v586_v24 = vand.u32 4294901760, %v11266_v17  ;;  %v11303_v37 = vsub.f32 %v991_v11, %v1055_v15  ;;  %v996_v53 = vld [vmem:[#allocation8 + $0x30] sm:$0xff]  ;;  %v999_v54 = vld [vmem:[#allocation8 + $0x48] sm:$0xff]  ;;  %v11318_v55 = vld [vmem:[#allocation8 + $0x40] sm:$0xff]  ;;  %s6768_s25 = scalar_lea.sflag [#allocation5], %s11237_s28 }
  0xd2   : > { %v593_v25 = vand.u32 4294901760, %v11268_v18  ;;  %v600_v26 = vand.u32 4294901760, %v11270_v19  ;;  %9157 = vmatprep.subr.bf16.mxu0 %v14227_v1  ;;  %v11284_v27 = vsub.f32 %v502_v13, %v11274_v21  ;;  %v607_v28 = vand.u32 4294901760, %v11272_v20  ;;  %v11324_v60 = vld [vmem:[#allocation8 + $0x58] sm:$0xff]  ;;  %v1003_v61 = vld [vmem:[#allocation8 + $0x68] sm:$0xff]  ;;  %v1006_v62 = vld [vmem:[#allocation8 + $0x80] sm:$0xff] }
  0xd3   : > { %v11287_v29 = vpack.c.bf16 %v1059_v22, %v1055_v15  ;;  %v587_v30 = vsub.f32 %v11266_v17, %v586_v24  ;;  %14460 = vst [vmem:[#allocation24_spill] sm:$0xff] %v11303_v37  ;;  %v11310_v43 = vsub.f32 %v994_v14, %v1059_v22  ;;  %v1057_v47 = vand.u32 4294901760, %v990_v33  ;;  %s10806_s23 = scalar_lea.vmem %s14097_s29, 128  ;;  %p14838_p4 = scmp.ne.s32.totalorder %s14448_s18, 0 }
  0xd4   : > { %v594_v31 = vsub.f32 %v11268_v18, %v593_v25  ;;  %v601_v32 = vsub.f32 %v11270_v19, %v600_v26  ;;  %v575_v35 = vand.u32 4294901760, %v11284_v27  ;;  %v608_v36 = vsub.f32 %v11272_v20, %v607_v28  ;;  %p10807_p7 = scmp.ne.s32.totalorder %s14097_s29, %s10806_s23  ;;  %s10932_s16 = smov [#allocation14]  }
  0xd5   : > { %14459 = vst [vmem:[#allocation23_spill] sm:$0xff] %v11287_v29  ;;  %9191 = vmatprep.subr.bf16.mxu1 %v11287_v29  ;;  %9159 = vmatpush3.bf16.msra.mxu0 %v11277_v23  ;;  %v588_v40 = vand.u32 4294901760, %v587_v30  ;;  %14461 = vst [vmem:[#allocation25_spill] sm:$0xff] %v11310_v43  ;;  %v1061_v48 = vand.u32 4294901760, %v993_v34  ;;  %v1911_v51 = vand.u32 4294901760, %v11305_v38  ;;  %v1914_v52 = vand.u32 4294901760, %v11307_v39 }
  0xd6   : > { %v595_v41 = vand.u32 4294901760, %v594_v31  ;;  %v602_v42 = vand.u32 4294901760, %v601_v32  ;;  %v576_v45 = vsub.f32 %v11284_v27, %v575_v35  ;;  %9160 = vmatprep.subr.bf16.mxu0 %v14227_v1  ;;  %v609_v46 = vand.u32 4294901760, %v608_v36  ;;  %s6784_s11 = scalar_lea.hbm %s14837_s10, %s14433_s14  ;;  %p10808_p12 = pnand %p10807_p7, %p14838_p4 }
  0xd7   : > { %v11320_v57 = vpack.c.bf16 %v1061_v48, %v1057_v47  ;;  %v11322_v58 = vsub.f32 %v990_v33, %v1057_v47  ;;  %v1063_v59 = vand.u32 4294901760, %v997_v44  ;;  %v11326_v0 = vsub.f32 %v993_v34, %v1061_v48  ;;  %v11456_v47 = vld [vmem:[#allocation8 + $0xa8] sm:$0xff]  ;;  %v11458_v48 = vld [vmem:[#allocation8 + $0xa0] sm:$0xff]  ;;  %s10810_s26 = sshll.u32 %s10932_s16, 4  ;;  %s10811_s26 = int_to_ptr.vmem [resolvable:$false] %s10810_s26 }
  0xd8   : > { %v9161_v50 = vpack.c.bf16 %v595_v41, %v588_v40  ;;  %v577_v56 = vand.u32 4294901760, %v576_v45  ;;  %v9164_v63 = vpack.c.bf16 %v609_v46, %v602_v42  ;;  %v11331_v3 = vsub.f32 %v11305_v38, %v1911_v51  ;;  %v11454_v46 = vld [vmem:[#allocation8 + $0x90] sm:$0xff]  ;;  %p10809_p1 = pneg %p10808_p12  ;;  %s10812_s15 = scalar_lea.vmem %s10811_s26, 256 }
  0xd9   : > { %14462 = vst [vmem:[#allocation26_spill] sm:$0xff] %v11320_v57  ;;  %v11336_v4 = vsub.f32 %v11307_v39, %v1914_v52  ;;  %9193 = vmatpush1.bf16.msra.mxu1 %v11320_v57  ;;  %v1067_v5 = vand.u32 4294901760, %v1000_v49  ;;  %v11339_v6 = vsub.f32 %v997_v44, %v1063_v59  ;;  %v1065_v7 = vand.u32 4294901760, %v996_v53  ;;  %p10813_p13 = scmp.lt.s32.totalorder %s14097_s29, %s10811_s26  ;;  %p10814_p0 = scmp.lt.s32.totalorder %s10812_s15, %s10806_s23 }
  0xda   : > { %7837 = vmatmul.mubr.f32.vlgmr.msra.gmra.mrb[0].mxu0 %v577_v56  ;;  %v1069_v8 = vand.u32 4294901760, %v999_v54  ;;  %v1917_v9 = vand.u32 4294901760, %v11318_v55  ;;  %v1920_v10 = vand.u32 4294901760, %v11324_v60  ;;  %v1071_v11 = vand.u32 4294901760, %v1003_v61  ;;  %v11481_v56 = vld [vmem:[#allocation8 + $0xc8] sm:$0xff] }
  0xdb   : > { %9162 = vmatpush3.bf16.msra.mxu0 %v9161_v50  ;;  %7847 = vmatprep.mubr.msk.f32.mxu0 %vm10929_vm0, %v14193_v2  ;;  %v1075_v12 = vand.u32 4294901760, %v1006_v62  ;;  %v11346_v13 = vpack.c.bf16 %v1067_v5, %v1063_v59  ;;  %v11348_v14 = vsub.f32 %v1000_v49, %v1067_v5  ;;  %v11352_v22 = vsub.f32 %v996_v53, %v1065_v7  ;;  %v11483_v59 = vld [vmem:[#allocation8 + $0xe0] sm:$0xff]  ;;  %v11496_v5 = vld [vmem:[#allocation8 + $0xd8] sm:$0xff]  ;;  %p10815_p2 = por %p10814_p0, %p10813_p13 }
  0xdc   : > { %9163 = vmatprep.subr.bf16.mxu0 %v14227_v1  ;;  %v11350_v15 = vpack.c.bf16 %v1069_v8, %v1065_v7  ;;  %v11354_v30 = vsub.f32 %v999_v54, %v1069_v8  ;;  %v11357_v31 = vsub.f32 %v11318_v55, %v1917_v9  ;;  %v11360_v32 = vsub.f32 %v11324_v60, %v1920_v10  ;;  %v11498_v7 = vld [vmem:[#allocation8 + $0xd0] sm:$0xff] }
  0xdd   : > { %14463 = vst [vmem:[#allocation27_spill] sm:$0xff] %v11346_v13  ;;  %14464 = vst [vmem:[#allocation28_spill] sm:$0xff] %v11348_v14  ;;  %9195 = vmatprep.subr.bf16.mxu1 %v11346_v13  ;;  %v11363_v33 = vpack.c.bf16 %v1075_v12, %v1071_v11  ;;  %v11365_v34 = vsub.f32 %v1003_v61, %v1071_v11  ;;  %v11367_v36 = vsub.f32 %v1006_v62, %v1075_v12  ;;  %p10816_p3 = pnand %p10815_p2, %p10809_p1 }
  0xde   : > { %14465 = vst [vmem:[#allocation29_spill] sm:$0xff] %v11350_v15  ;;  %14466 = vst [vmem:[#allocation30_spill] sm:$0xff] %v11357_v31  ;;  %v9167_v40 = vpack.c.bf16 %v11268_v18, %v11266_v17  ;;  %9197 = vmatpush1.bf16.msra.mxu1 %v11350_v15  ;;  %v9170_v41 = vpack.c.bf16 %v11272_v20, %v11270_v19  ;;  %v9179_v42 = vpack.c.bf16 %v593_v25, %v586_v24  ;;  %v11424_v18 = vld [vmem:[#allocation8 + $0x60] sm:$0xff]  ;;  %v11426_v19 = vld [vmem:[#allocation8 + $0x78] sm:$0xff]  ;;  %v14489_v31 = vmov 0.0|0.0  }
  0xdf   : > { %14467 = vst [vmem:[#allocation31_spill] sm:$0xff] %v11360_v32  ;;  %14468 = vst [vmem:[#allocation32_spill] sm:$0xff] %v11363_v33  ;;  %9165 = vmatpush3.bf16.msra.mxu0 %v9164_v63  ;;  %9199 = vmatprep.subr.bf16.mxu1 %v11363_v33  ;;  %v9182_v44 = vpack.c.bf16 %v607_v28, %v600_v26  ;;  %v11412_v17 = vpack.c.bf16 %v1914_v52, %v1911_v51  ;;  %v11428_v20 = vld [vmem:[#allocation8 + $0x70] sm:$0xff]  ;;  %v11432_v24 = vld [vmem:[#allocation8 + $0x88] sm:$0xff]  ;;  %v14198_v49 = vand.u32 4294901760, %v11454_v46 }
  0xe0   : > { %14469 = vst [vmem:[#allocation33_spill] sm:$0xff] %v11365_v34  ;;  %14470 = vst [vmem:[#allocation34_spill] sm:$0xff] %v11367_v36  ;;  %9166 = vmatprep.subr.bf16.mxu0 %v14227_v1  ;;  %v14204_v25 = vand.u32 4294901760, %v11428_v20  ;;  %v14203_v26 = vand.u32 4294901760, %v11432_v24  ;;  %v11442_v28 = vld [vmem:[#allocation8 + $0x98] sm:$0xff]  ;;  %v14197_v50 = vand.u32 4294901760, %v11456_v47 }
  0xe1   : > { %14471 = vst [vmem:[#allocation35_spill] sm:$0xff] %v11412_v17  ;;  %v14202_v39 = vand.u32 4294901760, %v11442_v28  ;;  %v11463_v51 = vld [vmem:[#allocation8 + $0xb8] sm:$0xff]  ;;  %v14196_v52 = vand.u32 4294901760, %v11458_v48  ;;  %v14201_v61 = vand.u32 4294901760, %v11481_v56  ;;  %v14200_v62 = vand.u32 4294901760, %v11483_v59 }
  0xe2   : > { %7848 = vmatmul.mubr.f32.vlgmr.msra.gmra.mrb[0].mxu0 %v11274_v21  ;;  %v11450_v38 = vpack.c.bf16 %v14203_v26, %v14204_v25  ;;  %v14195_v54 = vand.u32 4294901760, %v11463_v51  ;;  %v11479_v55 = vpack.c.bf16 %v14197_v50, %v14198_v49  ;;  %v11494_v63 = vld [vmem:[#allocation8 + $0xc0] sm:$0xff]  ;;  %v1935_v11 = vand.u32 4294901760, %v11498_v7  ;;  %v1020_v50 = vld [vmem:[#allocation8 + $0xf0] sm:$0xff]  ;;  %v1023_v49 = vld [vmem:[#allocation8 + $0x108] sm:$0xff] }
  0xe3   : > { %9168 = vmatpush3.bf16.msra.mxu0 %v9167_v40  ;;  %7858 = vmatprep.mubr.msk.f32.mxu0 %vm10929_vm0, %v14193_v2  ;;  %v1089_v8 = vand.u32 4294901760, %v11494_v63  ;;  %v11509_v12 = vpack.c.bf16 %v14200_v62, %v14201_v61  ;;  %v1097_v62 = vand.u32 4294901760, %v1020_v50  ;;  %v1101_v61 = vand.u32 4294901760, %v1023_v49  ;;  %v1028_v33 = vld [vmem:[#allocation8 + $0x130] sm:$0xff] }
  0xe4   : > { %9169 = vmatprep.subr.bf16.mxu0 %v14227_v1  ;;  %14474 = vst [vmem:[#allocation38_spill] sm:$0xff] %v11450_v38  ;;  %14476 = vst [vmem:[#allocation40_spill] sm:$0xff] %v11479_v55  ;;  %v11490_v60 = vpack.c.bf16 %v14195_v54, %v14196_v52  ;;  %v1947_v13 = vand.u32 4294901760, %v1028_v33  ;;  %v14486_v29 = vand.u32 4294901760, %v11426_v19 }
  0xe5   : > { %14478 = vst [vmem:[#allocation42_spill] sm:$0xff] %v11509_v12 }
  0xe6   : > { %14477 = vst [vmem:[#allocation41_spill] sm:$0xff] %v11490_v60  ;;  %v11539_v36 = vsub.f32 %v11426_v19, %v14486_v29 }
  0xe7   : > { %9171 = vmatpush3.bf16.msra.mxu0 %v9170_v41 }
  0xe8   : > { %9172 = vmatprep.subr.bf16.mxu0 %v14227_v1 }
  0xea   : > { %7859 = vmatmul.mubr.f32.vlgmr.msra.gmra.mrb[0].mxu0 %v11284_v27 }
  0xeb   : > { %9174 = vmatpush3.bf16.msra.mxu0 %v11264_v16  ;;  %7869 = vmatprep.mubr.msk.f32.mxu0 %vm10929_vm0, %v14193_v2 }
  0xec   : > { %9175 = vmatprep.subr.bf16.mxu0 %v14227_v1 }
  0xef   : > { %9177 = vmatpush3.bf16.msra.mxu0 %v11277_v23 }
  0xf0   : > { %9178 = vmatprep.subr.bf16.mxu0 %v14227_v1 }
  0xf2   : > { %7870 = vmatmul.mubr.f32.vlgmr.msra.gmra.mrb[0].mxu0 %v575_v35  ;;  %v11444_v35 = vld [vmem:[#allocation8 + $0xb0] sm:$0xff] }
  0xf3   : > { %9180 = vmatpush3.bf16.msra.mxu0 %v9179_v42  ;;  %7880 = vmatprep.mubr.msk.f32.mxu0 %vm10929_vm0, %v14193_v2  ;;  %v14199_v45 = vand.u32 4294901760, %v11444_v35  ;;  %v1021_v42 = vld [vmem:[#allocation8 + $0xf8] sm:$0xff]  ;;  %v14491_v29 = vand.u32 4294901760, %v11444_v35 }
  0xf4   : > { %9181 = vmatprep.subr.bf16.mxu0 %v14227_v1  ;;  %v1095_v54 = vand.u32 4294901760, %v1021_v42 }
  0xf5   : > { %v11471_v53 = vpack.c.bf16 %v14199_v45, %v14202_v39  ;;  %v1022_v45 = vld [vmem:[#allocation8 + $0x100] sm:$0xff]  ;;  %v1025_v39 = vld [vmem:[#allocation8 + $0x118] sm:$0xff] }
  0xf6   : > { %v1941_v26 = vand.u32 4294901760, %v1022_v45 }
  0xf7   : > { %9183 = vmatpush3.bf16.msra.mxu0 %v9182_v44  ;;  %14475 = vst [vmem:[#allocation39_spill] sm:$0xff] %v11471_v53  ;;  %v1024_v44 = vld [vmem:[#allocation8 + $0x110] sm:$0xff] }
  0xf8   : > { %9184 = vmatprep.subr.bf16.mxu0 %v14227_v1  ;;  %v1099_v52 = vand.u32 4294901760, %v1024_v44 }
  0xfa   : > { %7881 = vmatmul.mubr.f32.vlgmr.msra.gmra.mrb[0].mxu0 %v11274_v21  ;;  %v11519_v25 = vpack.c.bf16 %v1099_v52, %v1095_v54 }
  0xfb   : > { %9186 = vmatpush3.bf16.msra.mxu0 %v11264_v16  ;;  %7891 = vmatprep.mubr.msk.f32.mxu0 %vm10929_vm0, %v14193_v2  ;;  %v11417_v16 = vpack.c.bf16 %v1920_v10, %v1917_v9  ;;  %v1093_v9 = vand.u32 4294901760, %v11496_v5  ;;  %v1019_v10 = vld [vmem:[#allocation8 + $0xe8] sm:$0xff] }
  0xfc   : > { %9187 = vmatprep.subr.bf16.mxu0 %v14227_v1  ;;  %v1938_v40 = vand.u32 4294901760, %v1019_v10  ;;  %14481 = vst [vmem:[#allocation45_spill] sm:$0xff] %v11519_v25 }
  0xfd   : > { %14472 = vst [vmem:[#allocation36_spill] sm:$0xff] %v11417_v16  ;;  %v11512_v41 = vpack.c.bf16 %v1093_v9, %v1089_v8 }
  0xff   : > { %9189 = vmatpush3.bf16.msra.mxu0 %v11277_v23  ;;  %v14205_v23 = vand.u32 4294901760, %v11426_v19  ;;  %14479 = vst [vmem:[#allocation43_spill] sm:$0xff] %v11512_v41  ;;  %v11560_v19 = vsub.f32 %v11444_v35, %v14491_v29  ;;  %v14495_v35 = vand.u32 4294901760, %v11463_v51 }
 0x100   : > { %9382 = vmatprep.subr.bf16.mxu0 %v14227_v1 }
 0x101   : > { %v11581_v29 = vsub.f32 %v11463_v51, %v14495_v35  ;;  %v11602_v51 = vsub.f32 %v1019_v10, %v1938_v40  ;;  %v11604_v35 = vsub.f32 %v1021_v42, %v1095_v54  ;;  %v1035_v10 = vld [vmem:[#allocation8 + $0x168] sm:$0xff]  ;;  %v1034_v54 = vld [vmem:[#allocation8 + $0x160] sm:$0xff] }
 0x102   : > { %7892 = vmatmul.mubr.f32.vlgmr.msra.gmra.mrb[0].mxu0 %v11274_v21  ;;  %v14206_v21 = vand.u32 4294901760, %v11424_v18 }
 0x103   : > { %9384 = vmatpush3.bf16.msra.mxu0 %v11412_v17  ;;  %7926 = vmatprep.mubr.msk.f32.mxu0 %vm10929_vm0, %v14193_v2  ;;  %v11515_v2 = vpack.c.bf16 %v1938_v40, %v1935_v11 }
 0x104   : > { %9385 = vmatprep.subr.bf16.mxu0 %v14227_v1  ;;  %v11440_v27 = vpack.c.bf16 %v14205_v23, %v14206_v21  ;;  %v1944_v23 = vand.u32 4294901760, %v1025_v39  ;;  %v11522_v21 = vpack.c.bf16 %v1101_v61, %v1097_v62 }
 0x105   : > { %14480 = vst [vmem:[#allocation44_spill] sm:$0xff] %v11515_v2 }
 0x106   : > { %14473 = vst [vmem:[#allocation37_spill] sm:$0xff] %v11440_v27  ;;  %9201 = vmatpush1.bf16.msra.mxu1 %v11440_v27  ;;  %14482 = vst [vmem:[#allocation46_spill] sm:$0xff] %v11522_v21  ;;  %v1029_v27 = vld [vmem:[#allocation8 + $0x138] sm:$0xff] }
 0x107   : > { %9387 = vmatpush3.bf16.msra.mxu0 %v11417_v16  ;;  %9203 = vmatprep.subr.bf16.mxu1 %v11471_v53  ;;  %v1031_v16 = vld [vmem:[#allocation8 + $0x148] sm:$0xff]  ;;  %v1109_v15 = vand.u32 4294901760, %v1029_v27 }
 0x108   : > { %9388 = vmatprep.subr.bf16.mxu0 %v14227_v1  ;;  %v1950_v17 = vand.u32 4294901760, %v1031_v16 }
 0x10a   : > { %9205 = vmatpush1.bf16.msra.mxu1 %v11479_v55  ;;  %v11525_v55 = vpack.c.bf16 %v1944_v23, %v1941_v26 }
 0x10b   : > { %9390 = vmatpush3.bf16.msra.mxu0 %v11450_v38  ;;  %9207 = vmatprep.subr.bf16.mxu1 %v11509_v12  ;;  %v1027_v12 = vld [vmem:[#allocation8 + $0x128] sm:$0xff]  ;;  %v1026_v38 = vld [vmem:[#allocation8 + $0x120] sm:$0xff] }
 0x10c   : > { %9391 = vmatprep.subr.bf16.mxu0 %v14227_v1  ;;  %14483 = vst [vmem:[#allocation47_spill] sm:$0xff] %v11525_v55 }
 0x10e   : > { %9209 = vmatpush1.bf16.msra.mxu1 %v11512_v41  ;;  %v1103_v41 = vand.u32 4294901760, %v1027_v12 }
 0x10f   : > { %9393 = vmatpush3.bf16.msra.mxu0 %v11490_v60  ;;  %v1030_v60 = vld [vmem:[#allocation8 + $0x140] sm:$0xff]  ;;  %9211 = vmatprep.subr.bf16.mxu1 %v11519_v25  ;;  %v14485_v25 = vand.u32 4294901760, %v11424_v18 }
 0x110   : > { %9394 = vmatprep.subr.bf16.mxu0 %v14227_v1  ;;  %v1107_v53 = vand.u32 4294901760, %v1030_v60 }
 0x111   : > { %v11534_v57 = vsub.f32 %v11424_v18, %v14485_v25  ;;  %v14490_v18 = vand.u32 4294901760, %v11442_v28 }
 0x112   : > { %9213 = vmatpush1.bf16.msra.mxu1 %v11522_v21  ;;  %v14487_v21 = vand.u32 4294901760, %v11428_v20 }
 0x113   : > { %9396 = vmatpush3.bf16.msra.mxu0 %v11515_v2  ;;  %v1105_v2 = vand.u32 4294901760, %v1026_v38  ;;  %v11555_v25 = vsub.f32 %v11442_v28, %v14490_v18  ;;  %v14494_v28 = vand.u32 4294901760, %v11458_v48 }
 0x114   : > { %9397 = vmatprep.subr.bf16.mxu0 %v14227_v1  ;;  %v11529_v1 = vpack.c.bf16 %v1107_v53, %v1103_v41  ;;  %v11544_v34 = vsub.f32 %v11428_v20, %v14487_v21  ;;  %v14492_v20 = vand.u32 4294901760, %v11454_v46 }
 0x115   : > { %v11576_v18 = vsub.f32 %v11458_v48, %v14494_v28  ;;  %v11597_v48 = vsub.f32 %v11496_v5, %v1093_v9  ;;  %v11600_v28 = vsub.f32 %v11498_v7, %v1935_v11  ;;  %v11614_v5 = vsub.f32 %v1025_v39, %v1944_v23  ;;  %v1037_v11 = vld [vmem:[#allocation8 + $0x178] sm:$0xff] }
 0x116   : > { %14484 = vst [vmem:[#allocation48_spill] sm:$0xff] %v11529_v1  ;;  %v11565_v21 = vsub.f32 %v11454_v46, %v14492_v20  ;;  %9215 = vmatprep.subr.bf16.mxu1 %v11529_v1  ;;  %v14496_v46 = vand.u32 4294901760, %v11481_v56  ;;  %v11594_v1 = vsub.f32 %v11494_v63, %v1089_v8  ;;  %v1032_v63 = vld [vmem:[#allocation8 + $0x150] sm:$0xff]  ;;  %v11612_v8 = vsub.f32 %v1022_v45, %v1941_v26 }
 0x117   : > { %9399 = vmatpush3.bf16.msra.mxu0 %v11525_v55  ;;  %v14488_v55 = vand.u32 4294901760, %v11432_v24  ;;  %v11616_v9 = vsub.f32 %v1027_v12, %v1103_v41  ;;  %v11618_v7 = vsub.f32 %v1030_v60, %v1107_v53  ;;  %v11630_v26 = vsub.f32 %v1031_v16, %v1950_v17 }
 0x118   : > { %9400 = vmatprep.subr.bf16.mxu0 %v14489_v31  ;;  %v11586_v20 = vsub.f32 %v11481_v56, %v14496_v46  ;;  %v11606_v56 = vsub.f32 %v1024_v44, %v1099_v52  ;;  %v11608_v46 = vsub.f32 %v1020_v50, %v1097_v62  ;;  %v11620_v52 = vpack.c.bf16 %v1109_v15, %v1105_v2 }
 0x119   : > { %v11549_v32 = vsub.f32 %v11432_v24, %v14488_v55  ;;  %v14493_v24 = vand.u32 4294901760, %v11456_v47  ;;  %v11622_v50 = vsub.f32 %v1026_v38, %v1105_v2  ;;  %v11628_v62 = vsub.f32 %v1028_v33, %v1947_v13 }
 0x11a   : > { %14497 = vst [vmem:[#allocation49_spill] sm:$0xff] %v11586_v20  ;;  %v11610_v20 = vsub.f32 %v1023_v49, %v1101_v61  ;;  %14499 = vst [vmem:[#allocation50_spill] sm:$0xff] %v11620_v52  ;;  %v11624_v49 = vsub.f32 %v1029_v27, %v1109_v15  ;;  %v11626_v61 = vpack.c.bf16 %v1950_v17, %v1947_v13  ;;  %9217 = vmatpush1.bf16.msra.mxu1 %v11620_v52 }
 0x11b   : > { %v11570_v55 = vsub.f32 %v11456_v47, %v14493_v24  ;;  %v14498_v47 = vand.u32 4294901760, %v11483_v59  ;;  %v1113_v45 = vand.u32 4294901760, %v1032_v63  ;;  %v1117_v53 = vand.u32 4294901760, %v1035_v10 }
 0x11c   : > { %14500 = vst [vmem:[#allocation51_spill] sm:$0xff] %v11626_v61  ;;  %9402 = vmatpush3.bf16.msra.mxu0 %v11626_v61  ;;  %v1953_v60 = vand.u32 4294901760, %v1034_v54  ;;  %v1956_v12 = vand.u32 4294901760, %v1037_v11  ;;  %v14254_v13 = vand.u32 4294901760, %v11303_v37  ;;  %v14252_v44 = vand.u32 4294901760, %v11310_v43 }
 0x11d   : > { %v11591_v24 = vsub.f32 %v11483_v59, %v14498_v47  ;;  %v1033_v59 = vld [vmem:[#allocation8 + $0x158] sm:$0xff]  ;;  %v1036_v47 = vld [vmem:[#allocation8 + $0x170] sm:$0xff]  ;;  %9403 = vmatprep.subr.bf16.mxu0 %v14489_v31  ;;  %v11642_v33 = vpack.c.bf16 %v1117_v53, %v1113_v45  ;;  %v11644_v17 = vsub.f32 %v1032_v63, %v1113_v45  ;;  %v11646_v16 = vsub.f32 %v1035_v10, %v1117_v53 }
 0x11e   : > { %v1111_v23 = vand.u32 4294901760, %v1033_v59  ;;  %v1115_v39 = vand.u32 4294901760, %v1036_v47  ;;  %v11648_v38 = vpack.c.bf16 %v1956_v12, %v1953_v60  ;;  %v11651_v40 = vsub.f32 %v1034_v54, %v1953_v60 }
 0x11f   : > { %14502 = vst [vmem:[#allocation53_spill] sm:$0xff] %v11642_v33  ;;  %v11653_v41 = vsub.f32 %v1037_v11, %v1956_v12  ;;  %v1166_v42 = vsub.f32 %v11303_v37, %v14254_v13  ;;  %v14262_v63 = vand.u32 4294901760, %v11331_v3  ;;  %v14267_v10 = vand.u32 4294901760, %v11336_v4 }
 0x120   : > { %v11634_v2 = vpack.c.bf16 %v1115_v39, %v1111_v23  ;;  %v11636_v15 = vsub.f32 %v1033_v59, %v1111_v23  ;;  %v11638_v27 = vsub.f32 %v1036_v47, %v1115_v39  ;;  %14503 = vst [vmem:[#allocation54_spill] sm:$0xff] %v11648_v38  ;;  %14504 = vst [vmem:[#allocation55_spill] sm:$0xff] %v11651_v40  ;;  %9405 = vmatpush3.bf16.msra.mxu0 %v11648_v38  ;;  %v14535_v37 = vmov 0.0  }
 0x121   : > { %v14253_v59 = vand.u32 4294901760, %v11322_v58  ;;  %v14255_v47 = vand.u32 4294901760, %v11326_v0  ;;  %v1167_v54 = vand.u32 4294901760, %v1166_v42  ;;  %v1178_v11 = vsub.f32 %v11310_v43, %v14252_v44  ;;  %9406 = vmatprep.subr.bf16.mxu0 %v14489_v31 }
 0x122   : > { %14501 = vst [vmem:[#allocation52_spill] sm:$0xff] %v11634_v2  ;;  %9219 = vmatprep.subr.bf16.mxu1 %v11634_v2  ;;  %v14268_v23 = vand.u32 4294901760, %v11339_v6  ;;  %v14270_v39 = vand.u32 4294901760, %v11348_v14  ;;  %v2005_v60 = vsub.f32 %v11331_v3, %v14262_v63  ;;  %v2012_v12 = vsub.f32 %v11336_v4, %v14267_v10 }
 0x123   : > { %9221 = vmatpush1.bf16.msra.mxu1 %v11642_v33  ;;  %v1172_v45 = vsub.f32 %v11322_v58, %v14253_v59  ;;  %v1184_v53 = vsub.f32 %v11326_v0, %v14255_v47  ;;  %v1179_v42 = vand.u32 4294901760, %v1178_v11  ;;  %v14275_v13 = vand.u32 4294901760, %v11352_v22 }
 0x124   : > { %v1190_v44 = vsub.f32 %v11339_v6, %v14268_v23  ;;  %v1202_v59 = vsub.f32 %v11348_v14, %v14270_v39  ;;  %v2006_v33 = vand.u32 4294901760, %v2005_v60  ;;  %v2013_v2 = vand.u32 4294901760, %v2012_v12  ;;  %v14507_v39 = vld [vmem:[#allocation30_spill] sm:$0xff]  ;;  %v14509_v60 = vld [vmem:[#allocation31_spill] sm:$0xff] }
 0x125   : > { %v1173_v47 = vand.u32 4294901760, %v1172_v45  ;;  %v1185_v38 = vand.u32 4294901760, %v1184_v53  ;;  %v9222_v63 = vpack.c.bf16 %v1179_v42, %v1167_v54  ;;  %v1196_v11 = vsub.f32 %v11352_v22, %v14275_v13 }
 0x126   : > { %v1191_v61 = vand.u32 4294901760, %v1190_v44  ;;  %v1203_v52 = vand.u32 4294901760, %v1202_v59  ;;  %v11695_v23 = vpack.c.bf16 %v2013_v2, %v2006_v33  ;;  %v14273_v31 = vand.u32 4294901760, %v11354_v30  ;;  %v14510_v44 = vld [vmem:[#allocation33_spill] sm:$0xff]  ;;  %v14511_v33 = vld [vmem:[#allocation34_spill] sm:$0xff] }
 0x127   : > { %v11693_v10 = vpack.c.bf16 %v1185_v38, %v1173_v47  ;;  %v14274_v14 = vand.u32 4294901760, %v14507_v39  ;;  %9223 = vmatprep.subr.bf16.mxu1 %v9222_v63  ;;  %v1197_v53 = vand.u32 4294901760, %v1196_v11  ;;  %v14276_v54 = vand.u32 4294901760, %v14509_v60 }
 0x128   : > { %14506 = vst [vmem:[#allocation57_spill] sm:$0xff] %v11695_v23  ;;  %v11699_v45 = vpack.c.bf16 %v1203_v52, %v1191_v61  ;;  %v14277_v59 = vand.u32 4294901760, %v14510_v44  ;;  %v1208_v12 = vsub.f32 %v11354_v30, %v14273_v31  ;;  %v14278_v38 = vand.u32 4294901760, %v14511_v33 }
 0x129   : > { %14505 = vst [vmem:[#allocation56_spill] sm:$0xff] %v11693_v10  ;;  %v2019_v2 = vsub.f32 %v14507_v39, %v14274_v14  ;;  %v14281_v47 = vand.u32 4294901760, %v11534_v57  ;;  %v2026_v52 = vsub.f32 %v14509_v60, %v14276_v54  ;;  %v14282_v63 = vand.u32 4294901760, %v11539_v36 }
 0x12a   : > { %14508 = vst [vmem:[#allocation30_spill] sm:$0xff] %v11699_v45  ;;  %v1214_v61 = vsub.f32 %v14510_v44, %v14277_v59  ;;  %v14283_v42 = vand.u32 4294901760, %v11544_v34  ;;  %v1209_v11 = vand.u32 4294901760, %v1208_v12  ;;  %v1226_v14 = vsub.f32 %v14511_v33, %v14278_v38 }
 0x12b   : > { %v2020_v31 = vand.u32 4294901760, %v2019_v2  ;;  %v1220_v13 = vsub.f32 %v11534_v57, %v14281_v47  ;;  %v2027_v45 = vand.u32 4294901760, %v2026_v52  ;;  %v1232_v59 = vsub.f32 %v11539_v36, %v14282_v63 }
 0x12c   : > { %v1215_v54 = vand.u32 4294901760, %v1214_v61  ;;  %v2033_v23 = vsub.f32 %v11544_v34, %v14283_v42  ;;  %v11731_v12 = vpack.c.bf16 %v1209_v11, %v1197_v53  ;;  %v1227_v2 = vand.u32 4294901760, %v1226_v14 }
 0x12d   : > { %v1221_v10 = vand.u32 4294901760, %v1220_v13  ;;  %v14285_v38 = vand.u32 4294901760, %v11549_v32  ;;  %v11734_v33 = vpack.c.bf16 %v2027_v45, %v2020_v31  ;;  %v1233_v44 = vand.u32 4294901760, %v1232_v59 }
 0x12e   : > { %14512 = vst [vmem:[#allocation31_spill] sm:$0xff] %v11731_v12  ;;  %v2034_v47 = vand.u32 4294901760, %v2033_v23  ;;  %v14284_v52 = vand.u32 4294901760, %v11555_v25  ;;  %v11737_v61 = vpack.c.bf16 %v1227_v2, %v1215_v54  ;;  %v14286_v42 = vand.u32 4294901760, %v11560_v19 }
 0x12f   : > { %14513 = vst [vmem:[#allocation58_spill] sm:$0xff] %v11734_v33  ;;  %v2040_v63 = vsub.f32 %v11549_v32, %v14285_v38  ;;  %v14287_v53 = vand.u32 4294901760, %v11565_v21  ;;  %v11744_v14 = vpack.c.bf16 %v1233_v44, %v1221_v10  ;;  %v14288_v13 = vand.u32 4294901760, %v11570_v55 }
 0x130   : > { %14514 = vst [vmem:[#allocation59_spill] sm:$0xff] %v11737_v61  ;;  %v1238_v31 = vsub.f32 %v11555_v25, %v14284_v52  ;;  %v14289_v23 = vand.u32 4294901760, %v11576_v18  ;;  %v1250_v54 = vsub.f32 %v11560_v19, %v14286_v42  ;;  %v14290_v10 = vand.u32 4294901760, %v11581_v29 }
 0x131   : > { %14515 = vst [vmem:[#allocation60_spill] sm:$0xff] %v11744_v14  ;;  %v2041_v45 = vand.u32 4294901760, %v2040_v63  ;;  %v1244_v59 = vsub.f32 %v11565_v21, %v14287_v53  ;;  %v1256_v11 = vsub.f32 %v11570_v55, %v14288_v13  ;;  %v14516_v63 = vld [vmem:[#allocation49_spill] sm:$0xff]  ;;  %v14291_v33 = vand.u32 4294901760, %v11591_v24 }
 0x132   : > { %v1239_v44 = vand.u32 4294901760, %v1238_v31  ;;  %v2047_v2 = vsub.f32 %v11576_v18, %v14289_v23  ;;  %v14293_v52 = vand.u32 4294901760, %v14516_v63  ;;  %v1251_v42 = vand.u32 4294901760, %v1250_v54 }
 0x133   : > { %v11765_v38 = vpack.c.bf16 %v2041_v45, %v2034_v47  ;;  %v1245_v14 = vand.u32 4294901760, %v1244_v59  ;;  %v2054_v53 = vsub.f32 %v11581_v29, %v14290_v10  ;;  %v1257_v61 = vand.u32 4294901760, %v1256_v11 }
 0x134   : > { %v2048_v31 = vand.u32 4294901760, %v2047_v2  ;;  %v1262_v13 = vsub.f32 %v14516_v63, %v14293_v52  ;;  %v11774_v12 = vpack.c.bf16 %v1251_v42, %v1239_v44  ;;  %v14292_v47 = vand.u32 4294901760, %v11594_v1 }
 0x135   : > { %v2055_v23 = vand.u32 4294901760, %v2054_v53  ;;  %v14294_v45 = vand.u32 4294901760, %v11597_v48  ;;  %v11778_v54 = vpack.c.bf16 %v1257_v61, %v1245_v14  ;;  %v1274_v11 = vsub.f32 %v11591_v24, %v14291_v33 }
 0x136   : > { %14517 = vst [vmem:[#allocation49_spill] sm:$0xff] %v11774_v12  ;;  %v1263_v59 = vand.u32 4294901760, %v1262_v13  ;;  %v14295_v2 = vand.u32 4294901760, %v11600_v28  ;;  %v1268_v42 = vsub.f32 %v11594_v1, %v14292_v47  ;;  %v14296_v61 = vand.u32 4294901760, %v11602_v51 }
 0x137   : > { %14518 = vst [vmem:[#allocation61_spill] sm:$0xff] %v11778_v54  ;;  %v11784_v10 = vpack.c.bf16 %v2055_v23, %v2048_v31  ;;  %v1280_v53 = vsub.f32 %v11597_v48, %v14294_v45  ;;  %v1275_v14 = vand.u32 4294901760, %v1274_v11  ;;  %v14297_v44 = vand.u32 4294901760, %v11604_v35 }
 0x138   : > { %v2061_v13 = vsub.f32 %v11600_v28, %v14295_v2  ;;  %v14301_v23 = vand.u32 4294901760, %v11606_v56  ;;  %v1269_v31 = vand.u32 4294901760, %v1268_v42  ;;  %v2068_v47 = vsub.f32 %v11602_v51, %v14296_v61 }
 0x139   : > { %14519 = vst [vmem:[#allocation62_spill] sm:$0xff] %v11784_v10  ;;  %v1281_v33 = vand.u32 4294901760, %v1280_v53  ;;  %v14299_v52 = vand.u32 4294901760, %v11608_v46  ;;  %v11802_v45 = vpack.c.bf16 %v1275_v14, %v1263_v59  ;;  %v1286_v11 = vsub.f32 %v11604_v35, %v14297_v44 }
 0x13a   : > { %v2062_v10 = vand.u32 4294901760, %v2061_v13  ;;  %v1298_v2 = vsub.f32 %v11606_v56, %v14301_v23  ;;  %v2069_v42 = vand.u32 4294901760, %v2068_v47  ;;  %v14298_v61 = vand.u32 4294901760, %v11610_v20 }
 0x13b   : > { %14520 = vst [vmem:[#allocation63_spill] sm:$0xff] %v11802_v45  ;;  %v11810_v54 = vpack.c.bf16 %v1281_v33, %v1269_v31  ;;  %v1292_v53 = vsub.f32 %v11608_v46, %v14299_v52  ;;  %v1287_v59 = vand.u32 4294901760, %v1286_v11  ;;  %v14300_v13 = vand.u32 4294901760, %v11612_v8 }
 0x13c   : > { %v1299_v14 = vand.u32 4294901760, %v1298_v2  ;;  %v14302_v45 = vand.u32 4294901760, %v11614_v5  ;;  %v11818_v44 = vpack.c.bf16 %v2069_v42, %v2062_v10  ;;  %v1304_v33 = vsub.f32 %v11610_v20, %v14298_v61 }
 0x13d   : > { %14521 = vst [vmem:[#allocation64_spill] sm:$0xff] %v11810_v54  ;;  %v1293_v12 = vand.u32 4294901760, %v1292_v53  ;;  %v14303_v47 = vand.u32 4294901760, %v11616_v9  ;;  %v2075_v11 = vsub.f32 %v11612_v8, %v14300_v13  ;;  %v14304_v10 = vand.u32 4294901760, %v11618_v7 }
 0x13e   : > { %14522 = vst [vmem:[#allocation65_spill] sm:$0xff] %v11818_v44  ;;  %v11824_v31 = vpack.c.bf16 %v1299_v14, %v1287_v59  ;;  %v2082_v2 = vsub.f32 %v11614_v5, %v14302_v45  ;;  %v1305_v42 = vand.u32 4294901760, %v1304_v33  ;;  %v14305_v61 = vand.u32 4294901760, %v11622_v50 }
 0x13f   : > { %v1310_v53 = vsub.f32 %v11616_v9, %v14303_v47  ;;  %v14310_v59 = vand.u32 4294901760, %v11624_v49  ;;  %v2076_v14 = vand.u32 4294901760, %v2075_v11  ;;  %v1322_v13 = vsub.f32 %v11618_v7, %v14304_v10 }
 0x140   : > { %14523 = vst [vmem:[#allocation66_spill] sm:$0xff] %v11824_v31  ;;  %v2083_v52 = vand.u32 4294901760, %v2082_v2  ;;  %v14307_v23 = vand.u32 4294901760, %v11628_v62  ;;  %v11842_v45 = vpack.c.bf16 %v1305_v42, %v1293_v12  ;;  %v1316_v33 = vsub.f32 %v11622_v50, %v14305_v61 }
 0x141   : > { %v1311_v31 = vand.u32 4294901760, %v1310_v53  ;;  %v1328_v47 = vsub.f32 %v11624_v49, %v14310_v59  ;;  %v1323_v11 = vand.u32 4294901760, %v1322_v13  ;;  %v14306_v10 = vand.u32 4294901760, %v11630_v26 }
 0x142   : > { %14524 = vst [vmem:[#allocation67_spill] sm:$0xff] %v11842_v45  ;;  %v11850_v44 = vpack.c.bf16 %v2083_v52, %v2076_v14  ;;  %v2089_v2 = vsub.f32 %v11628_v62, %v14307_v23  ;;  %v1317_v12 = vand.u32 4294901760, %v1316_v33  ;;  %v14308_v53 = vand.u32 4294901760, %v11636_v15 }
 0x143   : > { %v1329_v42 = vand.u32 4294901760, %v1328_v47  ;;  %v14309_v45 = vand.u32 4294901760, %v11638_v27  ;;  %v11858_v61 = vpack.c.bf16 %v1323_v11, %v1311_v31  ;;  %v2096_v52 = vsub.f32 %v11630_v26, %v14306_v10 }
 0x144   : > { %v2090_v54 = vand.u32 4294901760, %v2089_v2  ;;  %v14311_v13 = vand.u32 4294901760, %v11644_v17  ;;  %v1334_v33 = vsub.f32 %v11636_v15, %v14308_v53  ;;  %v14312_v31 = vand.u32 4294901760, %v11646_v16 }
 0x145   : > { %v11864_v14 = vpack.c.bf16 %v1329_v42, %v1317_v12  ;;  %v1346_v47 = vsub.f32 %v11638_v27, %v14309_v45  ;;  %v2097_v11 = vand.u32 4294901760, %v2096_v52  ;;  %v14315_v10 = vand.u32 4294901760, %v11651_v40 }
 0x146   : > { %v1340_v2 = vsub.f32 %v11644_v17, %v14311_v13  ;;  %v14318_v12 = vand.u32 4294901760, %v11653_v41  ;;  %v1335_v42 = vand.u32 4294901760, %v1334_v33  ;;  %v1352_v53 = vsub.f32 %v11646_v16, %v14312_v31 }
 0x147   : > { %14525 = vst [vmem:[#allocation68_spill] sm:$0xff] %v11864_v14  ;;  %v1347_v23 = vand.u32 4294901760, %v1346_v47  ;;  %v11883_v59 = vpack.c.bf16 %v2097_v11, %v2090_v54  ;;  %v2103_v13 = vsub.f32 %v11651_v40, %v14315_v10  ;;  %v14537_v40 = vld [vmem:[#allocation58_spill] sm:$0xff] }
 0x148   : > { %v1341_v52 = vand.u32 4294901760, %v1340_v2  ;;  %v2110_v14 = vsub.f32 %v11653_v41, %v14318_v12  ;;  %v1353_v47 = vand.u32 4294901760, %v1352_v53  ;;  %v14526_v2 = vld [vmem:[#allocation28_spill] sm:$0xff]  ;;  %v14527_v53 = vld [vmem:[#allocation33_spill] sm:$0xff] }
 0x149   : > { %v11891_v33 = vpack.c.bf16 %v1347_v23, %v1335_v42  ;;  %v2104_v54 = vand.u32 4294901760, %v2103_v13  ;;  %v14528_v42 = vld [vmem:[#allocation34_spill] sm:$0xff] }
 0x14a   : > { %v2111_v11 = vand.u32 4294901760, %v2110_v14  ;;  %v11901_v43 = vpack.c.bf16 %v1353_v47, %v1341_v52  ;;  %v6968_v52 = vld [vmem:[%s14174_s2] ss:$0 sm:$0xff] }
 0x14c   : > { %v9428_v45 = vpack.c.bf16 %v2111_v11, %v2104_v54 }
 0x1d5   : > { %v985_v47 = vpop.f32.mrb[0].mxu0 }
 0x1d6   : > { %v10438_v13 = vadd.f32 %v6968_v52, %v985_v47  ;;  %v7893_v31 = vpop.f32.mrb[1].mxu0  ;;  %v14533_v52 = vld [vmem:[#allocation30_spill] sm:$0xff]  ;;  %v14534_v47 = vmov 0.0|0.0  }
 0x1d7   : > { %v14531_v31 = vld [vmem:[#allocation56_spill] sm:$0xff] }
 0x1d8   : > { %10634 = vtanh.f32 %v10438_v13  ;;  %v14532_v13 = vld [vmem:[#allocation57_spill] sm:$0xff] }
 0x1e2   : > { %v11944_v23 = vpop.eup %10634 }
 0x1e3   : > { %14529 = vst [vmem:[#allocation28_spill] sm:$0xff] %v11944_v23  ;;  %v11947_v12 = vand.u32 4294901760, %v11944_v23 }
 0x1e5   : > { %v11951_v54 = vsub.f32 %v11944_v23, %v11947_v12  ;;  %v14536_v23 = vld [vmem:[#allocation31_spill] sm:$0xff] }
 0x1e7   : > { %v11954_v11 = vand.u32 4294901760, %v11951_v54 }
 0x1e9   : > { %14530 = vst [vmem:[#allocation33_spill] sm:$0xff] %v11954_v11  ;;  %v1155_v14 = vsub.f32 %v11951_v54, %v11954_v11  ;;  %v14543_v11 = vld [vmem:[#allocation63_spill] sm:$0xff] }
 0x1eb   : > { %v1156_v10 = vand.u32 4294901760, %v1155_v14  ;;  %v14538_v14 = vld [vmem:[#allocation59_spill] sm:$0xff] }
 0x1ed   : > { %1157 = vmatmul.mubr.f32.vlgmr.msra.gmra.mrb[0].mxu1 %v1156_v10  ;;  %7927 = vmatmul.mubr.f32.vlgmr.msra.gmra.mrb[2].mxu0 %v1156_v10  ;;  %v14539_v10 = vld [vmem:[#allocation60_spill] sm:$0xff] }
 0x1ee   : > { %9225 = vmatpush1.bf16.msra.mxu1 %v14531_v31  ;;  %9408 = vmatpush3.bf16.msra.mxu0 %v14532_v13  ;;  %v14540_v31 = vld [vmem:[#allocation49_spill] sm:$0xff] }
 0x1ef   : > { %9227 = vmatprep.subr.bf16.mxu1 %v14533_v52  ;;  %9409 = vmatprep.subr.bf16.mxu0 %v14534_v47  ;;  %v14541_v13 = vld [vmem:[#allocation61_spill] sm:$0xff]  ;;  %v14542_v52 = vld [vmem:[#allocation62_spill] sm:$0xff] }
 0x1f0   : > { %1387 = vmatprep.mubr.f32.mxu1 %v14535_v37  ;;  %7961 = vmatprep.mubr.msk.f32.mxu0 %vm10929_vm0, %v14535_v37 }
 0x1f2   : > { %9229 = vmatpush1.bf16.msra.mxu1 %v14536_v23  ;;  %9411 = vmatpush3.bf16.msra.mxu0 %v14537_v40  ;;  %v14544_v40 = vld [vmem:[#allocation64_spill] sm:$0xff]  ;;  %v14545_v23 = vld [vmem:[#allocation65_spill] sm:$0xff] }
 0x1f3   : > { %9231 = vmatprep.subr.bf16.mxu1 %v14538_v14  ;;  %9412 = vmatprep.subr.bf16.mxu0 %v14534_v47  ;;  %v14546_v14 = vld [vmem:[#allocation66_spill] sm:$0xff] }
 0x1f6   : > { %9233 = vmatpush1.bf16.msra.mxu1 %v14539_v10  ;;  %9414 = vmatpush3.bf16.msra.mxu0 %v11765_v38  ;;  %v14547_v38 = vld [vmem:[#allocation67_spill] sm:$0xff]  ;;  %v14548_v10 = vld [vmem:[#allocation68_spill] sm:$0xff] }
 0x1f7   : > { %9235 = vmatprep.subr.bf16.mxu1 %v14540_v31  ;;  %9415 = vmatprep.subr.bf16.mxu0 %v14534_v47  ;;  %v14550_v31 = vld [vmem:[#allocation24_spill] sm:$0xff] }
 0x1fa   : > { %9237 = vmatpush1.bf16.msra.mxu1 %v14541_v13  ;;  %9417 = vmatpush3.bf16.msra.mxu0 %v14542_v52  ;;  %v14558_v52 = vpack.c.bf16 %v11539_v36, %v11534_v57 }
 0x1fb   : > { %9239 = vmatprep.subr.bf16.mxu1 %v14543_v11  ;;  %9418 = vmatprep.subr.bf16.mxu0 %v14534_v47  ;;  %v14549_v11 = vld [vmem:[#allocation25_spill] sm:$0xff] }
 0x1fc   : > { %v14551_v13 = vpack.c.bf16 %v14549_v11, %v14550_v31 }
 0x1fe   : > { %9241 = vmatpush1.bf16.msra.mxu1 %v14544_v40  ;;  %9420 = vmatpush3.bf16.msra.mxu0 %v14545_v23  ;;  %v14559_v40 = vpack.c.bf16 %v11549_v32, %v11544_v34  ;;  %v14560_v23 = vpack.c.bf16 %v11560_v19, %v11555_v25 }
 0x1ff   : > { %9243 = vmatprep.subr.bf16.mxu1 %v14546_v14  ;;  %9421 = vmatprep.subr.bf16.mxu0 %v14534_v47  ;;  %v14561_v14 = vpack.c.bf16 %v11570_v55, %v11565_v21 }
 0x202   : > { %9245 = vmatpush1.bf16.msra.mxu1 %v14547_v38  ;;  %9423 = vmatpush3.bf16.msra.mxu0 %v11850_v44  ;;  %v14553_v44 = vpack.c.bf16 %v11336_v4, %v11331_v3  ;;  %v14562_v38 = vpack.c.bf16 %v11581_v29, %v11576_v18 }
 0x203   : > { %9247 = vmatprep.subr.bf16.mxu1 %v11858_v61  ;;  %9424 = vmatprep.subr.bf16.mxu0 %v14534_v47  ;;  %v14552_v61 = vpack.c.bf16 %v11326_v0, %v11322_v58 }
 0x206   : > { %9249 = vmatpush1.bf16.msra.mxu1 %v14548_v10  ;;  %9426 = vmatpush3.bf16.msra.mxu0 %v11883_v59  ;;  %v14556_v59 = vpack.c.bf16 %v14509_v60, %v14507_v39  ;;  %v14563_v10 = vpack.c.bf16 %v11591_v24, %v14516_v63 }
 0x207   : > { %9251 = vmatprep.subr.bf16.mxu1 %v11891_v33  ;;  %9427 = vmatprep.subr.bf16.mxu0 %v14534_v47  ;;  %v14557_v33 = vpack.c.bf16 %v14528_v42, %v14527_v53 }
 0x20a   : > { %9253 = vmatpush1.bf16.msra.mxu1 %v11901_v43  ;;  %9429 = vmatpush3.bf16.msra.mxu0 %v9428_v45  ;;  %v14554_v43 = vpack.c.bf16 %v14526_v2, %v11339_v6  ;;  %v14555_v45 = vpack.c.bf16 %v11354_v30, %v11352_v22 }
 0x20b   : > { %9255 = vmatprep.subr.bf16.mxu1 %v14551_v13  ;;  %9430 = vmatprep.subr.bf16.mxu0 %v14534_v47  ;;  %v14564_v13 = vpack.c.bf16 %v11597_v48, %v11594_v1 }
 0x20d   : > { %1389 = vmatmul.mubr.f32.vlgmr.msra.gmra.mrb[0].mxu1 %v11947_v12  ;;  %7962 = vmatmul.mubr.f32.vlgmr.msra.gmra.mrb[2].mxu0 %v11947_v12 }
 0x20e   : > { %9257 = vmatpush1.bf16.msra.mxu1 %v14552_v61  ;;  %9432 = vmatpush3.bf16.msra.mxu0 %v14553_v44  ;;  %v14565_v61 = vpack.c.bf16 %v11602_v51, %v11600_v28  ;;  %v14566_v44 = vpack.c.bf16 %v11606_v56, %v11604_v35 }
 0x20f   : > { %9259 = vmatprep.subr.bf16.mxu1 %v14554_v43  ;;  %9433 = vmatprep.subr.bf16.mxu0 %v14534_v47  ;;  %v14567_v43 = vpack.c.bf16 %v11610_v20, %v11608_v46 }
 0x210   : > { %1523 = vmatprep.mubr.f32.mxu1 %v14535_v37  ;;  %7996 = vmatprep.mubr.msk.f32.mxu0 %vm10929_vm0, %v14535_v37 }
 0x212   : > { %9261 = vmatpush1.bf16.msra.mxu1 %v14555_v45  ;;  %9435 = vmatpush3.bf16.msra.mxu0 %v14556_v59  ;;  %v14568_v45 = vpack.c.bf16 %v11614_v5, %v11612_v8  ;;  %v14569_v59 = vpack.c.bf16 %v11618_v7, %v11616_v9 }
 0x213   : > { %9263 = vmatprep.subr.bf16.mxu1 %v14557_v33  ;;  %9436 = vmatprep.subr.bf16.mxu0 %v14534_v47  ;;  %v14570_v33 = vpack.c.bf16 %v11624_v49, %v11622_v50 }
 0x216   : > { %9265 = vmatpush1.bf16.msra.mxu1 %v14558_v52  ;;  %9438 = vmatpush3.bf16.msra.mxu0 %v14559_v40  ;;  %v14571_v52 = vpack.c.bf16 %v11630_v26, %v11628_v62  ;;  %v14572_v40 = vpack.c.bf16 %v11638_v27, %v11636_v15 }
 0x217   : > { %9267 = vmatprep.subr.bf16.mxu1 %v14560_v23  ;;  %9439 = vmatprep.subr.bf16.mxu0 %v14534_v47  ;;  %v14573_v23 = vpack.c.bf16 %v11646_v16, %v11644_v17 }
 0x21a   : > { %9269 = vmatpush1.bf16.msra.mxu1 %v14561_v14  ;;  %9441 = vmatpush3.bf16.msra.mxu0 %v14562_v38  ;;  %v14574_v14 = vld [vmem:[#allocation55_spill] sm:$0xff] }
 0x21b   : > { %9271 = vmatprep.subr.bf16.mxu1 %v14563_v10  ;;  %9442 = vmatprep.subr.bf16.mxu0 %v14534_v47  ;;  %v14575_v38 = vpack.c.bf16 %v11653_v41, %v14574_v14  ;;  %v14576_v10 = vld [vmem:[#allocation23_spill] sm:$0xff] }
 0x21e   : > { %9273 = vmatpush1.bf16.msra.mxu1 %v14564_v13  ;;  %9444 = vmatpush3.bf16.msra.mxu0 %v14565_v61  ;;  %v14577_v13 = vld [vmem:[#allocation26_spill] sm:$0xff]  ;;  %v14578_v61 = vld [vmem:[#allocation35_spill] sm:$0xff] }
 0x21f   : > { %9275 = vmatprep.subr.bf16.mxu1 %v14566_v44  ;;  %9445 = vmatprep.subr.bf16.mxu0 %v14534_v47  ;;  %v14579_v44 = vld [vmem:[#allocation27_spill] sm:$0xff] }
 0x222   : > { %9277 = vmatpush1.bf16.msra.mxu1 %v14567_v43  ;;  %9447 = vmatpush3.bf16.msra.mxu0 %v14568_v45  ;;  %v14580_v43 = vld [vmem:[#allocation29_spill] sm:$0xff]  ;;  %v14581_v45 = vld [vmem:[#allocation36_spill] sm:$0xff] }
 0x223   : > { %9279 = vmatprep.subr.bf16.mxu1 %v14569_v59  ;;  %9448 = vmatprep.subr.bf16.mxu0 %v14534_v47  ;;  %v14582_v59 = vld [vmem:[#allocation32_spill] sm:$0xff] }
 0x226   : > { %9281 = vmatpush1.bf16.msra.mxu1 %v14570_v33  ;;  %9450 = vmatpush3.bf16.msra.mxu0 %v14571_v52  ;;  %v14584_v33 = vld [vmem:[#allocation38_spill] sm:$0xff]  ;;  %v14585_v52 = vld [vmem:[#allocation39_spill] sm:$0xff] }
 0x227   : > { %9283 = vmatprep.subr.bf16.mxu1 %v14572_v40  ;;  %9451 = vmatprep.subr.bf16.mxu0 %v14534_v47  ;;  %v14586_v40 = vld [vmem:[#allocation40_spill] sm:$0xff] }
 0x22a   : > { %9285 = vmatpush1.bf16.msra.mxu1 %v14573_v23  ;;  %9453 = vmatpush3.bf16.msra.mxu0 %v14575_v38  ;;  %v14587_v23 = vld [vmem:[#allocation41_spill] sm:$0xff]  ;;  %v14588_v38 = vld [vmem:[#allocation42_spill] sm:$0xff] }
 0x22b   : > { %9287 = vmatprep.subr.bf16.mxu1 %v14576_v10  ;;  %9454 = vmatprep.subr.bf16.mxu0 %v14534_v47 }
 0x22d   : > { %1526 = vmatmul.mubr.f32.vlgmr.msra.gmra.mrb[0].mxu1 %v11951_v54  ;;  %7997 = vmatmul.mubr.f32.vlgmr.msra.gmra.mrb[2].mxu0 %v11951_v54  ;;  %v14583_v54 = vld [vmem:[#allocation37_spill] sm:$0xff] }
 0x22e   : > { %9289 = vmatpush1.bf16.msra.mxu1 %v14577_v13  ;;  %9456 = vmatpush3.bf16.msra.mxu0 %v14578_v61 }
 0x22f   : > { %9291 = vmatprep.subr.bf16.mxu1 %v14579_v44  ;;  %9457 = vmatprep.subr.bf16.mxu0 %v14534_v47  ;;  %v14603_v44 = vand.u32 4294901760, %v11326_v0  ;;  %v14610_v0 = vand.u32 4294901760, %v11354_v30  ;;  %v14616_v30 = vand.u32 4294901760, %v11539_v36  ;;  %v14622_v36 = vand.u32 4294901760, %v11570_v55 }
 0x230   : > { %1628 = vmatprep.mubr.f32.mxu1 %v14535_v37  ;;  %8031 = vmatprep.mubr.msk.f32.mxu0 %vm10929_vm0, %v14535_v37  ;;  %v14628_v55 = vand.u32 4294901760, %v11597_v48  ;;  %v14634_v48 = vand.u32 4294901760, %v11610_v20  ;;  %v14640_v20 = vand.u32 4294901760, %v11624_v49  ;;  %v14646_v49 = vand.u32 4294901760, %v11646_v16  ;;  %v14652_v16 = vld [vmem:[#allocation36_spill] sm:$0xff] }
 0x232   : > { %9293 = vmatpush1.bf16.msra.mxu1 %v14580_v43  ;;  %9459 = vmatpush3.bf16.msra.mxu0 %v14581_v45  ;;  %v14589_v45 = vld [vmem:[#allocation43_spill] sm:$0xff]  ;;  %v14591_v43 = vld [vmem:[#allocation45_spill] sm:$0xff] }
 0x233   : > { %9295 = vmatprep.subr.bf16.mxu1 %v14582_v59  ;;  %9460 = vmatprep.subr.bf16.mxu0 %v14534_v47  ;;  %v14590_v59 = vld [vmem:[#allocation44_spill] sm:$0xff] }
 0x236   : > { %9297 = vmatpush1.bf16.msra.mxu1 %v14583_v54  ;;  %9462 = vmatpush3.bf16.msra.mxu0 %v14584_v33  ;;  %v14592_v33 = vld [vmem:[#allocation46_spill] sm:$0xff]  ;;  %v14594_v54 = vld [vmem:[#allocation48_spill] sm:$0xff] }
 0x237   : > { %9299 = vmatprep.subr.bf16.mxu1 %v14585_v52  ;;  %9463 = vmatprep.subr.bf16.mxu0 %v14534_v47  ;;  %v14593_v52 = vld [vmem:[#allocation47_spill] sm:$0xff] }
 0x23a   : > { %9301 = vmatpush1.bf16.msra.mxu1 %v14586_v40  ;;  %9465 = vmatpush3.bf16.msra.mxu0 %v14587_v23  ;;  %v14595_v23 = vld [vmem:[#allocation50_spill] sm:$0xff]  ;;  %v14597_v40 = vld [vmem:[#allocation52_spill] sm:$0xff] }
 0x23b   : > { %9303 = vmatprep.subr.bf16.mxu1 %v14588_v38  ;;  %9466 = vmatprep.subr.bf16.mxu0 %v14534_v47  ;;  %v14596_v38 = vld [vmem:[#allocation51_spill] sm:$0xff] }
 0x23e   : > { %9305 = vmatpush1.bf16.msra.mxu1 %v14589_v45  ;;  %9468 = vmatpush3.bf16.msra.mxu0 %v14590_v59  ;;  %v14599_v59 = vand.u32 4294901760, %v14549_v11  ;;  %v14606_v11 = vand.u32 4294901760, %v11339_v6  ;;  %v14613_v6 = vand.u32 4294901760, %v14527_v53 }
 0x23f   : > { %9307 = vmatprep.subr.bf16.mxu1 %v14591_v43  ;;  %9469 = vmatprep.subr.bf16.mxu0 %v14534_v47  ;;  %v14598_v43 = vand.u32 4294901760, %v14550_v31  ;;  %v14607_v31 = vand.u32 4294901760, %v14526_v2  ;;  %v14614_v2 = vand.u32 4294901760, %v14528_v42  ;;  %v14619_v42 = vand.u32 4294901760, %v11555_v25 }
 0x240   : > { %v14625_v25 = vand.u32 4294901760, %v14516_v63  ;;  %v14631_v63 = vand.u32 4294901760, %v11604_v35  ;;  %v14637_v35 = vand.u32 4294901760, %v11616_v9  ;;  %v14643_v9 = vand.u32 4294901760, %v11636_v15  ;;  %v14649_v15 = vld [vmem:[#allocation35_spill] sm:$0xff] }
 0x241   : > { %v9318_v45 = vpack.c.bf16 %v14599_v59, %v14598_v43  ;;  %v9322_v43 = vpack.c.bf16 %v14607_v31, %v14606_v11  ;;  %v14608_v59 = vld [vmem:[#allocation33_spill] sm:$0xff] }
 0x242   : > { %9309 = vmatpush1.bf16.msra.mxu1 %v14592_v33  ;;  %9471 = vmatpush3.bf16.msra.mxu0 %v14593_v52  ;;  %v14600_v33 = vld [vmem:[#allocation53_spill] sm:$0xff]  ;;  %v14601_v52 = vld [vmem:[#allocation54_spill] sm:$0xff] }
 0x243   : > { %9311 = vmatprep.subr.bf16.mxu1 %v14594_v54  ;;  %9472 = vmatprep.subr.bf16.mxu0 %v14534_v47  ;;  %v14602_v54 = vand.u32 4294901760, %v11322_v58  ;;  %v14609_v58 = vand.u32 4294901760, %v11352_v22  ;;  %v14615_v22 = vand.u32 4294901760, %v11534_v57  ;;  %v14621_v57 = vand.u32 4294901760, %v11565_v21 }
 0x244   : > { %v14627_v21 = vand.u32 4294901760, %v11594_v1  ;;  %v14633_v1 = vand.u32 4294901760, %v11608_v46  ;;  %v14639_v46 = vand.u32 4294901760, %v11622_v50  ;;  %v14645_v50 = vand.u32 4294901760, %v11644_v17  ;;  %v14651_v17 = vld [vmem:[#allocation29_spill] sm:$0xff] }
 0x246   : > { %9313 = vmatpush1.bf16.msra.mxu1 %v14595_v23  ;;  %9474 = vmatpush3.bf16.msra.mxu0 %v14596_v38  ;;  %v9320_v23 = vpack.c.bf16 %v14603_v44, %v14602_v54  ;;  %v14604_v38 = vand.u32 4294901760, %v11331_v3  ;;  %v9324_v3 = vpack.c.bf16 %v14610_v0, %v14609_v58  ;;  %v14612_v44 = vand.u32 4294901760, %v14509_v60 }
 0x247   : > { %9315 = vmatprep.subr.bf16.mxu1 %v14597_v40  ;;  %9475 = vmatprep.subr.bf16.mxu0 %v14534_v47  ;;  %v14605_v40 = vand.u32 4294901760, %v11336_v4  ;;  %v14611_v4 = vand.u32 4294901760, %v14507_v39  ;;  %v9326_v54 = vpack.c.bf16 %v14614_v2, %v14613_v6  ;;  %v9328_v39 = vpack.c.bf16 %v14616_v30, %v14615_v22  ;;  %v14657_v22 = vld [vmem:[#allocation40_spill] sm:$0xff]  ;;  %v14658_v30 = vld [vmem:[#allocation41_spill] sm:$0xff] }
 0x248   : > { %v14617_v60 = vand.u32 4294901760, %v11544_v34  ;;  %v14623_v34 = vand.u32 4294901760, %v11576_v18  ;;  %v14629_v18 = vand.u32 4294901760, %v11600_v28  ;;  %v9340_v0 = vpack.c.bf16 %v14634_v48, %v14633_v1  ;;  %v12316_v48 = vld [vmem:[#allocation9 + $0x40] sm:$0xff] }
 0x249   : > { %v9479_v61 = vpack.c.bf16 %v14605_v40, %v14604_v38  ;;  %v14620_v40 = vand.u32 4294901760, %v11560_v19  ;;  %v9332_v38 = vpack.c.bf16 %v14622_v36, %v14621_v57  ;;  %v14626_v19 = vand.u32 4294901760, %v11591_v24  ;;  %v12252_v57 = vld [vmem:[#allocation9] sm:$0xff]  ;;  %v12254_v36 = vld [vmem:[#allocation9 + $0x8] sm:$0xff] }
 0x24a   : > { %9317 = vmatpush1.bf16.msra.mxu1 %v14600_v33  ;;  %9477 = vmatpush3.bf16.msra.mxu0 %v14601_v52  ;;  %v14632_v24 = vand.u32 4294901760, %v11606_v56  ;;  %v14635_v28 = vand.u32 4294901760, %v11612_v8  ;;  %v14638_v56 = vand.u32 4294901760, %v11618_v7  ;;  %v14641_v8 = vand.u32 4294901760, %v11628_v62 }
 0x24b   : > { %9319 = vmatprep.subr.bf16.mxu1 %v9318_v45  ;;  %9478 = vmatprep.subr.bf16.mxu0 %v14534_v47  ;;  %v9482_v45 = vpack.c.bf16 %v14612_v44, %v14611_v4  ;;  %v9334_v31 = vpack.c.bf16 %v14626_v19, %v14625_v25  ;;  %v9344_v44 = vpack.c.bf16 %v14640_v20, %v14639_v46  ;;  %v14644_v7 = vand.u32 4294901760, %v11638_v27  ;;  %v14650_v27 = vld [vmem:[#allocation27_spill] sm:$0xff]  ;;  %v14668_v25 = vld [vmem:[#allocation52_spill] sm:$0xff]  ;;  %v12262_v19 = vld [vmem:[#allocation9 + $0x10] sm:$0xff] }
 0x24c   : > { %v9338_v58 = vpack.c.bf16 %v14632_v24, %v14631_v63  ;;  %v9342_v4 = vpack.c.bf16 %v14638_v56, %v14637_v35  ;;  %v9348_v2 = vpack.c.bf16 %v14646_v49, %v14645_v50  ;;  %v14647_v62 = vand.u32 4294901760, %v14574_v14  ;;  %v14654_v14 = vld [vmem:[#allocation37_spill] sm:$0xff]  ;;  %v2566_v50 = vld [vmem:[#allocation9 + $0x78] sm:$0xff] }
 0x24d   : > { %1632 = vmatmul.mubr.f32.vlgmr.msra.gmra.mrb[0].mxu1 %v14608_v59  ;;  %8032 = vmatmul.mubr.f32.vlgmr.msra.gmra.mrb[2].mxu0 %v14608_v59  ;;  %v9346_v6 = vpack.c.bf16 %v14644_v7, %v14643_v9  ;;  %v12296_v63 = vld [vmem:[#allocation9 + $0x30] sm:$0xff] }
 0x24e   : > { %9321 = vmatpush1.bf16.msra.mxu1 %v9320_v23  ;;  %9480 = vmatpush3.bf16.msra.mxu0 %v9479_v61  ;;  %v14618_v61 = vand.u32 4294901760, %v11549_v32  ;;  %v9330_v23 = vpack.c.bf16 %v14620_v40, %v14619_v42  ;;  %v14624_v32 = vand.u32 4294901760, %v11581_v29  ;;  %v14630_v29 = vand.u32 4294901760, %v11602_v51  ;;  %v14663_v42 = vld [vmem:[#allocation46_spill] sm:$0xff]  ;;  %v14664_v40 = vld [vmem:[#allocation47_spill] sm:$0xff]  ;;  %v2561_v56 = vld [vmem:[#allocation9 + $0x50] sm:$0xff] }
 0x24f   : > { %9323 = vmatprep.subr.bf16.mxu1 %v9322_v43  ;;  %9481 = vmatprep.subr.bf16.mxu0 %v14534_v47  ;;  %v9336_v43 = vpack.c.bf16 %v14628_v55, %v14627_v21  ;;  %v14636_v51 = vand.u32 4294901760, %v11614_v5  ;;  %v14642_v5 = vand.u32 4294901760, %v11630_v26  ;;  %v14648_v26 = vand.u32 4294901760, %v11653_v41  ;;  %v14653_v41 = vld [vmem:[#allocation32_spill] sm:$0xff] }
 0x250   : > { %1798 = vmatprep.mubr.f32.mxu1 %v14535_v37  ;;  %8066 = vmatprep.mubr.msk.f32.mxu0 %vm10929_vm0, %v14535_v37  ;;  %v9485_v53 = vpack.c.bf16 %v14618_v61, %v14617_v60  ;;  %v9488_v11 = vpack.c.bf16 %v14624_v32, %v14623_v34  ;;  %v9491_v59 = vpack.c.bf16 %v14630_v29, %v14629_v18  ;;  %v14660_v60 = vld [vmem:[#allocation43_spill] sm:$0xff]  ;;  %v14661_v61 = vld [vmem:[#allocation44_spill] sm:$0xff]  ;;  %v2568_v32 = vand.u32 4294901760, %v12252_v57 }
 0x251   : > { %v14667_v34 = vld [vmem:[#allocation51_spill] sm:$0xff]  ;;  %v2574_v55 = vand.u32 4294901760, %v12262_v19  ;;  %v12280_v29 = vld [vmem:[#allocation9 + $0x28] sm:$0xff]  ;;  %v2598_v46 = vand.u32 4294901760, %v2561_v56 }
 0x252   : > { %9325 = vmatpush1.bf16.msra.mxu1 %v9324_v3  ;;  %9483 = vmatpush3.bf16.msra.mxu0 %v9482_v45  ;;  %v9494_v3 = vpack.c.bf16 %v14636_v51, %v14635_v28  ;;  %v9497_v45 = vpack.c.bf16 %v14642_v5, %v14641_v8  ;;  %v12278_v18 = vld [vmem:[#allocation9 + $0x20] sm:$0xff]  ;;  %v2592_v51 = vand.u32 4294901760, %v12316_v48  ;;  %v2564_v5 = vld [vmem:[#allocation9 + $0x68] sm:$0xff] }
 0x253   : > { %9327 = vmatprep.subr.bf16.mxu1 %v9326_v54  ;;  %9484 = vmatprep.subr.bf16.mxu0 %v14534_v47  ;;  %v9500_v54 = vpack.c.bf16 %v14648_v26, %v14647_v62  ;;  %v2563_v8 = vld [vmem:[#allocation9 + $0x60] sm:$0xff]  ;;  %v2607_v9 = vand.u32 4294901760, %v2564_v5  ;;  %v12364_v26 = vsub.f32 %v2561_v56, %v2598_v46 }
 0x256   : > { %9329 = vmatpush1.bf16.msra.mxu1 %v9328_v39  ;;  %9486 = vmatpush3.bf16.msra.mxu0 %v9485_v53  ;;  %v14659_v39 = vld [vmem:[#allocation42_spill] sm:$0xff]  ;;  %v14662_v53 = vld [vmem:[#allocation45_spill] sm:$0xff] }
 0x257   : > { %9331 = vmatprep.subr.bf16.mxu1 %v9330_v23  ;;  %9487 = vmatprep.subr.bf16.mxu0 %v14534_v47  ;;  %v14665_v23 = vld [vmem:[#allocation48_spill] sm:$0xff] }
 0x25a   : > { %9333 = vmatpush1.bf16.msra.mxu1 %v9332_v38  ;;  %9489 = vmatpush3.bf16.msra.mxu0 %v9488_v11  ;;  %v14666_v38 = vld [vmem:[#allocation50_spill] sm:$0xff]  ;;  %v2571_v11 = vand.u32 4294901760, %v12254_v36 }
 0x25b   : > { %9335 = vmatprep.subr.bf16.mxu1 %v9334_v31  ;;  %9490 = vmatprep.subr.bf16.mxu0 %v14534_v47  ;;  %v12264_v31 = vld [vmem:[#allocation9 + $0x18] sm:$0xff] }
 0x25c   : > { %v12272_v21 = vpack.c.bf16 %v2571_v11, %v2568_v32 }
 0x25e   : > { %9337 = vmatpush1.bf16.msra.mxu1 %v9336_v43  ;;  %9492 = vmatpush3.bf16.msra.mxu0 %v9491_v59  ;;  %v2577_v43 = vand.u32 4294901760, %v12264_v31  ;;  %v2583_v59 = vand.u32 4294901760, %v12280_v29 }
 0x25f   : > { %9339 = vmatprep.subr.bf16.mxu1 %v9338_v58  ;;  %9493 = vmatprep.subr.bf16.mxu0 %v14534_v47  ;;  %v2586_v58 = vand.u32 4294901760, %v12296_v63 }
 0x262   : > { %9341 = vmatpush1.bf16.msra.mxu1 %v9340_v0  ;;  %9495 = vmatpush3.bf16.msra.mxu0 %v9494_v3  ;;  %v12318_v0 = vld [vmem:[#allocation9 + $0x48] sm:$0xff] }
 0x263   : > { %9343 = vmatprep.subr.bf16.mxu1 %v9342_v4  ;;  %9496 = vmatprep.subr.bf16.mxu0 %v14534_v47  ;;  %v2595_v3 = vand.u32 4294901760, %v12318_v0  ;;  %v2562_v4 = vld [vmem:[#allocation9 + $0x58] sm:$0xff] }
 0x264   : > { %v2601_v20 = vand.u32 4294901760, %v2562_v4 }
 0x265   : > { %v12338_v35 = vpack.c.bf16 %v2595_v3, %v2592_v51 }
 0x266   : > { %9345 = vmatpush1.bf16.msra.mxu1 %v9344_v44  ;;  %9498 = vmatpush3.bf16.msra.mxu0 %v9497_v45  ;;  %v12346_v44 = vpack.c.bf16 %v2601_v20, %v2598_v46  ;;  %v2604_v45 = vand.u32 4294901760, %v2563_v8 }
 0x267   : > { %9347 = vmatprep.subr.bf16.mxu1 %v9346_v6  ;;  %9499 = vmatprep.subr.bf16.mxu0 %v14534_v47  ;;  %v2565_v6 = vld [vmem:[#allocation9 + $0x70] sm:$0xff] }
 0x268   : > { %14669 = vst [vmem:[#allocation34_spill] sm:$0xff] %v12346_v44  ;;  %v12352_v7 = vpack.c.bf16 %v2607_v9, %v2604_v45  ;;  %v2610_v49 = vand.u32 4294901760, %v2565_v6 }
 0x26a   : > { %9349 = vmatpush1.bf16.msra.mxu1 %v9348_v2  ;;  %9501 = vmatpush3.bf16.msra.mxu0 %v9500_v54  ;;  %14670 = vst [vmem:[#allocation56_spill] sm:$0xff] %v12352_v7  ;;  %v2613_v2 = vand.u32 4294901760, %v2566_v50  ;;  %v12366_v54 = vsub.f32 %v2562_v4, %v2601_v20 }
 0x26b   : > { %9351 = vmatprep.subr.bf16.mxu1 %v14576_v10  ;;  %9502 = vmatprep.subr.bf16.mxu0 %v14534_v47  ;;  %v14655_v10 = vld [vmem:[#allocation38_spill] sm:$0xff] }
 0x26c   : > { %v12358_v62 = vpack.c.bf16 %v2613_v2, %v2610_v49 }
 0x26d   : > { %1800 = vmatmul.mubr.f32.vlgmr.msra.gmra.mrb[0].mxu1 %v11947_v12  ;;  %8067 = vmatmul.mubr.f32.vlgmr.msra.gmra.mrb[2].mxu0 %v11947_v12 }
 0x26e   : > { %9353 = vmatpush1.bf16.msra.mxu1 %v14577_v13  ;;  %9504 = vmatpush3.bf16.msra.mxu0 %v14649_v15  ;;  %v14656_v13 = vld [vmem:[#allocation39_spill] sm:$0xff]  ;;  %14671 = vst [vmem:[#allocation57_spill] sm:$0xff] %v12358_v62  ;;  %v14329_v15 = vand.u32 4294901760, %v12364_v26 }
 0x26f   : > { %9355 = vmatprep.subr.bf16.mxu1 %v14650_v27  ;;  %9505 = vmatprep.subr.bf16.mxu0 %v14534_v47  ;;  %v14328_v27 = vand.u32 4294901760, %v12366_v54 }
 0x270   : > { %1902 = vmatprep.mubr.f32.mxu1 %v14535_v37  ;;  %8101 = vmatprep.mubr.msk.f32.mxu0 %vm10929_vm0, %v14535_v37 }
 0x272   : > { %9357 = vmatpush1.bf16.msra.mxu1 %v14651_v17  ;;  %9507 = vmatpush3.bf16.msra.mxu0 %v14652_v16  ;;  %v2732_v17 = vsub.f32 %v12364_v26, %v14329_v15  ;;  %v2739_v16 = vsub.f32 %v12366_v54, %v14328_v27 }
 0x273   : > { %9359 = vmatprep.subr.bf16.mxu1 %v14653_v41  ;;  %9508 = vmatprep.subr.bf16.mxu0 %v14534_v47  ;;  %v12376_v41 = vsub.f32 %v2563_v8, %v2604_v45 }
 0x276   : > { %9361 = vmatpush1.bf16.msra.mxu1 %v14654_v14  ;;  %9510 = vmatpush3.bf16.msra.mxu0 %v14655_v10  ;;  %v12378_v14 = vsub.f32 %v2564_v5, %v2607_v9  ;;  %v2733_v10 = vand.u32 4294901760, %v2732_v17  ;;  %v12408_v5 = vpack.c.bf16 %v12366_v54, %v12364_v26 }
 0x277   : > { %9363 = vmatprep.subr.bf16.mxu1 %v14656_v13  ;;  %9511 = vmatprep.subr.bf16.mxu0 %v14534_v47  ;;  %v2740_v13 = vand.u32 4294901760, %v2739_v16  ;;  %v12436_v16 = vld [vmem:[%s14176_s4] sm:$0x7] }
 0x278   : > { %v12412_v45 = vpack.c.bf16 %v12378_v14, %v12376_v41 }
 0x27a   : > { %9365 = vmatpush1.bf16.msra.mxu1 %v14657_v22  ;;  %9513 = vmatpush3.bf16.msra.mxu0 %v14658_v30  ;;  %v14327_v22 = vand.u32 4294901760, %v12376_v41  ;;  %v14326_v30 = vand.u32 4294901760, %v12378_v14 }
 0x27b   : > { %9367 = vmatprep.subr.bf16.mxu1 %v14659_v39  ;;  %9514 = vmatprep.subr.bf16.mxu0 %v14534_v47  ;;  %v12382_v39 = vpack.c.bf16 %v2740_v13, %v2733_v10 }
 0x27e   : > { %9369 = vmatpush1.bf16.msra.mxu1 %v14660_v60  ;;  %9516 = vmatpush3.bf16.msra.mxu0 %v14661_v61  ;;  %v2746_v60 = vsub.f32 %v12376_v41, %v14327_v22  ;;  %v12387_v61 = vsub.f32 %v2565_v6, %v2610_v49  ;;  %v1040_v6 = vlaneseq  ;;  %v12423_v49 = vsub.f32 %v12252_v57, %v2568_v32 }
 0x27f   : > { %9371 = vmatprep.subr.bf16.mxu1 %v14662_v53  ;;  %9517 = vmatprep.subr.bf16.mxu0 %v14534_v47  ;;  %v12389_v53 = vsub.f32 %v2566_v50, %v2613_v2  ;;  %v12428_v2 = vsub.f32 %v12254_v36, %v2571_v11  ;;  %v12446_v36 = vsub.f32 %v12262_v19, %v2574_v55 }
 0x280   : > { %v12418_v50 = vshrl.u32 %v1040_v6, 7  ;;  %v2661_v13 = vand.u32 4294901760, %v12423_v49  ;;  %v12451_v32 = vsub.f32 %v12264_v31, %v2577_v43 }
 0x281   : > { %v12416_v9 = vpack.c.bf16 %v12389_v53, %v12387_v61  ;;  %v2668_v57 = vand.u32 4294901760, %v12428_v2  ;;  %v14333_v31 = vand.u32 4294901760, %v12446_v36 }
 0x282   : > { %9373 = vmatpush1.bf16.msra.mxu1 %v14663_v42  ;;  %9519 = vmatpush3.bf16.msra.mxu0 %v14664_v40  ;;  %v2753_v42 = vsub.f32 %v12378_v14, %v14326_v30  ;;  %v2747_v40 = vand.u32 4294901760, %v2746_v60  ;;  %v12431_v17 = vsub.s32 0, %v12418_v50  ;;  %v12439_v10 = vsub.s32 1, %v12418_v50 }
 0x283   : > { %9375 = vmatprep.subr.bf16.mxu1 %v14665_v23  ;;  %9520 = vmatprep.subr.bf16.mxu0 %v14534_v47  ;;  %v14325_v23 = vand.u32 4294901760, %v12387_v61  ;;  %v2669_v19 = vsub.f32 %v12428_v2, %v2668_v57 }
 0x284   : > { %14672 = vst [vmem:[#allocation30_spill] sm:$0xff] %v12431_v17  ;;  %14673 = vst [vmem:[#allocation31_spill] sm:$0xff] %v12439_v10  ;;  %v1043_v11 = vrot.slane %v12436_v16, %v12431_v17  ;;  %v1047_v60 = vrot.slane %v12436_v16, %v12439_v10 }
 0x286   : > { %9377 = vmatpush1.bf16.msra.mxu1 %v14666_v38  ;;  %9522 = vmatpush3.bf16.msra.mxu0 %v14667_v34  ;;  %v14324_v38 = vand.u32 4294901760, %v12389_v53  ;;  %v2754_v34 = vand.u32 4294901760, %v2753_v42  ;;  %v2662_v42 = vsub.f32 %v12423_v49, %v2661_v13 }
 0x287   : > { %9379 = vmatprep.subr.bf16.mxu1 %v14668_v25  ;;  %9523 = vmatprep.subr.bf16.mxu0 %v14534_v47  ;;  %v2760_v25 = vsub.f32 %v12387_v61, %v14325_v23 }
 0x288   : > { %v2767_v56 = vsub.f32 %v12389_v53, %v14324_v38  ;;  %v12402_v4 = vpack.c.bf16 %v2754_v34, %v2747_v40  ;;  %v2663_v23 = vand.u32 4294901760, %v2662_v42  ;;  %v12502_v42 = vsub.f32 %v12296_v63, %v2586_v58 }
 0x289   : > { %v2761_v46 = vand.u32 4294901760, %v2760_v25 }
 0x28a   : > { %9381 = vmatpush1.bf16.msra.mxu1 %v14600_v33  ;;  %9525 = vmatpush3.bf16.msra.mxu0 %v14601_v52  ;;  %v12290_v33 = vpack.c.bf16 %v2577_v43, %v2574_v55  ;;  %v2580_v52 = vand.u32 4294901760, %v12278_v18  ;;  %v2768_v20 = vand.u32 4294901760, %v2767_v56  ;;  %v14332_v55 = vand.u32 4294901760, %v12451_v32 }
 0x28b   : > { %9526 = vmatprep.subr.bf16.mxu1 %v14534_v47  ;;  %9670 = vmatprep.subr.bf16.mxu0 %v14534_v47 }
 0x28c   : > { %v12310_v24 = vpack.c.bf16 %v2583_v59, %v2580_v52  ;;  %v12404_v8 = vpack.c.bf16 %v2768_v20, %v2761_v46  ;;  %v12472_v46 = vsub.f32 %v12278_v18, %v2580_v52  ;;  %v12477_v20 = vsub.f32 %v12280_v29, %v2583_v59 }
 0x28d   : > { %1904 = vmatmul.mubr.f32.vlgmr.msra.gmra.mrb[0].mxu1 %v11947_v12  ;;  %8102 = vmatmul.mubr.f32.vlgmr.msra.gmra.mrb[2].mxu0 %v11947_v12  ;;  %v12298_v12 = vld [vmem:[#allocation9 + $0x38] sm:$0xff]  ;;  %v2676_v18 = vsub.f32 %v12446_v36, %v14333_v31  ;;  %v2683_v52 = vsub.f32 %v12451_v32, %v14332_v55 }
 0x28e   : > { %9528 = vmatpush3.bf16.msra.mxu1 %v12272_v21  ;;  %9672 = vmatpush3.bf16.msra.mxu0 %v12272_v21  ;;  %v2589_v1 = vand.u32 4294901760, %v12298_v12  ;;  %v14330_v59 = vand.u32 4294901760, %v12472_v46 }
 0x28f   : > { %9529 = vmatprep.subr.bf16.mxu1 %v14534_v47  ;;  %9673 = vmatprep.subr.bf16.mxu0 %v14534_v47  ;;  %v2677_v27 = vand.u32 4294901760, %v2676_v18  ;;  %v2684_v15 = vand.u32 4294901760, %v2683_v52  ;;  %v12534_v18 = vsub.f32 %v12316_v48, %v2592_v51  ;;  %v12539_v52 = vsub.f32 %v12318_v0, %v2595_v3 }
 0x290   : > { %8136 = vmatprep.mubr.msk.f32.mxu1 %vm10929_vm0, %v14535_v37  ;;  %8346 = vmatprep.mubr.msk.f32.mxu0 %vm10929_vm0, %v14535_v37  ;;  %v12326_v28 = vpack.c.bf16 %v2589_v1, %v2586_v58  ;;  %v2690_v58 = vsub.f32 %v12472_v46, %v14330_v59 }
 0x291   : > { %v12541_v55 = vpack.c.bf16 %v2684_v15, %v2677_v27  ;;  %v2717_v0 = vand.u32 4294901760, %v12534_v18  ;;  %v2724_v3 = vand.u32 4294901760, %v12539_v52 }
 0x292   : > { %9531 = vmatpush3.bf16.msra.mxu1 %v12290_v33  ;;  %9675 = vmatpush3.bf16.msra.mxu0 %v12290_v33  ;;  %v2691_v31 = vand.u32 4294901760, %v2690_v58 }
 0x293   : > { %9532 = vmatprep.subr.bf16.mxu1 %v14534_v47  ;;  %9676 = vmatprep.subr.bf16.mxu0 %v14534_v47 }
 0x296   : > { %9534 = vmatpush3.bf16.msra.mxu1 %v12310_v24  ;;  %9678 = vmatpush3.bf16.msra.mxu0 %v12310_v24 }
 0x297   : > { %9535 = vmatprep.subr.bf16.mxu1 %v14534_v47  ;;  %9679 = vmatprep.subr.bf16.mxu0 %v14534_v47 }
 0x29a   : > { %9537 = vmatpush3.bf16.msra.mxu1 %v12326_v28  ;;  %9681 = vmatpush3.bf16.msra.mxu0 %v12326_v28 }
 0x29b   : > { %9538 = vmatprep.subr.bf16.mxu1 %v14534_v47  ;;  %9682 = vmatprep.subr.bf16.mxu0 %v14534_v47 }
 0x29e   : > { %9540 = vmatpush3.bf16.msra.mxu1 %v12338_v35  ;;  %9684 = vmatpush3.bf16.msra.mxu0 %v12338_v35 }
 0x29f   : > { %9541 = vmatprep.subr.bf16.mxu1 %v14534_v47  ;;  %9685 = vmatprep.subr.bf16.mxu0 %v14534_v47 }
 0x2a2   : > { %9543 = vmatpush3.bf16.msra.mxu1 %v12346_v44  ;;  %9687 = vmatpush3.bf16.msra.mxu0 %v12346_v44 }
 0x2a3   : > { %9544 = vmatprep.subr.bf16.mxu1 %v14534_v47  ;;  %9688 = vmatprep.subr.bf16.mxu0 %v14534_v47 }
 0x2a6   : > { %9546 = vmatpush3.bf16.msra.mxu1 %v12352_v7  ;;  %9690 = vmatpush3.bf16.msra.mxu0 %v12352_v7 }
 0x2a7   : > { %9547 = vmatprep.subr.bf16.mxu1 %v14534_v47  ;;  %9691 = vmatprep.subr.bf16.mxu0 %v14534_v47 }
 0x2aa   : > { %9549 = vmatpush3.bf16.msra.mxu1 %v12358_v62  ;;  %9693 = vmatpush3.bf16.msra.mxu0 %v12358_v62 }
 0x2ab   : > { %9550 = vmatprep.subr.bf16.mxu1 %v14534_v47  ;;  %9694 = vmatprep.subr.bf16.mxu0 %v14534_v47 }
 0x360   : > { %v1905_v40 = vpop.f32.mrb[0].mxu1  ;;  %v12460_v34 = vpop.f32.mrb[2].mxu0 }
 0x361   : > { %v12467_v43 = vadd.f32 %v1905_v40, %v1043_v11  ;;  %v1907_v25 = vpop.f32.mrb[1].mxu1  ;;  %v8103_v56 = vpop.f32.mrb[3].mxu0  ;;  %v2670_v40 = vand.u32 4294901760, %v2669_v19 }
 0x362   : > { %v12479_v6 = vadd.f32 %v1907_v25, %v1047_v60  ;;  %v14331_v60 = vand.u32 4294901760, %v12477_v20  ;;  %v12511_v25 = vsub.f32 %v12298_v12, %v2589_v1  ;;  %v2703_v1 = vand.u32 4294901760, %v12502_v42 }
 0x363   : > { %14674 = vst [vmem:[#allocation58_spill] sm:$0xff] %v12467_v43  ;;  %v12482_v38 = vand.u32 4294901760, %v12467_v43  ;;  %v12515_v22 = vpack.c.bf16 %v2670_v40, %v2663_v23 }
 0x364   : > { %14675 = vst [vmem:[#allocation59_spill] sm:$0xff] %v12479_v6  ;;  %v12485_v11 = vand.u32 4294901760, %v12479_v6  ;;  %v2697_v12 = vsub.f32 %v12477_v20, %v14331_v60  ;;  %v2710_v40 = vand.u32 4294901760, %v12511_v25  ;;  %v2704_v48 = vsub.f32 %v12502_v42, %v2703_v1 }
 0x365   : > { %v12495_v29 = vsub.f32 %v12467_v43, %v12482_v38  ;;  %v4558_v43 = vld [vmem:[#allocation11 + $0x48] sm:$0xff] }
 0x366   : > { %v12506_v19 = vsub.f32 %v12479_v6, %v12485_v11  ;;  %v2711_v51 = vsub.f32 %v12511_v25, %v2710_v40  ;;  %v2705_v27 = vand.u32 4294901760, %v2704_v48  ;;  %v12608_v48 = vpack.c.bf16 %v12451_v32, %v12446_v36  ;;  %v4557_v6 = vld [vmem:[#allocation11 + $0x40] sm:$0xff] }
 0x367   : > { %v14334_v56 = vand.u32 4294901760, %v12495_v29 }
 0x368   : > { %v3291_v30 = vand.u32 4294901760, %v12506_v19 }
 0x369   : > { %v2651_v63 = vsub.f32 %v12495_v29, %v14334_v56  ;;  %v2698_v56 = vand.u32 4294901760, %v2697_v12 }
 0x36a   : > { %v3292_v23 = vsub.f32 %v12506_v19, %v3291_v30 }
 0x36b   : > { %v2652_v59 = vand.u32 4294901760, %v2651_v63  ;;  %v12557_v15 = vpack.c.bf16 %v2698_v56, %v2691_v31  ;;  %v2725_v63 = vsub.f32 %v12539_v52, %v2724_v3 }
 0x36c   : > { %v3293_v60 = vand.u32 4294901760, %v3292_v23  ;;  %v12598_v23 = vpack.c.bf16 %v12428_v2, %v12423_v49  ;;  %v14678_v49 = vand.u32 4294901760, %v12446_v36  ;;  %v14679_v2 = vand.u32 4294901760, %v12451_v32 }
 0x36d   : > { %8137 = vmatmul.mubr.f32.vlgmr.msra.gmra.mrb[2].mxu1 %v2652_v59  ;;  %v2712_v59 = vand.u32 4294901760, %v2711_v51  ;;  %v2726_v58 = vand.u32 4294901760, %v2725_v63  ;;  %v12620_v51 = vpack.c.bf16 %v12477_v20, %v12472_v46  ;;  %v14677_v63 = vand.u32 4294901760, %v12495_v29 }
 0x36e   : > { %9552 = vmatpush3.bf16.msra.mxu1 %v12515_v22  ;;  %8347 = vmatmul.mubr.f32.vlgmr.msra.gmra.mrb[4].mxu0 %v3293_v60  ;;  %v2718_v60 = vsub.f32 %v12534_v18, %v2717_v0  ;;  %v12734_v32 = vpack.c.bf16 %v2710_v40, %v2703_v1 }
 0x36f   : > { %9696 = vmatpush3.bf16.msra.mxu0 %v12515_v22  ;;  %9553 = vmatprep.subr.bf16.mxu1 %v14534_v47  ;;  %v12572_v31 = vpack.c.bf16 %v2712_v59, %v2705_v27  ;;  %v12628_v27 = vpack.c.bf16 %v12511_v25, %v12502_v42  ;;  %v12636_v59 = vpack.c.bf16 %v12539_v52, %v12534_v18  ;;  %v14690_v25 = vand.u32 4294901760, %v12378_v14  ;;  %v4549_v52 = vld [vmem:[#allocation11] sm:$0xff] }
 0x370   : > { %9697 = vmatprep.subr.bf16.mxu0 %v14534_v47  ;;  %8171 = vmatprep.mubr.msk.f32.mxu1 %vm10929_vm0, %v14535_v37  ;;  %v2719_v56 = vand.u32 4294901760, %v2718_v60  ;;  %v12696_v60 = vpack.c.bf16 %v2668_v57, %v2661_v13  ;;  %v12710_v13 = vpack.c.bf16 %v14679_v2, %v14678_v49  ;;  %v14682_v57 = vand.u32 4294901760, %v12477_v20  ;;  %14684 = vst [vmem:[#allocation62_spill] sm:$0xff] %v12734_v32 }
 0x371   : > { %8381 = vmatprep.mubr.msk.f32.mxu0 %vm10929_vm0, %v14535_v37  ;;  %v14686_v20 = vand.u32 4294901760, %v12364_v26  ;;  %v14692_v26 = vand.u32 4294901760, %v12387_v61 }
 0x372   : > { %9555 = vmatpush3.bf16.msra.mxu1 %v12541_v55  ;;  %v12578_v12 = vpack.c.bf16 %v2726_v58, %v2719_v56  ;;  %14676 = vst [vmem:[#allocation60_spill] sm:$0xff] %v12696_v60  ;;  %14680 = vst [vmem:[#allocation49_spill] sm:$0xff] %v12710_v13 }
 0x373   : > { %9699 = vmatpush3.bf16.msra.mxu0 %v12541_v55  ;;  %9556 = vmatprep.subr.bf16.mxu1 %v14534_v47 }
 0x374   : > { %9700 = vmatprep.subr.bf16.mxu0 %v14534_v47 }
 0x376   : > { %9558 = vmatpush3.bf16.msra.mxu1 %v12557_v15 }
 0x377   : > { %9702 = vmatpush3.bf16.msra.mxu0 %v12557_v15  ;;  %9559 = vmatprep.subr.bf16.mxu1 %v14534_v47 }
 0x378   : > { %9703 = vmatprep.subr.bf16.mxu0 %v14534_v47 }
 0x37a   : > { %9561 = vmatpush3.bf16.msra.mxu1 %v12572_v31 }
 0x37b   : > { %9705 = vmatpush3.bf16.msra.mxu0 %v12572_v31  ;;  %9562 = vmatprep.subr.bf16.mxu1 %v14534_v47 }
 0x37c   : > { %9706 = vmatprep.subr.bf16.mxu0 %v14534_v47 }
 0x37e   : > { %9564 = vmatpush3.bf16.msra.mxu1 %v12578_v12 }
 0x37f   : > { %9708 = vmatpush3.bf16.msra.mxu0 %v12578_v12  ;;  %9565 = vmatprep.subr.bf16.mxu1 %v14534_v47 }
 0x380   : > { %9709 = vmatprep.subr.bf16.mxu0 %v14534_v47 }
 0x382   : > { %9567 = vmatpush3.bf16.msra.mxu1 %v12382_v39 }
 0x383   : > { %9711 = vmatpush3.bf16.msra.mxu0 %v12382_v39  ;;  %9568 = vmatprep.subr.bf16.mxu1 %v14534_v47 }
 0x384   : > { %9712 = vmatprep.subr.bf16.mxu0 %v14534_v47 }
 0x386   : > { %9570 = vmatpush3.bf16.msra.mxu1 %v12402_v4 }
 0x387   : > { %9714 = vmatpush3.bf16.msra.mxu0 %v12402_v4  ;;  %9571 = vmatprep.subr.bf16.mxu1 %v14534_v47 }
 0x388   : > { %9715 = vmatprep.subr.bf16.mxu0 %v14534_v47 }
 0x38a   : > { %9573 = vmatpush3.bf16.msra.mxu1 %v12404_v8 }
 0x38b   : > { %9717 = vmatpush3.bf16.msra.mxu0 %v12404_v8  ;;  %9574 = vmatprep.subr.bf16.mxu1 %v14534_v47 }
 0x38c   : > { %9718 = vmatprep.subr.bf16.mxu0 %v14534_v47 }
 0x38d   : > { %8172 = vmatmul.mubr.f32.vlgmr.msra.gmra.mrb[2].mxu1 %v12482_v38 }
 0x38e   : > { %9576 = vmatpush3.bf16.msra.mxu1 %v12598_v23  ;;  %8382 = vmatmul.mubr.f32.vlgmr.msra.gmra.mrb[4].mxu0 %v12485_v11 }
 0x38f   : > { %9720 = vmatpush3.bf16.msra.mxu0 %v12598_v23  ;;  %9577 = vmatprep.subr.bf16.mxu1 %v14534_v47 }
 0x390   : > { %9721 = vmatprep.subr.bf16.mxu0 %v14534_v47  ;;  %8206 = vmatprep.mubr.msk.f32.mxu1 %vm10929_vm0, %v14535_v37 }
 0x391   : > { %8416 = vmatprep.mubr.msk.f32.mxu0 %vm10929_vm0, %v14535_v37 }
 0x392   : > { %9579 = vmatpush3.bf16.msra.mxu1 %v12608_v48 }
 0x393   : > { %9723 = vmatpush3.bf16.msra.mxu0 %v12608_v48  ;;  %9580 = vmatprep.subr.bf16.mxu1 %v14534_v47 }
 0x394   : > { %9724 = vmatprep.subr.bf16.mxu0 %v14534_v47 }
 0x396   : > { %9582 = vmatpush3.bf16.msra.mxu1 %v12620_v51 }
 0x397   : > { %9726 = vmatpush3.bf16.msra.mxu0 %v12620_v51  ;;  %9583 = vmatprep.subr.bf16.mxu1 %v14534_v47 }
 0x398   : > { %9727 = vmatprep.subr.bf16.mxu0 %v14534_v47 }
 0x39a   : > { %9585 = vmatpush3.bf16.msra.mxu1 %v12628_v27 }
 0x39b   : > { %9729 = vmatpush3.bf16.msra.mxu0 %v12628_v27  ;;  %9586 = vmatprep.subr.bf16.mxu1 %v14534_v47 }
 0x39c   : > { %9730 = vmatprep.subr.bf16.mxu0 %v14534_v47 }
 0x39e   : > { %9588 = vmatpush3.bf16.msra.mxu1 %v12636_v59 }
 0x39f   : > { %9732 = vmatpush3.bf16.msra.mxu0 %v12636_v59  ;;  %9589 = vmatprep.subr.bf16.mxu1 %v14534_v47 }
 0x3a0   : > { %9733 = vmatprep.subr.bf16.mxu0 %v14534_v47 }
 0x3a2   : > { %9591 = vmatpush3.bf16.msra.mxu1 %v12408_v5 }
 0x3a3   : > { %9735 = vmatpush3.bf16.msra.mxu0 %v12408_v5  ;;  %9592 = vmatprep.subr.bf16.mxu1 %v14534_v47 }
 0x3a4   : > { %9736 = vmatprep.subr.bf16.mxu0 %v14534_v47 }
 0x3a6   : > { %9594 = vmatpush3.bf16.msra.mxu1 %v12412_v45 }
 0x3a7   : > { %9738 = vmatpush3.bf16.msra.mxu0 %v12412_v45  ;;  %9595 = vmatprep.subr.bf16.mxu1 %v14534_v47 }
 0x3a8   : > { %9739 = vmatprep.subr.bf16.mxu0 %v14534_v47 }
 0x3aa   : > { %9597 = vmatpush3.bf16.msra.mxu1 %v12416_v9 }
 0x3ab   : > { %9741 = vmatpush3.bf16.msra.mxu0 %v12416_v9  ;;  %9598 = vmatprep.subr.bf16.mxu1 %v14534_v47 }
 0x3ac   : > { %9742 = vmatprep.subr.bf16.mxu0 %v14534_v47 }
 0x3ad   : > { %8207 = vmatmul.mubr.f32.vlgmr.msra.gmra.mrb[2].mxu1 %v12495_v29  ;;  %v14687_v29 = vand.u32 4294901760, %v12366_v54  ;;  %v14693_v54 = vand.u32 4294901760, %v12389_v53 }
 0x3ae   : > { %9600 = vmatpush3.bf16.msra.mxu1 %v12272_v21  ;;  %8417 = vmatmul.mubr.f32.vlgmr.msra.gmra.mrb[4].mxu0 %v12506_v19  ;;  %v14689_v19 = vand.u32 4294901760, %v12376_v41  ;;  %v12824_v41 = vsub.s32 2, %v12418_v50 }
 0x3af   : > { %9744 = vmatpush3.bf16.msra.mxu0 %v12272_v21  ;;  %9601 = vmatprep.subr.bf16.mxu1 %v14534_v47  ;;  %v12754_v42 = vpack.c.bf16 %v14687_v29, %v14686_v20  ;;  %v12774_v40 = vpack.c.bf16 %v14693_v54, %v14692_v26 }
 0x3b0   : > { %9745 = vmatprep.subr.bf16.mxu0 %v14534_v47  ;;  %8241 = vmatprep.mubr.msk.f32.mxu1 %vm10929_vm0, %v14535_v37  ;;  %v12764_v1 = vpack.c.bf16 %v14690_v25, %v14689_v19  ;;  %14695 = vst [vmem:[#allocation67_spill] sm:$0xff] %v12824_v41  ;;  %v1051_v14 = vrot.slane %v12436_v16, %v12824_v41  ;;  %v4570_v25 = vld [vmem:[#allocation11 + $0xa8] sm:$0xff]  ;;  %v4573_v41 = vld [vmem:[#allocation11 + $0xc0] sm:$0xff] }
 0x3b1   : > { %8451 = vmatprep.mubr.msk.f32.mxu0 %vm10929_vm0, %v14535_v37  ;;  %14688 = vst [vmem:[#allocation64_spill] sm:$0xff] %v12754_v42  ;;  %14694 = vst [vmem:[#allocation66_spill] sm:$0xff] %v12774_v40 }
 0x3b2   : > { %9603 = vmatpush3.bf16.msra.mxu1 %v12290_v33  ;;  %14691 = vst [vmem:[#allocation65_spill] sm:$0xff] %v12764_v1  ;;  %v12835_v61 = vadd.f32 %v12460_v34, %v1051_v14 }
 0x3b3   : > { %9747 = vmatpush3.bf16.msra.mxu0 %v12290_v33  ;;  %9604 = vmatprep.subr.bf16.mxu1 %v14534_v47 }
 0x3b4   : > { %9748 = vmatprep.subr.bf16.mxu0 %v14534_v47  ;;  %14696 = vst [vmem:[#allocation68_spill] sm:$0xff] %v12835_v61  ;;  %v12840_v53 = vand.u32 4294901760, %v12835_v61 }
 0x3b6   : > { %9606 = vmatpush3.bf16.msra.mxu1 %v12310_v24  ;;  %14697 = vst [vmem:[#allocation25_spill] sm:$0xff] %v12840_v53 }
 0x3b7   : > { %9750 = vmatpush3.bf16.msra.mxu0 %v12310_v24  ;;  %9607 = vmatprep.subr.bf16.mxu1 %v14534_v47 }
 0x3b8   : > { %9751 = vmatprep.subr.bf16.mxu0 %v14534_v47 }
 0x3ba   : > { %9609 = vmatpush3.bf16.msra.mxu1 %v12326_v28 }
 0x3bb   : > { %9753 = vmatpush3.bf16.msra.mxu0 %v12326_v28  ;;  %9610 = vmatprep.subr.bf16.mxu1 %v14534_v47 }
 0x3bc   : > { %9754 = vmatprep.subr.bf16.mxu0 %v14534_v47 }
 0x3be   : > { %9612 = vmatpush3.bf16.msra.mxu1 %v12338_v35 }
 0x3bf   : > { %9756 = vmatpush3.bf16.msra.mxu0 %v12338_v35  ;;  %9613 = vmatprep.subr.bf16.mxu1 %v14534_v47 }
 0x3c0   : > { %9757 = vmatprep.subr.bf16.mxu0 %v14534_v47 }
 0x3c2   : > { %9615 = vmatpush3.bf16.msra.mxu1 %v12346_v44 }
 0x3c3   : > { %9759 = vmatpush3.bf16.msra.mxu0 %v12346_v44  ;;  %9616 = vmatprep.subr.bf16.mxu1 %v14534_v47 }
 0x3c4   : > { %9760 = vmatprep.subr.bf16.mxu0 %v14534_v47 }
 0x3c6   : > { %9618 = vmatpush3.bf16.msra.mxu1 %v12352_v7 }
 0x3c7   : > { %9762 = vmatpush3.bf16.msra.mxu0 %v12352_v7  ;;  %9619 = vmatprep.subr.bf16.mxu1 %v14534_v47 }
 0x3c8   : > { %9763 = vmatprep.subr.bf16.mxu0 %v14534_v47 }
 0x3ca   : > { %9621 = vmatpush3.bf16.msra.mxu1 %v12358_v62 }
 0x3cb   : > { %9765 = vmatpush3.bf16.msra.mxu0 %v12358_v62  ;;  %9622 = vmatprep.subr.bf16.mxu1 %v14534_v47 }
 0x3cc   : > { %9766 = vmatprep.subr.bf16.mxu0 %v14534_v47 }
 0x3cd   : > { %8242 = vmatmul.mubr.f32.vlgmr.msra.gmra.mrb[2].mxu1 %v14677_v63  ;;  %v4552_v63 = vld [vmem:[#allocation11 + $0x18] sm:$0xff] }
 0x3ce   : > { %9624 = vmatpush3.bf16.msra.mxu1 %v12696_v60  ;;  %8452 = vmatmul.mubr.f32.vlgmr.msra.gmra.mrb[4].mxu0 %v3291_v30  ;;  %v14681_v30 = vand.u32 4294901760, %v12472_v46  ;;  %v12744_v46 = vpack.c.bf16 %v2724_v3, %v2717_v0  ;;  %v4550_v0 = vld [vmem:[#allocation11 + $0x8] sm:$0xff]  ;;  %v4598_v3 = vand.u32 4294901760, %v4549_v52 }
 0x3cf   : > { %9768 = vmatpush3.bf16.msra.mxu0 %v12696_v60  ;;  %9625 = vmatprep.subr.bf16.mxu1 %v14534_v47 }
 0x3d0   : > { %9769 = vmatprep.subr.bf16.mxu0 %v14534_v47  ;;  %8276 = vmatprep.mubr.msk.f32.mxu1 %vm10929_vm0, %v14535_v37  ;;  %v12724_v36 = vpack.c.bf16 %v14682_v57, %v14681_v30  ;;  %14685 = vst [vmem:[#allocation63_spill] sm:$0xff] %v12744_v46  ;;  %v12892_v58 = vsub.f32 %v4549_v52, %v4598_v3  ;;  %v4607_v57 = vand.u32 4294901760, %v4552_v63  ;;  %v4554_v52 = vld [vmem:[#allocation11 + $0x28] sm:$0xff] }
 0x3d1   : > { %8486 = vmatprep.mubr.msk.f32.mxu0 %vm10929_vm0, %v14535_v37 }
 0x3d2   : > { %9627 = vmatpush3.bf16.msra.mxu1 %v12710_v13  ;;  %14683 = vst [vmem:[#allocation61_spill] sm:$0xff] %v12724_v36  ;;  %v12910_v54 = vsub.f32 %v4552_v63, %v4607_v57 }
 0x3d3   : > { %9771 = vmatpush3.bf16.msra.mxu0 %v12710_v13  ;;  %9628 = vmatprep.subr.bf16.mxu1 %v14534_v47 }
 0x3d4   : > { %9772 = vmatprep.subr.bf16.mxu0 %v14534_v47 }
 0x3d6   : > { %9630 = vmatpush3.bf16.msra.mxu1 %v12724_v36 }
 0x3d7   : > { %9774 = vmatpush3.bf16.msra.mxu0 %v12724_v36  ;;  %9631 = vmatprep.subr.bf16.mxu1 %v14534_v47 }
 0x3d8   : > { %9775 = vmatprep.subr.bf16.mxu0 %v14534_v47 }
 0x3da   : > { %9633 = vmatpush3.bf16.msra.mxu1 %v12734_v32 }
 0x3db   : > { %9777 = vmatpush3.bf16.msra.mxu0 %v12734_v32  ;;  %9634 = vmatprep.subr.bf16.mxu1 %v14534_v47  ;;  %v4564_v32 = vld [vmem:[#allocation11 + $0x78] sm:$0xff] }
 0x3dc   : > { %9778 = vmatprep.subr.bf16.mxu0 %v14534_v47 }
 0x3de   : > { %9636 = vmatpush3.bf16.msra.mxu1 %v12744_v46 }
 0x3df   : > { %9780 = vmatpush3.bf16.msra.mxu0 %v12744_v46  ;;  %9637 = vmatprep.subr.bf16.mxu1 %v14534_v47  ;;  %v4563_v46 = vld [vmem:[#allocation11 + $0x70] sm:$0xff] }
 0x3e0   : > { %9781 = vmatprep.subr.bf16.mxu0 %v14534_v47 }
 0x3e2   : > { %9639 = vmatpush3.bf16.msra.mxu1 %v12754_v42 }
 0x3e3   : > { %9783 = vmatpush3.bf16.msra.mxu0 %v12754_v42  ;;  %9640 = vmatprep.subr.bf16.mxu1 %v14534_v47 }
 0x3e4   : > { %9784 = vmatprep.subr.bf16.mxu0 %v14534_v47 }
 0x3e6   : > { %9642 = vmatpush3.bf16.msra.mxu1 %v12764_v1 }
 0x3e7   : > { %9786 = vmatpush3.bf16.msra.mxu0 %v12764_v1  ;;  %9643 = vmatprep.subr.bf16.mxu1 %v14534_v47 }
 0x3e8   : > { %9787 = vmatprep.subr.bf16.mxu0 %v14534_v47 }
 0x3ea   : > { %9645 = vmatpush3.bf16.msra.mxu1 %v12774_v40 }
 0x3eb   : > { %9789 = vmatpush3.bf16.msra.mxu0 %v12774_v40  ;;  %9646 = vmatprep.subr.bf16.mxu1 %v14534_v47  ;;  %v4580_v40 = vld [vmem:[#allocation11 + $0xf8] sm:$0xff] }
 0x3ec   : > { %9790 = vmatprep.subr.bf16.mxu0 %v14534_v47  ;;  %v4691_v42 = vand.u32 4294901760, %v4580_v40 }
 0x3ed   : > { %8277 = vmatmul.mubr.f32.vlgmr.msra.gmra.mrb[2].mxu1 %v12482_v38 }
 0x3ee   : > { %9648 = vmatpush3.bf16.msra.mxu1 %v12272_v21  ;;  %8487 = vmatmul.mubr.f32.vlgmr.msra.gmra.mrb[4].mxu0 %v12485_v11 }
 0x3ef   : > { %9792 = vmatpush3.bf16.msra.mxu0 %v12272_v21  ;;  %9649 = vmatprep.subr.bf16.mxu1 %v14534_v47 }
 0x3f0   : > { %9793 = vmatprep.subr.bf16.mxu0 %v14534_v47  ;;  %8311 = vmatprep.mubr.msk.f32.mxu1 %vm10929_vm0, %v14535_v37 }
 0x3f1   : > { %8521 = vmatprep.mubr.msk.f32.mxu0 %vm10929_vm0, %v14535_v37 }
 0x3f2   : > { %9651 = vmatpush3.bf16.msra.mxu1 %v12290_v33 }
 0x3f3   : > { %9795 = vmatpush3.bf16.msra.mxu0 %v12290_v33  ;;  %9652 = vmatprep.subr.bf16.mxu1 %v14534_v47 }
 0x3f4   : > { %9796 = vmatprep.subr.bf16.mxu0 %v14534_v47 }
 0x3f6   : > { %9654 = vmatpush3.bf16.msra.mxu1 %v12310_v24 }
 0x3f7   : > { %9798 = vmatpush3.bf16.msra.mxu0 %v12310_v24  ;;  %9655 = vmatprep.subr.bf16.mxu1 %v14534_v47 }
 0x3f8   : > { %9799 = vmatprep.subr.bf16.mxu0 %v14534_v47 }
 0x3fa   : > { %9657 = vmatpush3.bf16.msra.mxu1 %v12326_v28 }
 0x3fb   : > { %9801 = vmatpush3.bf16.msra.mxu0 %v12326_v28  ;;  %9658 = vmatprep.subr.bf16.mxu1 %v14534_v47 }
 0x3fc   : > { %9802 = vmatprep.subr.bf16.mxu0 %v14534_v47 }
 0x3fe   : > { %9660 = vmatpush3.bf16.msra.mxu1 %v12338_v35 }
 0x3ff   : > { %9804 = vmatpush3.bf16.msra.mxu0 %v12338_v35  ;;  %9661 = vmatprep.subr.bf16.mxu1 %v14534_v47 }
 0x400   : > { %9805 = vmatprep.subr.bf16.mxu0 %v14534_v47 }
 0x402   : > { %9663 = vmatpush3.bf16.msra.mxu1 %v12346_v44 }
 0x403   : > { %9807 = vmatpush3.bf16.msra.mxu0 %v12346_v44  ;;  %9664 = vmatprep.subr.bf16.mxu1 %v14534_v47 }
 0x404   : > { %9808 = vmatprep.subr.bf16.mxu0 %v14534_v47 }
 0x406   : > { %9666 = vmatpush3.bf16.msra.mxu1 %v12352_v7 }
 0x407   : > { %9810 = vmatpush3.bf16.msra.mxu0 %v12352_v7  ;;  %9667 = vmatprep.subr.bf16.mxu1 %v14534_v47 }
 0x408   : > { %9811 = vmatprep.subr.bf16.mxu0 %v14534_v47 }
 0x40a   : > { %9669 = vmatpush3.bf16.msra.mxu1 %v12358_v62 }
 0x40b   : > { %9813 = vmatpush3.bf16.msra.mxu0 %v12358_v62  ;;  %9814 = vmatprep.subr.bf16.mxu1 %v14534_v47 }
 0x40d   : > { %8312 = vmatmul.mubr.f32.vlgmr.msra.gmra.mrb[2].mxu1 %v12482_v38  ;;  %v12846_v38 = vsub.f32 %v12835_v61, %v12840_v53 }
 0x40e   : > { %8522 = vmatmul.mubr.f32.vlgmr.msra.gmra.mrb[4].mxu0 %v12485_v11  ;;  %9816 = vmatpush3.bf16.msra.mxu1 %v12272_v21 }
 0x40f   : > { %9817 = vmatprep.subr.bf16.mxu1 %v14534_v47  ;;  %8556 = vmatprep.mubr.msk.f32.mxu1 %vm10929_vm0, %v14535_v37  ;;  %v14335_v50 = vand.u32 4294901760, %v12846_v38 }
 0x411   : > { %v3933_v16 = vsub.f32 %v12846_v38, %v14335_v50  ;;  %v4555_v50 = vld [vmem:[#allocation11 + $0x30] sm:$0xff] }
 0x412   : > { %9819 = vmatpush3.bf16.msra.mxu1 %v12290_v33 }
 0x413   : > { %9820 = vmatprep.subr.bf16.mxu1 %v14534_v47  ;;  %v3934_v34 = vand.u32 4294901760, %v3933_v16  ;;  %v4661_v16 = vand.u32 4294901760, %v4570_v25 }
 0x416   : > { %9822 = vmatpush3.bf16.msra.mxu1 %v12310_v24 }
 0x417   : > { %9823 = vmatprep.subr.bf16.mxu1 %v14534_v47 }
 0x41a   : > { %9825 = vmatpush3.bf16.msra.mxu1 %v12326_v28 }
 0x41b   : > { %9826 = vmatprep.subr.bf16.mxu1 %v14534_v47 }
 0x41e   : > { %9828 = vmatpush3.bf16.msra.mxu1 %v12338_v35 }
 0x41f   : > { %9829 = vmatprep.subr.bf16.mxu1 %v14534_v47 }
 0x422   : > { %9831 = vmatpush3.bf16.msra.mxu1 %v12346_v44 }
 0x423   : > { %9832 = vmatprep.subr.bf16.mxu1 %v14534_v47 }
 0x426   : > { %9834 = vmatpush3.bf16.msra.mxu1 %v12352_v7 }
 0x427   : > { %9835 = vmatprep.subr.bf16.mxu1 %v14534_v47 }
 0x42a   : > { %9837 = vmatpush3.bf16.msra.mxu1 %v12358_v62 }
 0x42b   : > { %9838 = vmatprep.subr.bf16.mxu1 %v14534_v47 }
 0x42d   : > { %8557 = vmatmul.mubr.f32.vlgmr.msra.gmra.mrb[4].mxu1 %v3934_v34  ;;  %v4553_v34 = vld [vmem:[#allocation11 + $0x20] sm:$0xff] }
 0x42e   : > { %9840 = vmatpush3.bf16.msra.mxu1 %v12515_v22  ;;  %8591 = vmatprep.mubr.msk.f32.mxu1 %vm10929_vm0, %v14535_v37  ;;  %v12875_v22 = vld [vmem:[#allocation11 + $0x80] sm:$0xff] }
 0x42f   : > { %9841 = vmatprep.subr.bf16.mxu1 %v14534_v47  ;;  %v14337_v11 = vand.u32 4294901760, %v12875_v22 }
 0x432   : > { %9843 = vmatpush3.bf16.msra.mxu1 %v12541_v55  ;;  %v12877_v55 = vld [vmem:[#allocation11 + $0x88] sm:$0xff] }
 0x433   : > { %9844 = vmatprep.subr.bf16.mxu1 %v14534_v47  ;;  %v14336_v18 = vand.u32 4294901760, %v12877_v55 }
 0x436   : > { %9846 = vmatpush3.bf16.msra.mxu1 %v12557_v15  ;;  %v4567_v15 = vld [vmem:[#allocation11 + $0x90] sm:$0xff] }
 0x437   : > { %9847 = vmatprep.subr.bf16.mxu1 %v14534_v47  ;;  %v4652_v49 = vand.u32 4294901760, %v4567_v15 }
 0x439   : > { %v12904_v29 = vsub.f32 %v4567_v15, %v4652_v49 }
 0x43a   : > { %9849 = vmatpush3.bf16.msra.mxu1 %v12572_v31  ;;  %v12888_v31 = vpack.c.bf16 %v14336_v18, %v14337_v11  ;;  %v4556_v18 = vld [vmem:[#allocation11 + $0x38] sm:$0xff] }
 0x43b   : > { %9850 = vmatprep.subr.bf16.mxu1 %v14534_v47 }
 0x43c   : > { %14698 = vst [vmem:[#allocation24_spill] sm:$0xff] %v12888_v31  ;;  %9959 = vmatprep.subr.bf16.mxu0 %v12888_v31 }
 0x43e   : > { %9852 = vmatpush3.bf16.msra.mxu1 %v12578_v12 }
 0x43f   : > { %9853 = vmatprep.subr.bf16.mxu1 %v14534_v47 }
 0x442   : > { %9855 = vmatpush3.bf16.msra.mxu1 %v12382_v39  ;;  %v4601_v39 = vand.u32 4294901760, %v4550_v0 }
 0x443   : > { %9856 = vmatprep.subr.bf16.mxu1 %v14534_v47 }
 0x444   : > { %v12890_v56 = vpack.c.bf16 %v4601_v39, %v4598_v3  ;;  %v12894_v12 = vsub.f32 %v4550_v0, %v4601_v39  ;;  %v4610_v3 = vand.u32 4294901760, %v4553_v34  ;;  %v4613_v39 = vand.u32 4294901760, %v4554_v52 }
 0x446   : > { %9858 = vmatpush3.bf16.msra.mxu1 %v12402_v4  ;;  %v4568_v4 = vld [vmem:[#allocation11 + $0x98] sm:$0xff]  ;;  %14699 = vst [vmem:[#allocation55_spill] sm:$0xff] %v12890_v56  ;;  %9961 = vmatpush3.bf16.msra.mxu0 %v12890_v56  ;;  %v12924_v63 = vsub.f32 %v4553_v34, %v4610_v3 }
 0x447   : > { %9859 = vmatprep.subr.bf16.mxu1 %v14534_v47  ;;  %v4655_v2 = vand.u32 4294901760, %v4568_v4 }
 0x449   : > { %v12902_v20 = vpack.c.bf16 %v4655_v2, %v4652_v49  ;;  %v12906_v19 = vsub.f32 %v4568_v4, %v4655_v2  ;;  %v12926_v49 = vsub.f32 %v4554_v52, %v4613_v39  ;;  %v4572_v2 = vld [vmem:[#allocation11 + $0xb8] sm:$0xff] }
 0x44a   : > { %9861 = vmatpush3.bf16.msra.mxu1 %v12404_v8  ;;  %v4551_v8 = vld [vmem:[#allocation11 + $0x10] sm:$0xff] }
 0x44b   : > { %9862 = vmatprep.subr.bf16.mxu1 %v14534_v47  ;;  %v4604_v30 = vand.u32 4294901760, %v4551_v8  ;;  %14700 = vst [vmem:[#allocation23_spill] sm:$0xff] %v12902_v20  ;;  %9963 = vmatprep.subr.bf16.mxu0 %v12902_v20  ;;  %v4562_v20 = vld [vmem:[#allocation11 + $0x68] sm:$0xff] }
 0x44d   : > { %8592 = vmatmul.mubr.f32.vlgmr.msra.gmra.mrb[4].mxu1 %v12840_v53  ;;  %v12908_v26 = vsub.f32 %v4551_v8, %v4604_v30  ;;  %v12913_v0 = vpack.c.bf16 %v4607_v57, %v4604_v30  ;;  %v12921_v8 = vsub.f32 %v4570_v25, %v4661_v16  ;;  %v4667_v57 = vand.u32 4294901760, %v4572_v2 }
 0x44e   : > { %9864 = vmatpush3.bf16.msra.mxu1 %v12598_v23  ;;  %8626 = vmatprep.mubr.msk.f32.mxu1 %vm10929_vm0, %v14535_v37  ;;  %v4569_v23 = vld [vmem:[#allocation11 + $0xa0] sm:$0xff]  ;;  %v4616_v25 = vand.u32 4294901760, %v4555_v50 }
 0x44f   : > { %9865 = vmatprep.subr.bf16.mxu1 %v14534_v47  ;;  %v4658_v14 = vand.u32 4294901760, %v4569_v23  ;;  %14701 = vst [vmem:[#allocation26_spill] sm:$0xff] %v12913_v0  ;;  %9965 = vmatpush3.bf16.msra.mxu0 %v12913_v0  ;;  %v12937_v52 = vsub.f32 %v4572_v2, %v4667_v57  ;;  %v4622_v2 = vand.u32 4294901760, %v4557_v6  ;;  %v4561_v0 = vld [vmem:[#allocation11 + $0x60] sm:$0xff] }
 0x450   : > { %v12940_v11 = vsub.f32 %v4555_v50, %v4616_v25 }
 0x451   : > { %v12917_v15 = vpack.c.bf16 %v4661_v16, %v4658_v14  ;;  %v12919_v4 = vsub.f32 %v4569_v23, %v4658_v14  ;;  %v12930_v23 = vpack.c.bf16 %v4613_v39, %v4610_v3  ;;  %v4619_v14 = vand.u32 4294901760, %v4556_v18 }
 0x452   : > { %9867 = vmatpush3.bf16.msra.mxu1 %v12608_v48  ;;  %v4571_v48 = vld [vmem:[#allocation11 + $0xb0] sm:$0xff]  ;;  %v4670_v3 = vand.u32 4294901760, %v4573_v41  ;;  %v12956_v10 = vsub.f32 %v4557_v6, %v4622_v2 }
 0x453   : > { %9868 = vmatprep.subr.bf16.mxu1 %v14534_v47  ;;  %14702 = vst [vmem:[#allocation53_spill] sm:$0xff] %v12917_v15  ;;  %9967 = vmatprep.subr.bf16.mxu0 %v12917_v15  ;;  %v4664_v30 = vand.u32 4294901760, %v4571_v48  ;;  %14703 = vst [vmem:[#allocation54_spill] sm:$0xff] %v12930_v23  ;;  %v12942_v61 = vsub.f32 %v4556_v18, %v4619_v14  ;;  %v4560_v15 = vld [vmem:[#allocation11 + $0x58] sm:$0xff] }
 0x454   : > { %9969 = vmatpush3.bf16.msra.mxu0 %v12930_v23  ;;  %v12951_v18 = vsub.f32 %v4573_v41, %v4670_v3  ;;  %v4559_v23 = vld [vmem:[#allocation11 + $0x50] sm:$0xff] }
 0x455   : > { %v12933_v16 = vpack.c.bf16 %v4667_v57, %v4664_v30  ;;  %v12935_v34 = vsub.f32 %v4571_v48, %v4664_v30  ;;  %v12946_v48 = vpack.c.bf16 %v4619_v14, %v4616_v25  ;;  %v4625_v30 = vand.u32 4294901760, %v4558_v43 }
 0x456   : > { %9870 = vmatpush3.bf16.msra.mxu1 %v12620_v51  ;;  %v4574_v51 = vld [vmem:[#allocation11 + $0xc8] sm:$0xff] }
 0x457   : > { %9871 = vmatprep.subr.bf16.mxu1 %v14534_v47  ;;  %14704 = vst [vmem:[#allocation33_spill] sm:$0xff] %v12933_v16  ;;  %9971 = vmatprep.subr.bf16.mxu0 %v12933_v16  ;;  %v4673_v39 = vand.u32 4294901760, %v4574_v51  ;;  %14705 = vst [vmem:[#allocation35_spill] sm:$0xff] %v12946_v48  ;;  %v12958_v17 = vsub.f32 %v4558_v43, %v4625_v30  ;;  %v4575_v16 = vld [vmem:[#allocation11 + $0xd0] sm:$0xff]  ;;  %v12962_v41 = vpack.c.bf16 %v4625_v30, %v4622_v2  ;;  %v4577_v43 = vld [vmem:[#allocation11 + $0xe0] sm:$0xff] }
 0x458   : > { %9973 = vmatpush3.bf16.msra.mxu0 %v12946_v48  ;;  %v4676_v25 = vand.u32 4294901760, %v4575_v16  ;;  %v4634_v2 = vand.u32 4294901760, %v4561_v0  ;;  %v4637_v30 = vand.u32 4294901760, %v4562_v20 }
 0x459   : > { %v12949_v50 = vpack.c.bf16 %v4673_v39, %v4670_v3  ;;  %v12953_v57 = vsub.f32 %v4574_v51, %v4673_v39  ;;  %14707 = vst [vmem:[#allocation29_spill] sm:$0xff] %v12962_v41  ;;  %v4628_v51 = vand.u32 4294901760, %v4559_v23  ;;  %v4631_v3 = vand.u32 4294901760, %v4560_v15  ;;  %v4578_v39 = vld [vmem:[#allocation11 + $0xe8] sm:$0xff] }
 0x45a   : > { %9873 = vmatpush3.bf16.msra.mxu1 %v12628_v27  ;;  %v4576_v27 = vld [vmem:[#allocation11 + $0xd8] sm:$0xff]  ;;  %v4685_v48 = vand.u32 4294901760, %v4578_v39  ;;  %v12988_v36 = vpack.c.bf16 %v4637_v30, %v4634_v2  ;;  %v12998_v13 = vsub.f32 %v4575_v16, %v4676_v25  ;;  %v13012_v44 = vsub.f32 %v4561_v0, %v4634_v2 }
 0x45b   : > { %9874 = vmatprep.subr.bf16.mxu1 %v14534_v47  ;;  %14706 = vst [vmem:[#allocation27_spill] sm:$0xff] %v12949_v50  ;;  %9975 = vmatprep.subr.bf16.mxu0 %v12949_v50  ;;  %v4679_v14 = vand.u32 4294901760, %v4576_v27  ;;  %v4682_v50 = vand.u32 4294901760, %v4577_v43  ;;  %v13004_v62 = vsub.f32 %v4560_v15, %v4631_v3  ;;  %v14405_v0 = vand.u32 4294901760, %v12892_v58 }
 0x45c   : > { %9977 = vmatpush3.bf16.msra.mxu0 %v12962_v41  ;;  %v14711_v41 = vand.u32 4294901760, %v12875_v22  ;;  %14713 = vst [vmem:[#allocation38_spill] sm:$0xff] %v12988_v36 }
 0x45d   : > { %v12965_v6 = vpack.c.bf16 %v4679_v14, %v4676_v25  ;;  %v12973_v56 = vpack.c.bf16 %v4685_v48, %v4682_v50  ;;  %v13000_v60 = vsub.f32 %v4576_v27, %v4679_v14  ;;  %v13008_v7 = vsub.f32 %v4577_v43, %v4682_v50 }
 0x45e   : > { %9876 = vmatpush3.bf16.msra.mxu1 %v12636_v59  ;;  %v12970_v59 = vpack.c.bf16 %v4631_v3, %v4628_v51  ;;  %v12978_v31 = vsub.f32 %v12875_v22, %v14711_v41  ;;  %v4640_v22 = vand.u32 4294901760, %v4563_v46  ;;  %v4643_v41 = vand.u32 4294901760, %v4564_v32 }
 0x45f   : > { %9877 = vmatprep.subr.bf16.mxu1 %v14534_v47  ;;  %14708 = vst [vmem:[#allocation36_spill] sm:$0xff] %v12965_v6  ;;  %9979 = vmatprep.subr.bf16.mxu0 %v12965_v6  ;;  %14710 = vst [vmem:[#allocation37_spill] sm:$0xff] %v12973_v56  ;;  %v14712_v6 = vand.u32 4294901760, %v12877_v55  ;;  %v4713_v50 = vsub.f32 %v12892_v58, %v14405_v0  ;;  %v14393_v3 = vand.u32 4294901760, %v12908_v26  ;;  %v14391_v43 = vand.u32 4294901760, %v12910_v54 }
 0x460   : > { %14709 = vst [vmem:[#allocation32_spill] sm:$0xff] %v12970_v59  ;;  %9981 = vmatpush3.bf16.msra.mxu0 %v12970_v59  ;;  %v13021_v15 = vsub.f32 %v4563_v46, %v4640_v22  ;;  %v13023_v27 = vsub.f32 %v4564_v32, %v4643_v41  ;;  %v14399_v46 = vand.u32 4294901760, %v12904_v29  ;;  %v14397_v32 = vand.u32 4294901760, %v12906_v19 }
 0x461   : > { %v12983_v53 = vsub.f32 %v12877_v55, %v14712_v6  ;;  %9983 = vmatprep.subr.bf16.mxu0 %v12973_v56  ;;  %v12994_v6 = vpack.c.bf16 %v4643_v41, %v4640_v22  ;;  %v13014_v56 = vsub.f32 %v4562_v20, %v4637_v30  ;;  %v4714_v2 = vand.u32 4294901760, %v4713_v50 }
 0x462   : > { %9879 = vmatpush3.bf16.msra.mxu1 %v12408_v5  ;;  %v4579_v5 = vld [vmem:[#allocation11 + $0xf0] sm:$0xff]  ;;  %14714 = vst [vmem:[#allocation39_spill] sm:$0xff] %v13021_v15  ;;  %v4839_v14 = vsub.f32 %v12904_v29, %v14399_v46  ;;  %v4727_v41 = vsub.f32 %v12908_v26, %v14393_v3 }
 0x463   : > { %9880 = vmatprep.subr.bf16.mxu1 %v14534_v47  ;;  %v4688_v1 = vand.u32 4294901760, %v4579_v5  ;;  %v14409_v59 = vand.u32 4294901760, %v12983_v53 }
 0x464   : > { %9985 = vmatpush3.bf16.msra.mxu0 %v12988_v36  ;;  %v13010_v36 = vsub.f32 %v4578_v39, %v4685_v48 }
 0x465   : > { %v12991_v55 = vpack.c.bf16 %v4691_v42, %v4688_v1  ;;  %v13017_v16 = vsub.f32 %v4579_v5, %v4688_v1  ;;  %v4832_v20 = vsub.f32 %v12983_v53, %v14409_v59  ;;  %v14404_v1 = vand.u32 4294901760, %v12894_v12 }
 0x466   : > { %9882 = vmatpush3.bf16.msra.mxu1 %v12412_v45  ;;  %v13002_v45 = vsub.f32 %v4559_v23, %v4628_v51  ;;  %v13019_v23 = vsub.f32 %v4580_v40, %v4691_v42  ;;  %v4846_v51 = vsub.f32 %v12906_v19, %v14397_v32  ;;  %v4840_v5 = vand.u32 4294901760, %v4839_v14 }
 0x467   : > { %9883 = vmatprep.subr.bf16.mxu1 %v14534_v47  ;;  %9987 = vmatprep.subr.bf16.mxu0 %v12991_v55  ;;  %v4833_v40 = vand.u32 4294901760, %v4832_v20  ;;  %v4720_v25 = vsub.f32 %v12894_v12, %v14404_v1  ;;  %v14392_v20 = vand.u32 4294901760, %v12919_v4 }
 0x468   : > { %9989 = vmatpush3.bf16.msra.mxu0 %v12994_v6  ;;  %v4847_v22 = vand.u32 4294901760, %v4846_v51  ;;  %v14396_v51 = vand.u32 4294901760, %v12926_v49 }
 0x469   : > { %v4721_v30 = vand.u32 4294901760, %v4720_v25  ;;  %v4728_v25 = vand.u32 4294901760, %v4727_v41  ;;  %v14400_v41 = vand.u32 4294901760, %v12937_v52 }
 0x46a   : > { %9885 = vmatpush3.bf16.msra.mxu1 %v12416_v9  ;;  %v14715_v9 = vand.u32 4294901760, %v12978_v31  ;;  %v13068_v50 = vpack.c.bf16 %v4847_v22, %v4840_v5  ;;  %v4748_v5 = vsub.f32 %v12926_v49, %v14396_v51  ;;  %v14398_v22 = vand.u32 4294901760, %v12935_v34 }
 0x46b   : > { %9886 = vmatprep.subr.bf16.mxu1 %v14534_v47  ;;  %v14402_v51 = vand.u32 4294901760, %v12942_v61 }
 0x46c   : > { %v4825_v48 = vsub.f32 %v12978_v31, %v14715_v9  ;;  %v4734_v9 = vsub.f32 %v12910_v54, %v14391_v43 }
 0x46d   : > { %8627 = vmatmul.mubr.f32.vlgmr.msra.gmra.mrb[4].mxu1 %v12846_v38 }
 0x46e   : > { %9888 = vmatpush3.bf16.msra.mxu1 %v12272_v21  ;;  %8661 = vmatprep.mubr.msk.f32.mxu1 %vm10929_vm0, %v14535_v37  ;;  %v4826_v42 = vand.u32 4294901760, %v4825_v48  ;;  %v13062_v48 = vpack.c.bf16 %v4721_v30, %v4714_v2  ;;  %v4735_v14 = vand.u32 4294901760, %v4734_v9 }
 0x46f   : > { %9889 = vmatprep.subr.bf16.mxu1 %v14534_v47 }
 0x470   : > { %v9990_v39 = vpack.c.bf16 %v4833_v40, %v4826_v42  ;;  %v14394_v42 = vand.u32 4294901760, %v12921_v8  ;;  %v14395_v40 = vand.u32 4294901760, %v12924_v63  ;;  %v13080_v43 = vpack.c.bf16 %v4735_v14, %v4728_v25 }
 0x471   : > { %v4867_v25 = vsub.f32 %v12935_v34, %v14398_v22  ;;  %v4874_v14 = vsub.f32 %v12937_v52, %v14400_v41  ;;  %v4762_v22 = vsub.f32 %v12942_v61, %v14402_v51  ;;  %v14403_v41 = vand.u32 4294901760, %v12951_v18 }
 0x472   : > { %9891 = vmatpush3.bf16.msra.mxu1 %v12290_v33  ;;  %9991 = vmatprep.subr.bf16.mxu0 %v9990_v39  ;;  %v4853_v39 = vsub.f32 %v12919_v4, %v14392_v20  ;;  %v4860_v2 = vsub.f32 %v12921_v8, %v14394_v42  ;;  %v4741_v30 = vsub.f32 %v12924_v63, %v14395_v40  ;;  %v14401_v42 = vand.u32 4294901760, %v12940_v11 }
 0x473   : > { %9892 = vmatprep.subr.bf16.mxu1 %v14534_v47  ;;  %v4749_v40 = vand.u32 4294901760, %v4748_v5  ;;  %v4875_v5 = vand.u32 4294901760, %v4874_v14 }
 0x474   : > { %v4854_v9 = vand.u32 4294901760, %v4853_v39  ;;  %v4861_v20 = vand.u32 4294901760, %v4860_v2  ;;  %v4742_v3 = vand.u32 4294901760, %v4741_v30  ;;  %v4755_v39 = vsub.f32 %v12940_v11, %v14401_v42 }
 0x475   : > { %v4868_v30 = vand.u32 4294901760, %v4867_v25  ;;  %v4881_v25 = vsub.f32 %v12951_v18, %v14403_v41 }
 0x476   : > { %9894 = vmatpush3.bf16.msra.mxu1 %v12310_v24  ;;  %v13097_v32 = vpack.c.bf16 %v4861_v20, %v4854_v9  ;;  %v13102_v2 = vpack.c.bf16 %v4749_v40, %v4742_v3  ;;  %v4756_v46 = vand.u32 4294901760, %v4755_v39  ;;  %v14406_v20 = vand.u32 4294901760, %v12953_v57 }
 0x477   : > { %9895 = vmatprep.subr.bf16.mxu1 %v14534_v47  ;;  %v14407_v9 = vand.u32 4294901760, %v12956_v10  ;;  %v13112_v42 = vpack.c.bf16 %v4875_v5, %v4868_v30  ;;  %v4763_v3 = vand.u32 4294901760, %v4762_v22  ;;  %v14408_v40 = vand.u32 4294901760, %v12958_v17 }
 0x478   : > { %14716 = vst [vmem:[#allocation40_spill] sm:$0xff] %v13097_v32  ;;  %14717 = vst [vmem:[#allocation41_spill] sm:$0xff] %v13102_v2  ;;  %v4888_v14 = vsub.f32 %v12953_v57, %v14406_v20  ;;  %v14410_v30 = vand.u32 4294901760, %v12998_v13  ;;  %v14411_v5 = vand.u32 4294901760, %v13000_v60  ;;  %v4882_v41 = vand.u32 4294901760, %v4881_v25  ;;  %v14726_v2 = vld [vmem:[#allocation57_spill] sm:$0xff] }
 0x479   : > { %14718 = vst [vmem:[#allocation42_spill] sm:$0xff] %v13112_v42  ;;  %v4769_v39 = vsub.f32 %v12956_v10, %v14407_v9  ;;  %v13124_v51 = vpack.c.bf16 %v4763_v3, %v4756_v46  ;;  %v4776_v22 = vsub.f32 %v12958_v17, %v14408_v40  ;;  %v14412_v20 = vand.u32 4294901760, %v13002_v45 }
 0x47a   : > { %9897 = vmatpush3.bf16.msra.mxu1 %v12326_v28  ;;  %v4889_v1 = vand.u32 4294901760, %v4888_v14  ;;  %v4895_v46 = vsub.f32 %v12998_v13, %v14410_v30  ;;  %v4902_v3 = vsub.f32 %v13000_v60, %v14411_v5  ;;  %v14413_v40 = vand.u32 4294901760, %v13004_v62 }
 0x47b   : > { %9898 = vmatprep.subr.bf16.mxu1 %v14534_v47  ;;  %14719 = vst [vmem:[#allocation43_spill] sm:$0xff] %v13124_v51  ;;  %v4770_v0 = vand.u32 4294901760, %v4769_v39  ;;  %v4777_v9 = vand.u32 4294901760, %v4776_v22  ;;  %v4783_v25 = vsub.f32 %v13002_v45, %v14412_v20  ;;  %v14722_v51 = vld [vmem:[#allocation34_spill] sm:$0xff]  ;;  %v14414_v5 = vand.u32 4294901760, %v13008_v7 }
 0x47c   : > { %v13141_v59 = vpack.c.bf16 %v4889_v1, %v4882_v41  ;;  %v4896_v39 = vand.u32 4294901760, %v4895_v46  ;;  %v4903_v22 = vand.u32 4294901760, %v4902_v3  ;;  %v4790_v30 = vsub.f32 %v13004_v62, %v14413_v40 }
 0x47d   : > { %v13146_v14 = vpack.c.bf16 %v4777_v9, %v4770_v0  ;;  %v4784_v42 = vand.u32 4294901760, %v4783_v25  ;;  %v14415_v1 = vand.u32 4294901760, %v13010_v36  ;;  %v14416_v41 = vand.u32 4294901760, %v13012_v44 }
 0x47e   : > { %9900 = vmatpush3.bf16.msra.mxu1 %v12338_v35  ;;  %14720 = vst [vmem:[#allocation44_spill] sm:$0xff] %v13141_v59  ;;  %v13156_v20 = vpack.c.bf16 %v4903_v22, %v4896_v39  ;;  %v4791_v0 = vand.u32 4294901760, %v4790_v30  ;;  %v14417_v9 = vand.u32 4294901760, %v13014_v56  ;;  %v4909_v46 = vsub.f32 %v13008_v7, %v14414_v5 }
 0x47f   : > { %9901 = vmatprep.subr.bf16.mxu1 %v14534_v47  ;;  %14721 = vst [vmem:[#allocation45_spill] sm:$0xff] %v13146_v14  ;;  %v4916_v3 = vsub.f32 %v13010_v36, %v14415_v1  ;;  %v4797_v25 = vsub.f32 %v13012_v44, %v14416_v41  ;;  %v14418_v39 = vand.u32 4294901760, %v13017_v16  ;;  %v14419_v22 = vand.u32 4294901760, %v13019_v23 }
 0x480   : > { %14723 = vst [vmem:[#allocation46_spill] sm:$0xff] %v13156_v20  ;;  %v13168_v40 = vpack.c.bf16 %v4791_v0, %v4784_v42  ;;  %v4804_v30 = vsub.f32 %v13014_v56, %v14417_v9  ;;  %v14725_v20 = vld [vmem:[#allocation56_spill] sm:$0xff]  ;;  %v4910_v5 = vand.u32 4294901760, %v4909_v46  ;;  %v14420_v1 = vand.u32 4294901760, %v13021_v15 }
 0x481   : > { %v4917_v14 = vand.u32 4294901760, %v4916_v3  ;;  %v4798_v59 = vand.u32 4294901760, %v4797_v25  ;;  %v4923_v42 = vsub.f32 %v13017_v16, %v14418_v39  ;;  %v4930_v0 = vsub.f32 %v13019_v23, %v14419_v22 }
 0x482   : > { %9903 = vmatpush3.bf16.msra.mxu1 %v14722_v51  ;;  %14724 = vst [vmem:[#allocation47_spill] sm:$0xff] %v13168_v40  ;;  %v4805_v41 = vand.u32 4294901760, %v4804_v30  ;;  %v14421_v9 = vand.u32 4294901760, %v13023_v27  ;;  %v4811_v46 = vsub.f32 %v13021_v15, %v14420_v1 }
 0x483   : > { %9904 = vmatprep.subr.bf16.mxu1 %v14534_v47  ;;  %v13185_v40 = vpack.c.bf16 %v4917_v14, %v4910_v5  ;;  %v4924_v25 = vand.u32 4294901760, %v4923_v42  ;;  %v4931_v30 = vand.u32 4294901760, %v4930_v0  ;;  %v14727_v14 = vand.u32 4294901760, %v12846_v38  ;;  %v14729_v0 = vld [vmem:[#allocation49_spill] sm:$0xff]  ;;  %v14751_v38 = vld [vmem:[#allocation36_spill] sm:$0xff] }
 0x484   : > { %v13190_v3 = vpack.c.bf16 %v4805_v41, %v4798_v59  ;;  %v4818_v39 = vsub.f32 %v13023_v27, %v14421_v9  ;;  %v4812_v32 = vand.u32 4294901760, %v4811_v46  ;;  %v14728_v59 = vld [vmem:[#allocation60_spill] sm:$0xff] }
 0x485   : > { %v13197_v22 = vpack.c.bf16 %v4931_v30, %v4924_v25  ;;  %v14731_v30 = vld [vmem:[#allocation62_spill] sm:$0xff]  ;;  %v14733_v9 = vld [vmem:[#allocation64_spill] sm:$0xff]  ;;  %v14750_v25 = vld [vmem:[#allocation31_spill] sm:$0xff] }
 0x486   : > { %9906 = vmatpush3.bf16.msra.mxu1 %v14725_v20  ;;  %v4819_v5 = vand.u32 4294901760, %v4818_v39  ;;  %v14730_v39 = vld [vmem:[#allocation61_spill] sm:$0xff] }
 0x487   : > { %9907 = vmatprep.subr.bf16.mxu1 %v14534_v47 }
 0x488   : > { %v13201_v1 = vpack.c.bf16 %v4819_v5, %v4812_v32  ;;  %v14734_v5 = vld [vmem:[#allocation65_spill] sm:$0xff] }
 0x48a   : > { %9909 = vmatpush3.bf16.msra.mxu1 %v14726_v2 }
 0x48b   : > { %9910 = vmatprep.subr.bf16.mxu1 %v14534_v47 }
 0x48d   : > { %8662 = vmatmul.mubr.f32.vlgmr.msra.gmra.mrb[4].mxu1 %v14727_v14  ;;  %v14748_v14 = vld [vmem:[#allocation30_spill] sm:$0xff] }
 0x48e   : > { %9912 = vmatpush3.bf16.msra.mxu1 %v14728_v59  ;;  %8696 = vmatprep.mubr.msk.f32.mxu1 %vm10929_vm0, %v14535_v37  ;;  %v14732_v59 = vld [vmem:[#allocation63_spill] sm:$0xff] }
 0x48f   : > { %9913 = vmatprep.subr.bf16.mxu1 %v14534_v47 }
 0x492   : > { %9915 = vmatpush3.bf16.msra.mxu1 %v14729_v0  ;;  %v14735_v0 = vld [vmem:[#allocation66_spill] sm:$0xff] }
 0x493   : > { %9916 = vmatprep.subr.bf16.mxu1 %v14534_v47 }
 0x496   : > { %9918 = vmatpush3.bf16.msra.mxu1 %v14730_v39 }
 0x497   : > { %9919 = vmatprep.subr.bf16.mxu1 %v14534_v47 }
 0x49a   : > { %9921 = vmatpush3.bf16.msra.mxu1 %v14731_v30  ;;  %v14736_v30 = vld [vmem:[#allocation25_spill] sm:$0xff] }
 0x49b   : > { %9922 = vmatprep.subr.bf16.mxu1 %v14534_v47 }
 0x49e   : > { %9924 = vmatpush3.bf16.msra.mxu1 %v14732_v59  ;;  %v14749_v59 = vld [vmem:[#allocation29_spill] sm:$0xff] }
 0x49f   : > { %9925 = vmatprep.subr.bf16.mxu1 %v14534_v47 }
 0x4a2   : > { %9927 = vmatpush3.bf16.msra.mxu1 %v14733_v9 }
 0x4a3   : > { %9928 = vmatprep.subr.bf16.mxu1 %v14534_v47 }
 0x4a6   : > { %9930 = vmatpush3.bf16.msra.mxu1 %v14734_v5 }
 0x4a7   : > { %9931 = vmatprep.subr.bf16.mxu1 %v14534_v47 }
 0x4aa   : > { %9933 = vmatpush3.bf16.msra.mxu1 %v14735_v0  ;;  %v14746_v0 = vld [vmem:[#allocation35_spill] sm:$0xff] }
 0x4ab   : > { %9934 = vmatprep.subr.bf16.mxu1 %v14534_v47 }
 0x4ad   : > { %8697 = vmatmul.mubr.f32.vlgmr.msra.gmra.mrb[4].mxu1 %v14736_v30 }
 0x4ae   : > { %9936 = vmatpush3.bf16.msra.mxu1 %v12272_v21  ;;  %8731 = vmatprep.mubr.msk.f32.mxu1 %vm10929_vm0, %v14535_v37  ;;  %v14737_v21 = vld [vmem:[#allocation24_spill] sm:$0xff] }
 0x4af   : > { %9937 = vmatprep.subr.bf16.mxu1 %v14534_v47 }
 0x4b2   : > { %9939 = vmatpush3.bf16.msra.mxu1 %v12290_v33  ;;  %v14738_v33 = vld [vmem:[#allocation55_spill] sm:$0xff] }
 0x4b3   : > { %9940 = vmatprep.subr.bf16.mxu1 %v14534_v47 }
 0x4b6   : > { %9942 = vmatpush3.bf16.msra.mxu1 %v12310_v24  ;;  %v14739_v24 = vld [vmem:[#allocation23_spill] sm:$0xff] }
 0x4b7   : > { %9943 = vmatprep.subr.bf16.mxu1 %v14534_v47 }
 0x4ba   : > { %9945 = vmatpush3.bf16.msra.mxu1 %v12326_v28  ;;  %v14740_v28 = vld [vmem:[#allocation26_spill] sm:$0xff] }
 0x4bb   : > { %9946 = vmatprep.subr.bf16.mxu1 %v14534_v47 }
 0x4be   : > { %9948 = vmatpush3.bf16.msra.mxu1 %v12338_v35  ;;  %v14741_v35 = vld [vmem:[#allocation53_spill] sm:$0xff] }
 0x4bf   : > { %9949 = vmatprep.subr.bf16.mxu1 %v14534_v47 }
 0x4c2   : > { %9951 = vmatpush3.bf16.msra.mxu1 %v14722_v51  ;;  %v14742_v51 = vld [vmem:[#allocation54_spill] sm:$0xff] }
 0x4c3   : > { %9952 = vmatprep.subr.bf16.mxu1 %v14534_v47 }
 0x4c6   : > { %9954 = vmatpush3.bf16.msra.mxu1 %v14725_v20  ;;  %v13281_v20 = vld [vmem:[%s14178_s6] sm:$0x7] }
 0x4c7   : > { %9955 = vmatprep.subr.bf16.mxu1 %v14534_v47  ;;  %14743 = vst [vmem:[#allocation48_spill] sm:$0xff] %v13281_v20  ;;  %v13285_v5 = vmul.f32 2.0, %v13281_v20  ;;  %v4531_v39 = vrot.slane %v13281_v20, %v14748_v14  ;;  %v4535_v32 = vrot.slane %v13281_v20, %v14750_v25 }
 0x4c9   : > { %14745 = vst [vmem:[#allocation50_spill] sm:$0xff] %v13285_v5  ;;  %v4496_v9 = vrot.slane %v13285_v5, %v14748_v14  ;;  %v4500_v46 = vrot.slane %v13285_v5, %v14750_v25  ;;  %v14753_v14 = vld [vmem:[#allocation58_spill] sm:$0xff]  ;;  %v14755_v5 = vld [vmem:[#allocation59_spill] sm:$0xff] }
 0x4ca   : > { %9957 = vmatpush3.bf16.msra.mxu1 %v14726_v2  ;;  %v14744_v2 = vld [vmem:[#allocation33_spill] sm:$0xff] }
 0x4cb   : > { %10119 = vmatprep.subr.bf16.mxu1 %v14737_v21  ;;  %v14754_v21 = vld [vmem:[#allocation37_spill] sm:$0xff] }
 0x4cd   : > { %8732 = vmatmul.mubr.f32.vlgmr.msra.gmra.mrb[4].mxu1 %v14736_v30  ;;  %v14747_v30 = vld [vmem:[#allocation27_spill] sm:$0xff] }
 0x4ce   : > { %10121 = vmatpush3.bf16.msra.mxu1 %v14738_v33 }
 0x4cf   : > { %10123 = vmatprep.subr.bf16.mxu1 %v14739_v24  ;;  %v14752_v24 = vld [vmem:[#allocation32_spill] sm:$0xff] }
 0x4d2   : > { %10125 = vmatpush3.bf16.msra.mxu1 %v14740_v28 }
 0x4d3   : > { %10127 = vmatprep.subr.bf16.mxu1 %v14741_v35 }
 0x4d6   : > { %10129 = vmatpush3.bf16.msra.mxu1 %v14742_v51 }
 0x4d7   : > { %10131 = vmatprep.subr.bf16.mxu1 %v14744_v2 }
 0x4da   : > { %10133 = vmatpush3.bf16.msra.mxu1 %v14746_v0 }
 0x4db   : > { %10135 = vmatprep.subr.bf16.mxu1 %v14747_v30 }
 0x4de   : > { %10137 = vmatpush3.bf16.msra.mxu1 %v14749_v59 }
 0x4df   : > { %10139 = vmatprep.subr.bf16.mxu1 %v14751_v38 }
 0x4e0   : > { %v3204_v42 = vpop.f32.mrb[2].mxu1 }
 0x4e1   : > { %v4508_v41 = vsub.f32 %v3204_v42, %v4496_v9  ;;  %v4543_v0 = vsub.f32 %v3204_v42, %v4531_v39  ;;  %v8313_v30 = vpop.f32.mrb[3].mxu1  ;;  %v3845_v2 = vpop.f32.mrb[4].mxu0  ;;  %v14756_v42 = vld [vmem:[#allocation38_spill] sm:$0xff] }
 0x4e2   : > { %v4509_v51 = vsub.f32 %v3845_v2, %v4500_v46  ;;  %v4544_v35 = vsub.f32 %v3845_v2, %v4535_v32  ;;  %v8523_v28 = vpop.f32.mrb[5].mxu0  ;;  %10141 = vmatpush3.bf16.msra.mxu1 %v14752_v24  ;;  %v14759_v2 = vld [vmem:[#allocation42_spill] sm:$0xff]  ;;  %v14762_v30 = vld [vmem:[#allocation45_spill] sm:$0xff] }
 0x4e3   : > { %v4511_v59 = vmul.f32 %v14753_v14, %v4508_v41  ;;  %v4546_v33 = vmul.f32 0.015625, %v4543_v0  ;;  %10143 = vmatprep.subr.bf16.mxu1 %v14754_v21  ;;  %v14761_v0 = vld [vmem:[#allocation44_spill] sm:$0xff]  ;;  %v14763_v14 = vld [vmem:[#allocation46_spill] sm:$0xff] }
 0x4e4   : > { %v4512_v15 = vmul.f32 %v14755_v5, %v4509_v51  ;;  %v4547_v25 = vmul.f32 0.015625, %v4544_v35  ;;  %v14757_v35 = vld [vmem:[#allocation40_spill] sm:$0xff]  ;;  %v14758_v51 = vld [vmem:[#allocation41_spill] sm:$0xff]  ;;  %v14760_v5 = vld [vmem:[#allocation43_spill] sm:$0xff] }
 0x4e5   : > { %v13303_v20 = vand.u32 4294901760, %v4546_v33 }
 0x4e6   : > { %v13305_v38 = vand.u32 4294901760, %v4547_v25  ;;  %10145 = vmatpush3.bf16.msra.mxu1 %v14756_v42  ;;  %v13308_v39 = vadd.f32 %v4512_v15, %v4511_v59 }
 0x4e7   : > { %v13311_v32 = vsub.f32 %v4546_v33, %v13303_v20  ;;  %10147 = vmatprep.subr.bf16.mxu1 %v12991_v55 }
 0x4e8   : > { %v4694_v41 = vsub.f32 %v4547_v25, %v13305_v38  ;;  %5452 = vmatprep.mubr.f32.mxu1 %v13305_v38  ;;  %v14771_v25 = vpack.c.bf16 %v12937_v52, %v12935_v34 }
 0x4e9   : > { %v4701_v46 = vand.u32 4294901760, %v13311_v32 }
 0x4ea   : > { %10149 = vmatpush3.bf16.msra.mxu1 %v12994_v6  ;;  %v4695_v9 = vand.u32 4294901760, %v4694_v41 }
 0x4eb   : > { %v4702_v28 = vsub.f32 %v13311_v32, %v4701_v46  ;;  %10294 = vmatprep.subr.bf16.mxu1 %v14534_v47 }
 0x4ec   : > { %v4696_v15 = vsub.f32 %v4694_v41, %v4695_v9 }
 0x4ed   : > { %5454 = vmatmul.mubr.f32.vlgmr.msra.gmra.mrb[6].mxu1 %v13303_v20  ;;  %v4703_v33 = vand.u32 4294901760, %v4702_v28  ;;  %v14773_v28 = vpack.c.bf16 %v12953_v57, %v12951_v18 }
 0x4ee   : > { %v4697_v59 = vand.u32 4294901760, %v4696_v15  ;;  %8976 = vmatprep.mubr.msk.f32.mxu1 %vm10929_vm0, %v14535_v37  ;;  %v14774_v15 = vpack.c.bf16 %v12958_v17, %v12956_v10 }
 0x4f0   : > { %4698 = vmatprep.mubr.f32.mxu0 %v4697_v59  ;;  %v14775_v59 = vpack.c.bf16 %v13000_v60, %v12998_v13 }
 0x4f1   : > { %4704 = vmatmul.mubr.f32.vlgmr.msra.gmra.mrb[6].mxu0 %v4703_v33  ;;  %v14776_v33 = vpack.c.bf16 %v13004_v62, %v13002_v45 }
 0x4f2   : > { %9993 = vmatpush3.bf16.msra.mxu0 %v13062_v48  ;;  %4934 = vmatprep.mubr.f32.mxu0 %v13305_v38  ;;  %v14764_v48 = vld [vmem:[#allocation47_spill] sm:$0xff] }
 0x4f3   : > { %9995 = vmatprep.subr.bf16.mxu0 %v13068_v50  ;;  %v14766_v50 = vpack.c.bf16 %v12894_v12, %v12892_v58 }
 0x4f6   : > { %9997 = vmatpush3.bf16.msra.mxu0 %v13080_v43  ;;  %v14765_v43 = vpack.c.bf16 %v12983_v53, %v12978_v31 }
 0x4f7   : > { %9999 = vmatprep.subr.bf16.mxu0 %v14757_v35  ;;  %v14777_v35 = vpack.c.bf16 %v13010_v36, %v13008_v7 }
 0x4fa   : > { %10001 = vmatpush3.bf16.msra.mxu0 %v14758_v51  ;;  %v14778_v51 = vpack.c.bf16 %v13014_v56, %v13012_v44 }
 0x4fb   : > { %10003 = vmatprep.subr.bf16.mxu0 %v14759_v2  ;;  %v14779_v2 = vpack.c.bf16 %v13019_v23, %v13017_v16 }
 0x4fe   : > { %10005 = vmatpush3.bf16.msra.mxu0 %v14760_v5  ;;  %v14780_v5 = vld [vmem:[#allocation39_spill] sm:$0xff] }
 0x4ff   : > { %10007 = vmatprep.subr.bf16.mxu0 %v14761_v0  ;;  %v14781_v0 = vpack.c.bf16 %v13023_v27, %v14780_v5 }
 0x502   : > { %10009 = vmatpush3.bf16.msra.mxu0 %v14762_v30  ;;  %v14782_v30 = vld [vmem:[#allocation24_spill] sm:$0xff] }
 0x503   : > { %10011 = vmatprep.subr.bf16.mxu0 %v14763_v14  ;;  %v14783_v14 = vld [vmem:[#allocation55_spill] sm:$0xff] }
 0x506   : > { %10013 = vmatpush3.bf16.msra.mxu0 %v14764_v48  ;;  %v14784_v48 = vld [vmem:[#allocation23_spill] sm:$0xff] }
 0x507   : > { %10015 = vmatprep.subr.bf16.mxu0 %v13185_v40  ;;  %v14767_v40 = vpack.c.bf16 %v12906_v19, %v12904_v29 }
 0x50a   : > { %10017 = vmatpush3.bf16.msra.mxu0 %v13190_v3  ;;  %v14770_v3 = vpack.c.bf16 %v12926_v49, %v12924_v63 }
 0x50b   : > { %10019 = vmatprep.subr.bf16.mxu0 %v13197_v22  ;;  %v14768_v22 = vpack.c.bf16 %v12910_v54, %v12908_v26 }
 0x50e   : > { %10021 = vmatpush3.bf16.msra.mxu0 %v13201_v1  ;;  %v14769_v1 = vpack.c.bf16 %v12921_v8, %v12919_v4 }
 0x50f   : > { %10023 = vmatprep.subr.bf16.mxu0 %v14765_v43  ;;  %v14785_v43 = vld [vmem:[#allocation26_spill] sm:$0xff] }
 0x511   : > { %4936 = vmatmul.mubr.f32.vlgmr.msra.gmra.mrb[8].mxu0 %v13303_v20 }
 0x512   : > { %10025 = vmatpush3.bf16.msra.mxu0 %v14766_v50  ;;  %5071 = vmatprep.mubr.f32.mxu0 %v4694_v41  ;;  %v14772_v41 = vpack.c.bf16 %v12942_v61, %v12940_v11  ;;  %v14786_v50 = vld [vmem:[#allocation53_spill] sm:$0xff] }
 0x513   : > { %10027 = vmatprep.subr.bf16.mxu0 %v14767_v40  ;;  %v14787_v40 = vld [vmem:[#allocation54_spill] sm:$0xff] }
 0x516   : > { %10029 = vmatpush3.bf16.msra.mxu0 %v14768_v22  ;;  %v14788_v22 = vld [vmem:[#allocation33_spill] sm:$0xff] }
 0x517   : > { %10031 = vmatprep.subr.bf16.mxu0 %v14769_v1  ;;  %v14789_v1 = vld [vmem:[#allocation35_spill] sm:$0xff] }
 0x51a   : > { %10033 = vmatpush3.bf16.msra.mxu0 %v14770_v3  ;;  %v14790_v3 = vld [vmem:[#allocation27_spill] sm:$0xff] }
 0x51b   : > { %10035 = vmatprep.subr.bf16.mxu0 %v14771_v25  ;;  %v14791_v25 = vld [vmem:[#allocation29_spill] sm:$0xff] }
 0x51e   : > { %10037 = vmatpush3.bf16.msra.mxu0 %v14772_v41  ;;  %v14792_v41 = vld [vmem:[#allocation36_spill] sm:$0xff] }
 0x51f   : > { %10039 = vmatprep.subr.bf16.mxu0 %v14773_v28  ;;  %v14794_v28 = vand.u32 4294901760, %v12983_v53  ;;  %v14799_v53 = vand.u32 4294901760, %v12908_v26  ;;  %v14806_v26 = vand.u32 4294901760, %v12937_v52  ;;  %v14813_v52 = vand.u32 4294901760, %v12998_v13 }
 0x520   : > { %v14820_v13 = vand.u32 4294901760, %v13014_v56 }
 0x522   : > { %10041 = vmatpush3.bf16.msra.mxu0 %v14774_v15 }
 0x523   : > { %10043 = vmatprep.subr.bf16.mxu0 %v14775_v59  ;;  %v14795_v59 = vand.u32 4294901760, %v12892_v58 }
 0x526   : > { %10045 = vmatpush3.bf16.msra.mxu0 %v14776_v33  ;;  %v14796_v33 = vand.u32 4294901760, %v12894_v12  ;;  %v14801_v12 = vand.u32 4294901760, %v12919_v4  ;;  %v14808_v4 = vand.u32 4294901760, %v12942_v61  ;;  %v14815_v61 = vand.u32 4294901760, %v13002_v45 }
 0x527   : > { %10047 = vmatprep.subr.bf16.mxu0 %v14777_v35  ;;  %v14822_v45 = vand.u32 4294901760, %v13019_v23 }
 0x528   : > { %v10088_v35 = vpack.c.bf16 %v14796_v33, %v14795_v59  ;;  %v13498_v59 = vld [vmem:[#allocation11 + $0x138] sm:$0xff] }
 0x52a   : > { %10049 = vmatpush3.bf16.msra.mxu0 %v14778_v51 }
 0x52b   : > { %10051 = vmatprep.subr.bf16.mxu0 %v14779_v2 }
 0x52e   : > { %10053 = vmatpush3.bf16.msra.mxu0 %v14781_v0 }
 0x52f   : > { %10055 = vmatprep.subr.bf16.mxu0 %v14782_v30 }
 0x531   : > { %5074 = vmatmul.mubr.f32.vlgmr.msra.gmra.mrb[10].mxu0 %v13311_v32 }
 0x532   : > { %10057 = vmatpush3.bf16.msra.mxu0 %v14783_v14  ;;  %5178 = vmatprep.mubr.f32.mxu0 %v4695_v9  ;;  %v14793_v9 = vand.u32 4294901760, %v12978_v31  ;;  %v14800_v31 = vand.u32 4294901760, %v12910_v54  ;;  %v14807_v54 = vand.u32 4294901760, %v12940_v11  ;;  %v14814_v11 = vand.u32 4294901760, %v13000_v60 }
 0x533   : > { %10059 = vmatprep.subr.bf16.mxu0 %v14784_v48  ;;  %v14821_v60 = vand.u32 4294901760, %v13017_v16  ;;  %v4584_v16 = vld [vmem:[#allocation11 + $0x118] sm:$0xff] }
 0x534   : > { %v10086_v15 = vpack.c.bf16 %v14794_v28, %v14793_v9  ;;  %v10092_v58 = vpack.c.bf16 %v14800_v31, %v14799_v53  ;;  %v10100_v51 = vpack.c.bf16 %v14808_v4, %v14807_v54  ;;  %v10106_v30 = vpack.c.bf16 %v14814_v11, %v14813_v52  ;;  %v13544_v54 = vld [vmem:[#allocation11 + $0x170] sm:$0xff]  ;;  %v13546_v4 = vld [vmem:[#allocation11 + $0x178] sm:$0xff] }
 0x535   : > { %v14826_v52 = vld [vmem:[#allocation50_spill] sm:$0xff] }
 0x536   : > { %10061 = vmatpush3.bf16.msra.mxu0 %v14785_v43 }
 0x537   : > { %10063 = vmatprep.subr.bf16.mxu0 %v14786_v50  ;;  %v10114_v50 = vpack.c.bf16 %v14822_v45, %v14821_v60 }
 0x53a   : > { %10065 = vmatpush3.bf16.msra.mxu0 %v14787_v40  ;;  %v13472_v40 = vld [vmem:[#allocation11 + $0x108] sm:$0xff] }
 0x53b   : > { %10067 = vmatprep.subr.bf16.mxu0 %v14788_v22  ;;  %v5463_v56 = vand.u32 4294901760, %v13472_v40 }
 0x53e   : > { %10069 = vmatpush3.bf16.msra.mxu0 %v14789_v1  ;;  %v4583_v1 = vld [vmem:[#allocation11 + $0x110] sm:$0xff] }
 0x53f   : > { %10071 = vmatprep.subr.bf16.mxu0 %v14790_v3  ;;  %v5466_v3 = vand.u32 4294901760, %v4583_v1 }
 0x542   : > { %10073 = vmatpush3.bf16.msra.mxu0 %v14791_v25  ;;  %v5469_v25 = vand.u32 4294901760, %v4584_v16 }
 0x543   : > { %10075 = vmatprep.subr.bf16.mxu0 %v14792_v41  ;;  %v13483_v41 = vld [vmem:[#allocation11 + $0x120] sm:$0xff] }
 0x544   : > { %v5472_v9 = vand.u32 4294901760, %v13483_v41 }
 0x546   : > { %10077 = vmatpush3.bf16.msra.mxu0 %v14752_v24  ;;  %v14797_v24 = vand.u32 4294901760, %v12904_v29 }
 0x547   : > { %10079 = vmatprep.subr.bf16.mxu0 %v14754_v21  ;;  %v14798_v21 = vand.u32 4294901760, %v12906_v19  ;;  %v14803_v19 = vand.u32 4294901760, %v12924_v63  ;;  %v14810_v63 = vand.u32 4294901760, %v12953_v57  ;;  %v14817_v57 = vand.u32 4294901760, %v13008_v7 }
 0x548   : > { %v14823_v7 = vand.u32 4294901760, %v14780_v5  ;;  %v13485_v5 = vld [vmem:[#allocation11 + $0x128] sm:$0xff] }
 0x549   : > { %v5475_v28 = vand.u32 4294901760, %v13485_v5 }
 0x54a   : > { %10081 = vmatpush3.bf16.msra.mxu0 %v14756_v42  ;;  %v10090_v42 = vpack.c.bf16 %v14798_v21, %v14797_v24  ;;  %v13506_v24 = vld [vmem:[#allocation11 + $0x140] sm:$0xff]  ;;  %v13508_v21 = vld [vmem:[#allocation11 + $0x148] sm:$0xff] }
 0x54b   : > { %10083 = vmatprep.subr.bf16.mxu0 %v12991_v55  ;;  %v14802_v55 = vand.u32 4294901760, %v12921_v8  ;;  %v14809_v8 = vand.u32 4294901760, %v12951_v18  ;;  %v14816_v18 = vand.u32 4294901760, %v13004_v62  ;;  %v13470_v62 = vld [vmem:[#allocation11 + $0x100] sm:$0xff]  ;;  %v5484_v53 = vand.u32 4294901760, %v13506_v24 }
 0x54c   : > { %v5487_v31 = vand.u32 4294901760, %v13508_v21 }
 0x54d   : > { %v10094_v29 = vpack.c.bf16 %v14802_v55, %v14801_v12  ;;  %v10102_v2 = vpack.c.bf16 %v14810_v63, %v14809_v8  ;;  %v10108_v14 = vpack.c.bf16 %v14816_v18, %v14815_v61  ;;  %v13522_v12 = vld [vmem:[#allocation11 + $0x158] sm:$0xff]  ;;  %v5502_v8 = vand.u32 4294901760, %v13544_v54 }
 0x54e   : > { %10085 = vmatpush3.bf16.msra.mxu0 %v12994_v6  ;;  %v14804_v6 = vand.u32 4294901760, %v12926_v49  ;;  %v14811_v49 = vand.u32 4294901760, %v12956_v10  ;;  %v14818_v10 = vand.u32 4294901760, %v13010_v36  ;;  %v14824_v36 = vand.u32 4294901760, %v13023_v27 }
 0x54f   : > { %10087 = vmatprep.subr.bf16.mxu0 %v10086_v15  ;;  %v13489_v27 = vpack.c.bf16 %v5469_v25, %v5466_v3  ;;  %v13496_v15 = vld [vmem:[#allocation11 + $0x130] sm:$0xff]  ;;  %v13525_v55 = vpack.c.bf16 %v5487_v31, %v5484_v53  ;;  %v5505_v63 = vand.u32 4294901760, %v13546_v4 }
 0x550   : > { %v10096_v32 = vpack.c.bf16 %v14804_v6, %v14803_v19  ;;  %v10110_v48 = vpack.c.bf16 %v14818_v10, %v14817_v57  ;;  %v10116_v22 = vpack.c.bf16 %v14824_v36, %v14823_v7  ;;  %v5478_v33 = vand.u32 4294901760, %v13496_v15  ;;  %v13530_v6 = vld [vmem:[#allocation11 + $0x160] sm:$0xff] }
 0x551   : > { %5182 = vmatmul.mubr.f32.vlgmr.msra.gmra.mrb[12].mxu0 %v4701_v46  ;;  %v5493_v19 = vand.u32 4294901760, %v13522_v12  ;;  %v13580_v57 = vsub.f32 %v4583_v1, %v5466_v3  ;;  %v13582_v10 = vsub.f32 %v4584_v16, %v5469_v25 }
 0x552   : > { %10089 = vmatpush3.bf16.msra.mxu0 %v10088_v35  ;;  %5348 = vmatprep.mubr.f32.mxu0 %v13305_v38  ;;  %v14805_v38 = vand.u32 4294901760, %v12935_v34  ;;  %v14812_v34 = vand.u32 4294901760, %v12958_v17  ;;  %v14819_v17 = vand.u32 4294901760, %v13012_v44  ;;  %v5460_v44 = vand.u32 4294901760, %v13470_v62 }
 0x553   : > { %10091 = vmatprep.subr.bf16.mxu0 %v10090_v42  ;;  %v5481_v35 = vand.u32 4294901760, %v13498_v59  ;;  %v5567_v7 = vand.u32 4294901760, %v13580_v57  ;;  %v5574_v36 = vand.u32 4294901760, %v13582_v10 }
 0x554   : > { %v10098_v46 = vpack.c.bf16 %v14806_v26, %v14805_v38  ;;  %v10104_v0 = vpack.c.bf16 %v14812_v34, %v14811_v49  ;;  %v10112_v43 = vpack.c.bf16 %v14820_v13, %v14819_v17  ;;  %v13480_v23 = vpack.c.bf16 %v5463_v56, %v5460_v44 }
 0x555   : > { %v13515_v42 = vpack.c.bf16 %v5481_v35, %v5478_v33  ;;  %v5496_v26 = vand.u32 4294901760, %v13530_v6  ;;  %v13569_v49 = vsub.f32 %v13470_v62, %v5460_v44  ;;  %v13572_v34 = vsub.f32 %v13472_v40, %v5463_v56  ;;  %v14828_v62 = vld [vmem:[#allocation68_spill] sm:$0xff] }
 0x556   : > { %10093 = vmatpush3.bf16.msra.mxu0 %v10092_v58  ;;  %v13520_v58 = vld [vmem:[#allocation11 + $0x150] sm:$0xff]  ;;  %v13597_v44 = vsub.f32 %v13485_v5, %v5475_v28  ;;  %v13614_v5 = vsub.f32 %v13496_v15, %v5478_v33 }
 0x557   : > { %10095 = vmatprep.subr.bf16.mxu0 %v10094_v29  ;;  %v5490_v29 = vand.u32 4294901760, %v13520_v58  ;;  %v5553_v18 = vand.u32 4294901760, %v13569_v49 }
 0x559   : > { %v13539_v38 = vpack.c.bf16 %v5493_v19, %v5490_v29  ;;  %v5554_v60 = vsub.f32 %v13569_v49, %v5553_v18 }
 0x55a   : > { %10097 = vmatpush3.bf16.msra.mxu0 %v10096_v32  ;;  %v13532_v32 = vld [vmem:[#allocation11 + $0x168] sm:$0xff] }
 0x55b   : > { %10099 = vmatprep.subr.bf16.mxu0 %v10098_v46  ;;  %v5499_v46 = vand.u32 4294901760, %v13532_v32  ;;  %v5555_v16 = vand.u32 4294901760, %v5554_v60 }
 0x55e   : > { %10101 = vmatpush3.bf16.msra.mxu0 %v10100_v51  ;;  %v13553_v51 = vpack.c.bf16 %v5499_v46, %v5496_v26 }
 0x55f   : > { %10103 = vmatprep.subr.bf16.mxu0 %v10102_v2  ;;  %v13563_v2 = vpack.c.bf16 %v5505_v63, %v5502_v8 }
 0x562   : > { %10105 = vmatpush3.bf16.msra.mxu0 %v10104_v0  ;;  %v14825_v0 = vld [vmem:[#allocation67_spill] sm:$0xff] }
 0x563   : > { %10107 = vmatprep.subr.bf16.mxu0 %v10106_v30  ;;  %v4504_v11 = vrot.slane %v14826_v52, %v14825_v0  ;;  %v14827_v30 = vld [vmem:[#allocation48_spill] sm:$0xff] }
 0x564   : > { %v4539_v61 = vrot.slane %v14827_v30, %v14825_v0  ;;  %v5568_v0 = vsub.f32 %v13580_v57, %v5567_v7  ;;  %v13628_v30 = vsub.f32 %v13508_v21, %v5487_v31  ;;  %v13644_v31 = vsub.f32 %v13520_v58, %v5490_v29 }
 0x566   : > { %10109 = vmatpush3.bf16.msra.mxu0 %v10108_v14  ;;  %v5560_v14 = vand.u32 4294901760, %v13572_v34  ;;  %v5616_v60 = vand.u32 4294901760, %v13628_v30 }
 0x567   : > { %10111 = vmatprep.subr.bf16.mxu0 %v10110_v48 }
 0x568   : > { %v5561_v45 = vsub.f32 %v13572_v34, %v5560_v14 }
 0x56a   : > { %10113 = vmatpush3.bf16.msra.mxu0 %v10112_v43  ;;  %v5562_v25 = vand.u32 4294901760, %v5561_v45 }
 0x56b   : > { %10115 = vmatprep.subr.bf16.mxu0 %v10114_v50 }
 0x56c   : > { %v10175_v33 = vpack.c.bf16 %v5562_v25, %v5555_v16  ;;  %v13678_v16 = vsub.f32 %v13532_v32, %v5499_v46 }
 0x56e   : > { %10117 = vmatpush3.bf16.msra.mxu0 %v10116_v22  ;;  %v13594_v22 = vsub.f32 %v13483_v41, %v5472_v9  ;;  %v5575_v41 = vsub.f32 %v13582_v10, %v5574_v36 }
 0x56f   : > { %10150 = vmatprep.subr.bf16.mxu0 %v14534_v47 }
 0x571   : > { %5350 = vmatmul.mubr.f32.vlgmr.msra.gmra.mrb[14].mxu0 %v13303_v20  ;;  %v13501_v20 = vpack.c.bf16 %v5475_v28, %v5472_v9  ;;  %v5581_v9 = vand.u32 4294901760, %v13594_v22  ;;  %v5588_v28 = vand.u32 4294901760, %v13597_v44 }
 0x572   : > { %10152 = vmatpush3.bf16.msra.mxu0 %v13480_v23  ;;  %8766 = vmatprep.mubr.msk.f32.mxu0 %vm10929_vm0, %v14535_v37 }
 0x573   : > { %10153 = vmatprep.subr.bf16.mxu0 %v14534_v47 }
 0x576   : > { %10155 = vmatpush3.bf16.msra.mxu0 %v13489_v27 }
 0x577   : > { %10156 = vmatprep.subr.bf16.mxu0 %v14534_v47 }
 0x57a   : > { %10158 = vmatpush3.bf16.msra.mxu0 %v13501_v20 }
 0x57b   : > { %10159 = vmatprep.subr.bf16.mxu0 %v14534_v47 }
 0x57e   : > { %10161 = vmatpush3.bf16.msra.mxu0 %v13515_v42 }
 0x57f   : > { %10162 = vmatprep.subr.bf16.mxu0 %v14534_v47 }
 0x582   : > { %10164 = vmatpush3.bf16.msra.mxu0 %v13525_v55 }
 0x583   : > { %10165 = vmatprep.subr.bf16.mxu0 %v14534_v47 }
 0x586   : > { %10167 = vmatpush3.bf16.msra.mxu0 %v13539_v38 }
 0x587   : > { %10168 = vmatprep.subr.bf16.mxu0 %v14534_v47 }
 0x58a   : > { %10170 = vmatpush3.bf16.msra.mxu0 %v13553_v51 }
 0x58b   : > { %10171 = vmatprep.subr.bf16.mxu0 %v14534_v47 }
 0x58e   : > { %10173 = vmatpush3.bf16.msra.mxu0 %v13563_v2 }
 0x58f   : > { %10174 = vmatprep.subr.bf16.mxu0 %v14534_v47 }
 0x5a0   : > { %v4486_v48 = vpop.f32.mrb[4].mxu1 }
 0x5a1   : > { %v4510_v17 = vsub.f32 %v4486_v48, %v4504_v11  ;;  %v4545_v13 = vsub.f32 %v4486_v48, %v4539_v61  ;;  %v8733_v43 = vpop.f32.mrb[5].mxu1  ;;  %v13625_v11 = vsub.f32 %v13506_v24, %v5484_v53  ;;  %v5569_v61 = vand.u32 4294901760, %v5568_v0 }
 0x5a2   : > { %v5589_v48 = vsub.f32 %v13597_v44, %v5588_v28  ;;  %v5595_v24 = vand.u32 4294901760, %v13614_v5  ;;  %v13684_v0 = vsub.f32 %v13544_v54, %v5502_v8  ;;  %v5644_v8 = vand.u32 4294901760, %v13678_v16 }
 0x5a3   : > { %v4548_v50 = vmul.f32 0.015625, %v4545_v13  ;;  %v4513_v40 = vmul.f32 %v14828_v62, %v4510_v17  ;;  %v13649_v17 = vsub.f32 %v13522_v12, %v5493_v19  ;;  %v5609_v43 = vand.u32 4294901760, %v13625_v11 }
 0x5a4   : > { %v5596_v62 = vsub.f32 %v13614_v5, %v5595_v24  ;;  %v13665_v12 = vsub.f32 %v13530_v6, %v5496_v26  ;;  %v5617_v19 = vsub.f32 %v13628_v30, %v5616_v60 }
 0x5a5   : > { %v13599_v56 = vand.u32 4294901760, %v4548_v50  ;;  %v4515_v1 = vadd.f32 %v13308_v39, %v4513_v40  ;;  %v13619_v39 = vsub.f32 %v13498_v59, %v5481_v35  ;;  %v5576_v59 = vand.u32 4294901760, %v5575_v41 }
 0x5a6   : > { %v5582_v35 = vsub.f32 %v13594_v22, %v5581_v9  ;;  %v5610_v29 = vsub.f32 %v13625_v11, %v5609_v43  ;;  %v5623_v40 = vand.u32 4294901760, %v13644_v31  ;;  %v5597_v26 = vand.u32 4294901760, %v5596_v62 }
 0x5a7   : > { %v13603_v3 = vsub.f32 %v4548_v50, %v13599_v56  ;;  %4516 = vadd.xlane.f32.xlu0 %v4515_v1  ;;  %v5602_v21 = vand.u32 4294901760, %v13619_v39  ;;  %v10178_v13 = vpack.c.bf16 %v5576_v59, %v5569_v61  ;;  %v5590_v50 = vand.u32 4294901760, %v5589_v48 }
 0x5a8   : > { %v5583_v45 = vand.u32 4294901760, %v5582_v35  ;;  %v5630_v1 = vand.u32 4294901760, %v13649_v17  ;;  %v13689_v41 = vsub.f32 %v13546_v4, %v5505_v63  ;;  %v5624_v32 = vsub.f32 %v13644_v31, %v5623_v40 }
 0x5a9   : > { %v5542_v52 = vand.u32 4294901760, %v13603_v3  ;;  %v5603_v58 = vsub.f32 %v13619_v39, %v5602_v21  ;;  %v5637_v54 = vand.u32 4294901760, %v13665_v12  ;;  %v10931_v4 = vmov 0  }
 0x5aa   : > { %v10181_v6 = vpack.c.bf16 %v5590_v50, %v5583_v45  ;;  %v5631_v46 = vsub.f32 %v13649_v17, %v5630_v1  ;;  %10633 = vset.pattern.permute.xlu0 %v10931_v4  ;;  %v5625_v59 = vand.u32 4294901760, %v5624_v32  ;;  %v5658_v45 = vand.u32 4294901760, %v13689_v41 }
 0x5ab   : > { %v5543_v15 = vsub.f32 %v13603_v3, %v5542_v52  ;;  %v5604_v25 = vand.u32 4294901760, %v5603_v58  ;;  %v5638_v48 = vsub.f32 %v13665_v12, %v5637_v54 }
 0x5ac   : > { %v5632_v35 = vand.u32 4294901760, %v5631_v46 }
 0x5ad   : > { %v5544_v53 = vand.u32 4294901760, %v5543_v15  ;;  %v5611_v15 = vand.u32 4294901760, %v5610_v29  ;;  %v10184_v61 = vpack.c.bf16 %v5604_v25, %v5597_v26  ;;  %v5639_v58 = vand.u32 4294901760, %v5638_v48 }
 0x5ae   : > { %v10190_v50 = vpack.c.bf16 %v5632_v35, %v5625_v59  ;;  %v10199_v59 = vpack.c.bf16 %v13572_v34, %v13569_v49  ;;  %v10202_v35 = vpack.c.bf16 %v13582_v10, %v13580_v57  ;;  %v10205_v48 = vpack.c.bf16 %v13597_v44, %v13594_v22 }
 0x5af   : > { %8767 = vmatmul.mubr.f32.vlgmr.msra.gmra.mrb[16].mxu0 %v5544_v53  ;;  %v5645_v53 = vsub.f32 %v13678_v16, %v5644_v8  ;;  %v10253_v49 = vpack.c.bf16 %v5588_v28, %v5581_v9  ;;  %v10256_v34 = vpack.c.bf16 %v5602_v21, %v5595_v24  ;;  %v10265_v10 = vpack.c.bf16 %v5644_v8, %v5637_v54  ;;  %v6103_v28 = vld [vmem:[#allocation12] sm:$0xff]  ;;  %v6106_v24 = vld [vmem:[#allocation12 + $0x18] sm:$0xff]  ;;  %v6112_v54 = vld [vmem:[#allocation12 + $0x48] sm:$0xff] }
 0x5b0   : > { %10176 = vmatpush3.bf16.msra.mxu0 %v10175_v33  ;;  %8801 = vmatprep.mubr.msk.f32.mxu0 %vm10929_vm0, %v14535_v37  ;;  %v5618_v33 = vand.u32 4294901760, %v5617_v19 }
 0x5b1   : > { %10177 = vmatprep.subr.bf16.mxu0 %v14534_v47  ;;  %v5646_v29 = vand.u32 4294901760, %v5645_v53  ;;  %v10208_v53 = vpack.c.bf16 %v13619_v39, %v13614_v5 }
 0x5b2   : > { %v10187_v63 = vpack.c.bf16 %v5618_v33, %v5611_v15 }
 0x5b3   : > { %v10193_v33 = vpack.c.bf16 %v5646_v29, %v5639_v58  ;;  %v10217_v29 = vpack.c.bf16 %v13678_v16, %v13665_v12  ;;  %v6109_v12 = vld [vmem:[#allocation12 + $0x30] sm:$0xff] }
 0x5b4   : > { %10179 = vmatpush3.bf16.msra.mxu0 %v10178_v13  ;;  %v5651_v13 = vand.u32 4294901760, %v13684_v0 }
 0x5b5   : > { %10180 = vmatprep.subr.bf16.mxu0 %v14534_v47 }
 0x5b6   : > { %v5652_v19 = vsub.f32 %v13684_v0, %v5651_v13  ;;  %v10268_v44 = vpack.c.bf16 %v5658_v45, %v5651_v13 }
 0x5b8   : > { %10182 = vmatpush3.bf16.msra.mxu0 %v10181_v6  ;;  %v5659_v6 = vsub.f32 %v13689_v41, %v5658_v45  ;;  %v5653_v32 = vand.u32 4294901760, %v5652_v19 }
 0x5b9   : > { %10183 = vmatprep.subr.bf16.mxu0 %v14534_v47 }
 0x5ba   : > { %v5660_v46 = vand.u32 4294901760, %v5659_v6 }
 0x5bc   : > { %10185 = vmatpush3.bf16.msra.mxu0 %v10184_v61 }
 0x5bd   : > { %10186 = vmatprep.subr.bf16.mxu0 %v14534_v47 }
 0x5c0   : > { %10188 = vmatpush3.bf16.msra.mxu0 %v10187_v63  ;;  %v7621_v62 = vpop.f32.mrb[6].mxu1  ;;  %v10196_v63 = vpack.c.bf16 %v5660_v46, %v5653_v32 }
 0x5c1   : > { %v7622_v26 = vpop.f32.mrb[7].mxu1  ;;  %10189 = vmatprep.subr.bf16.mxu0 %v14534_v47 }
 0x5c2   : > { %v13716_v25 = vadd.f32 %v7622_v26, %v7621_v62  ;;  %v10214_v62 = vpack.c.bf16 %v13649_v17, %v13644_v31  ;;  %v6107_v31 = vld [vmem:[#allocation12 + $0x20] sm:$0xff]  ;;  %v6108_v17 = vld [vmem:[#allocation12 + $0x28] sm:$0xff] }
 0x5c4   : > { %10191 = vmatpush3.bf16.msra.mxu0 %v10190_v50  ;;  %v7446_v15 = vpop.f32.mrb[6].mxu0  ;;  %v10211_v50 = vpack.c.bf16 %v13628_v30, %v13625_v11  ;;  %v6120_v11 = vand.u32 4294901760, %v6103_v28 }
 0x5c5   : > { %v7447_v61 = vpop.f32.mrb[7].mxu0  ;;  %10192 = vmatprep.subr.bf16.mxu0 %v14534_v47 }
 0x5c6   : > { %v7448_v4 = vadd.f32 %v7447_v61, %v7446_v15  ;;  %v10220_v15 = vpack.c.bf16 %v13689_v41, %v13684_v0  ;;  %v13825_v16 = vsub.f32 %v6103_v28, %v6120_v11 }
 0x5c8   : > { %10194 = vmatpush3.bf16.msra.mxu0 %v10193_v33 }
 0x5c9   : > { %10195 = vmatprep.subr.bf16.mxu0 %v14534_v47 }
 0x5cc   : > { %10197 = vmatpush3.bf16.msra.mxu0 %v10196_v63  ;;  %v10250_v63 = vpack.c.bf16 %v5574_v36, %v5567_v7 }
 0x5cd   : > { %10198 = vmatprep.subr.bf16.mxu0 %v14534_v47 }
 0x5cf   : > { %8802 = vmatmul.mubr.f32.vlgmr.msra.gmra.mrb[16].mxu0 %v13599_v56 }
 0x5d0   : > { %10200 = vmatpush3.bf16.msra.mxu0 %v10199_v59  ;;  %8836 = vmatprep.mubr.msk.f32.mxu0 %vm10929_vm0, %v14535_v37  ;;  %v6138_v59 = vand.u32 4294901760, %v6109_v12 }
 0x5d1   : > { %10201 = vmatprep.subr.bf16.mxu0 %v14534_v47 }
 0x5d4   : > { %10203 = vmatpush3.bf16.msra.mxu0 %v10202_v35 }
 0x5d5   : > { %10204 = vmatprep.subr.bf16.mxu0 %v14534_v47 }
 0x5d8   : > { %10206 = vmatpush3.bf16.msra.mxu0 %v10205_v48 }
 0x5d9   : > { %10207 = vmatprep.subr.bf16.mxu0 %v14534_v47 }
 0x5dc   : > { %10209 = vmatpush3.bf16.msra.mxu0 %v10208_v53  ;;  %v6147_v53 = vand.u32 4294901760, %v6112_v54 }
 0x5dd   : > { %10210 = vmatprep.subr.bf16.mxu0 %v14534_v47 }
 0x5e0   : > { %10212 = vmatpush3.bf16.msra.mxu0 %v10211_v50  ;;  %v13843_v50 = vsub.f32 %v6109_v12, %v6138_v59 }
 0x5e1   : > { %10213 = vmatprep.subr.bf16.mxu0 %v14534_v47 }
 0x5e4   : > { %v7481_v58 = vpop.f32.mrb[8].mxu0  ;;  %10215 = vmatpush3.bf16.msra.mxu0 %v10214_v62 }
 0x5e5   : > { %v7482_v19 = vpop.f32.mrb[9].mxu0  ;;  %10216 = vmatprep.subr.bf16.mxu0 %v14534_v47 }
 0x5e6   : > { %v7483_v6 = vadd.f32 %v7482_v19, %v7481_v58 }
 0x5e8   : > { %v4938_v26 = vadd.f32 %v7483_v6, %v7448_v4  ;;  %10218 = vmatpush3.bf16.msra.mxu0 %v10217_v29  ;;  %v10247_v4 = vpack.c.bf16 %v5560_v14, %v5553_v18  ;;  %v10259_v18 = vpack.c.bf16 %v5616_v60, %v5609_v43  ;;  %v10262_v14 = vpack.c.bf16 %v5630_v1, %v5623_v40  ;;  %v6110_v40 = vld [vmem:[#allocation12 + $0x38] sm:$0xff]  ;;  %v6111_v1 = vld [vmem:[#allocation12 + $0x40] sm:$0xff] }
 0x5e9   : > { %10219 = vmatprep.subr.bf16.mxu0 %v14534_v47  ;;  %v6132_v43 = vand.u32 4294901760, %v6107_v31  ;;  %v6135_v60 = vand.u32 4294901760, %v6108_v17  ;;  %v6141_v35 = vand.u32 4294901760, %v6110_v40  ;;  %v6144_v48 = vand.u32 4294901760, %v6111_v1 }
 0x5ea   : > { %v13850_v29 = vsub.f32 %v6112_v54, %v6147_v53 }
 0x5eb   : > { %v13836_v45 = vsub.f32 %v6107_v31, %v6132_v43  ;;  %v13845_v62 = vsub.f32 %v6110_v40, %v6141_v35  ;;  %v13847_v58 = vsub.f32 %v6111_v1, %v6144_v48  ;;  %v13853_v19 = vpack.c.bf16 %v6135_v60, %v6132_v43 }
 0x5ec   : > { %10221 = vmatpush3.bf16.msra.mxu0 %v10220_v15  ;;  %v13859_v15 = vpack.c.bf16 %v6141_v35, %v6138_v59 }
 0x5ed   : > { %10222 = vmatprep.subr.bf16.mxu0 %v14534_v47  ;;  %v6241_v12 = vand.u32 4294901760, %v13836_v45 }
 0x5ef   : > { %8837 = vmatmul.mubr.f32.vlgmr.msra.gmra.mrb[16].mxu0 %v13603_v3  ;;  %v6969_v3 = vld [vmem:[#allocation2] ss:$0 sm:$0xff]  ;;  %v6242_v54 = vsub.f32 %v13836_v45, %v6241_v12 }
 0x5f0   : > { %10224 = vmatpush3.bf16.msra.mxu0 %v13480_v23  ;;  %8871 = vmatprep.mubr.msk.f32.mxu0 %vm10929_vm0, %v14535_v37 }
 0x5f1   : > { %10225 = vmatprep.subr.bf16.mxu0 %v14534_v47  ;;  %v6243_v35 = vand.u32 4294901760, %v6242_v54 }
 0x5f4   : > { %10227 = vmatpush3.bf16.msra.mxu0 %v13489_v27 }
 0x5f5   : > { %10228 = vmatprep.subr.bf16.mxu0 %v14534_v47 }
 0x5f8   : > { %10230 = vmatpush3.bf16.msra.mxu0 %v13501_v20 }
 0x5f9   : > { %10231 = vmatprep.subr.bf16.mxu0 %v14534_v47 }
 0x5fc   : > { %10233 = vmatpush3.bf16.msra.mxu0 %v13515_v42 }
 0x5fd   : > { %10234 = vmatprep.subr.bf16.mxu0 %v14534_v47 }
 0x600   : > { %10236 = vmatpush3.bf16.msra.mxu0 %v13525_v55 }
 0x601   : > { %10237 = vmatprep.subr.bf16.mxu0 %v14534_v47 }
 0x604   : > { %v7516_v33 = vpop.f32.mrb[10].mxu0  ;;  %10239 = vmatpush3.bf16.msra.mxu0 %v13539_v38 }
 0x605   : > { %v7517_v32 = vpop.f32.mrb[11].mxu0  ;;  %10240 = vmatprep.subr.bf16.mxu0 %v14534_v47 }
 0x606   : > { %v7518_v46 = vadd.f32 %v7517_v32, %v7516_v33  ;;  %v13866_v32 = vpack.c.bf16 %v6147_v53, %v6144_v48  ;;  %v6255_v53 = vand.u32 4294901760, %v13843_v50 }
 0x608   : > { %v5076_v61 = vadd.f32 %v7518_v46, %v4938_v26  ;;  %10242 = vmatpush3.bf16.msra.mxu0 %v13553_v51  ;;  %v6114_v46 = vld [vmem:[#allocation12 + $0x58] sm:$0xff] }
 0x609   : > { %10243 = vmatprep.subr.bf16.mxu0 %v14534_v47 }
 0x60c   : > { %10245 = vmatpush3.bf16.msra.mxu0 %v13563_v2 }
 0x60d   : > { %10246 = vmatprep.subr.bf16.mxu0 %v14534_v47 }
 0x60f   : > { %8872 = vmatmul.mubr.f32.vlgmr.msra.gmra.mrb[16].mxu0 %v5542_v52  ;;  %v6105_v52 = vld [vmem:[#allocation12 + $0x10] sm:$0xff] }
 0x610   : > { %10248 = vmatpush3.bf16.msra.mxu0 %v10247_v4  ;;  %8906 = vmatprep.mubr.msk.f32.mxu0 %vm10929_vm0, %v14535_v37  ;;  %v6126_v21 = vand.u32 4294901760, %v6105_v52  ;;  %v6153_v4 = vand.u32 4294901760, %v6114_v46 }
 0x611   : > { %10249 = vmatprep.subr.bf16.mxu0 %v14534_v47 }
 0x612   : > { %v13829_v41 = vsub.f32 %v6105_v52, %v6126_v21 }
 0x614   : > { %10251 = vmatpush3.bf16.msra.mxu0 %v10250_v63 }
 0x615   : > { %10252 = vmatprep.subr.bf16.mxu0 %v14534_v47 }
 0x618   : > { %10254 = vmatpush3.bf16.msra.mxu0 %v10253_v49  ;;  %v6115_v49 = vld [vmem:[#allocation12 + $0x60] sm:$0xff] }
 0x619   : > { %10255 = vmatprep.subr.bf16.mxu0 %v14534_v47 }
 0x61c   : > { %10257 = vmatpush3.bf16.msra.mxu0 %v10256_v34  ;;  %v6116_v34 = vld [vmem:[#allocation12 + $0x68] sm:$0xff] }
 0x61d   : > { %10258 = vmatprep.subr.bf16.mxu0 %v14534_v47 }
 0x620   : > { %10260 = vmatpush3.bf16.msra.mxu0 %v10259_v18  ;;  %v6159_v18 = vand.u32 4294901760, %v6116_v34 }
 0x621   : > { %10261 = vmatprep.subr.bf16.mxu0 %v14534_v47 }
 0x624   : > { %v7551_v57 = vpop.f32.mrb[12].mxu0  ;;  %10263 = vmatpush3.bf16.msra.mxu0 %v10262_v14  ;;  %v6117_v14 = vld [vmem:[#allocation12 + $0x70] sm:$0xff] }
 0x625   : > { %v7552_v7 = vpop.f32.mrb[13].mxu0  ;;  %10264 = vmatprep.subr.bf16.mxu0 %v14534_v47 }
 0x626   : > { %v7553_v36 = vadd.f32 %v7552_v7, %v7551_v57  ;;  %v6162_v57 = vand.u32 4294901760, %v6117_v14  ;;  %v6213_v7 = vand.u32 4294901760, %v13825_v16 }
 0x628   : > { %v13805_v22 = vadd.f32 %v7553_v36, %v5076_v61  ;;  %10266 = vmatpush3.bf16.msra.mxu0 %v10265_v10 }
 0x629   : > { %10267 = vmatprep.subr.bf16.mxu0 %v14534_v47 }
 0x62c   : > { %10269 = vmatpush3.bf16.msra.mxu0 %v10268_v44  ;;  %v13888_v44 = vsub.f32 %v6114_v46, %v6153_v4 }
 0x62d   : > { %10270 = vmatprep.subr.bf16.mxu0 %v14534_v47 }
 0x62f   : > { %8907 = vmatmul.mubr.f32.vlgmr.msra.gmra.mrb[16].mxu0 %v13599_v56 }
 0x630   : > { %10272 = vmatpush3.bf16.msra.mxu0 %v13480_v23  ;;  %8941 = vmatprep.mubr.msk.f32.mxu0 %vm10929_vm0, %v14535_v37  ;;  %v6104_v23 = vld [vmem:[#allocation12 + $0x8] sm:$0xff] }
 0x631   : > { %10273 = vmatprep.subr.bf16.mxu0 %v14534_v47  ;;  %v6123_v30 = vand.u32 4294901760, %v6104_v23 }
 0x633   : > { %v13827_v0 = vsub.f32 %v6104_v23, %v6123_v30  ;;  %v6214_v23 = vsub.f32 %v13825_v16, %v6213_v7 }
 0x634   : > { %10275 = vmatpush3.bf16.msra.mxu0 %v13489_v27  ;;  %v4517_v5 = vpop.xlane.xlu0 %4516  ;;  %v6129_v27 = vand.u32 4294901760, %v6106_v24 }
 0x635   : > { %v4525_v39 = vadd.f32 %v6969_v3, %v4517_v5  ;;  %10276 = vmatprep.subr.bf16.mxu0 %v14534_v47  ;;  %v6220_v36 = vand.u32 4294901760, %v13827_v0  ;;  %v13892_v5 = vsub.f32 %v6116_v34, %v6159_v18 }
 0x636   : > { %v13832_v8 = vpack.c.bf16 %v6129_v27, %v6126_v21  ;;  %v13834_v13 = vsub.f32 %v6106_v24, %v6129_v27 }
 0x637   : > { %v4526_v9 = vmul.f32 0.0078125, %v4525_v39  ;;  %v6221_v52 = vsub.f32 %v13827_v0, %v6220_v36 }
 0x638   : > { %10278 = vmatpush3.bf16.msra.mxu0 %v13501_v20  ;;  %v13823_v20 = vpack.c.bf16 %v6123_v30, %v6120_v11  ;;  %v6215_v11 = vand.u32 4294901760, %v6214_v23  ;;  %v6227_v30 = vand.u32 4294901760, %v13829_v41  ;;  %v6234_v24 = vand.u32 4294901760, %v13834_v13 }
 0x639   : > { %6762 = vperm.xlu0 %10633, %v4526_v9   ;;  %10279 = vmatprep.subr.bf16.mxu0 %v14534_v47  ;;  %v13896_v9 = vsub.f32 %v6117_v14, %v6162_v57  ;;  %v6222_v21 = vand.u32 4294901760, %v6221_v52 }
 0x63a   : > { %10296 = vmatpush3.bf16.msra.mxu1 %v13823_v20  ;;  %v6228_v31 = vsub.f32 %v13829_v41, %v6227_v30 }
 0x63b   : > { %10297 = vmatprep.subr.bf16.mxu1 %v14534_v47  ;;  %v13916_v27 = vpack.c.bf16 %v6222_v21, %v6215_v11 }
 0x63c   : > { %10281 = vmatpush3.bf16.msra.mxu0 %v13515_v42  ;;  %v13839_v42 = vsub.f32 %v6108_v17, %v6135_v60  ;;  %v6235_v17 = vsub.f32 %v13834_v13, %v6234_v24  ;;  %v6229_v43 = vand.u32 4294901760, %v6228_v31 }
 0x63d   : > { %10282 = vmatprep.subr.bf16.mxu0 %v14534_v47 }
 0x63e   : > { %10299 = vmatpush3.bf16.msra.mxu1 %v13832_v8  ;;  %v6236_v60 = vand.u32 4294901760, %v6235_v17  ;;  %v6248_v40 = vand.u32 4294901760, %v13839_v42 }
 0x63f   : > { %10300 = vmatprep.subr.bf16.mxu1 %v14534_v47 }
 0x640   : > { %10284 = vmatpush3.bf16.msra.mxu0 %v13525_v55  ;;  %v13920_v1 = vpack.c.bf16 %v6236_v60, %v6229_v43  ;;  %v6249_v59 = vsub.f32 %v13839_v42, %v6248_v40  ;;  %v14428_v43 = vand.u32 4294901760, %v13892_v5 }
 0x641   : > { %10285 = vmatprep.subr.bf16.mxu0 %v14534_v47 }
 0x642   : > { %10302 = vmatpush3.bf16.msra.mxu1 %v13853_v19  ;;  %v6250_v48 = vand.u32 4294901760, %v6249_v59  ;;  %v6305_v59 = vsub.f32 %v13892_v5, %v14428_v43 }
 0x643   : > { %10303 = vmatprep.subr.bf16.mxu1 %v14534_v47 }
 0x644   : > { %v7586_v6 = vpop.f32.mrb[14].mxu0  ;;  %10287 = vmatpush3.bf16.msra.mxu0 %v13539_v38 }
 0x645   : > { %v7587_v55 = vpop.f32.mrb[15].mxu0  ;;  %10288 = vmatprep.subr.bf16.mxu0 %v14534_v47 }
 0x646   : > { %v7588_v26 = vadd.f32 %v7587_v55, %v7586_v6  ;;  %10305 = vmatpush3.bf16.msra.mxu1 %v13859_v15  ;;  %v6262_v6 = vand.u32 4294901760, %v13845_v62 }
 0x647   : > { %10306 = vmatprep.subr.bf16.mxu1 %v14534_v47 }
 0x648   : > { %v5352_v33 = vadd.f32 %v7588_v26, %v13805_v22  ;;  %10290 = vmatpush3.bf16.msra.mxu0 %v13553_v51  ;;  %v6113_v51 = vld [vmem:[#allocation12 + $0x50] sm:$0xff]  ;;  %v10325_v26 = vpack.c.bf16 %v6250_v48, %v6243_v35  ;;  %v6306_v48 = vand.u32 4294901760, %v6305_v59 }
 0x649   : > { %10291 = vmatprep.subr.bf16.mxu0 %v14534_v47  ;;  %v6150_v61 = vand.u32 4294901760, %v6113_v51 }
 0x64a   : > { %v13869_v38 = vadd.f32 %v13716_v25, %v5352_v33  ;;  %10308 = vmatpush3.bf16.msra.mxu1 %v13866_v32  ;;  %v6156_v25 = vand.u32 4294901760, %v6115_v49  ;;  %v6256_v33 = vsub.f32 %v13843_v50, %v6255_v53 }
 0x64b   : > { %10309 = vmatprep.subr.bf16.mxu1 %v14534_v47  ;;  %v13876_v63 = vpack.c.bf16 %v6153_v4, %v6150_v61  ;;  %v13886_v22 = vsub.f32 %v6113_v51, %v6150_v61  ;;  %v6263_v51 = vsub.f32 %v13845_v62, %v6262_v6  ;;  %v6269_v4 = vand.u32 4294901760, %v13847_v58 }
 0x64c   : > { %10293 = vmatpush3.bf16.msra.mxu0 %v13563_v2  ;;  %v13880_v2 = vpack.c.bf16 %v6159_v18, %v6156_v25  ;;  %v13890_v3 = vsub.f32 %v6115_v49, %v6156_v25  ;;  %v6257_v46 = vand.u32 4294901760, %v6256_v33  ;;  %v14432_v49 = vand.u32 4294901760, %v13850_v29 }
 0x64d   : > { %v6264_v61 = vand.u32 4294901760, %v6263_v51  ;;  %v6270_v25 = vsub.f32 %v13847_v58, %v6269_v4 }
 0x64e   : > { %10311 = vmatpush3.bf16.msra.mxu1 %v13876_v63  ;;  %v6277_v18 = vsub.f32 %v13850_v29, %v14432_v49  ;;  %v14429_v17 = vand.u32 4294901760, %v13890_v3  ;;  %v10361_v59 = vpack.c.bf16 %v13892_v5, %v13890_v3 }
 0x64f   : > { %8942 = vmatmul.mubr.f32.vlgmr.msra.gmra.mrb[16].mxu0 %v13599_v56  ;;  %10312 = vmatprep.subr.bf16.mxu1 %v14534_v47  ;;  %v6118_v56 = vld [vmem:[#allocation12 + $0x78] sm:$0xff]  ;;  %v10328_v34 = vpack.c.bf16 %v6264_v61, %v6257_v46  ;;  %v6271_v14 = vand.u32 4294901760, %v6270_v25 }
 0x650   : > { %v6165_v10 = vand.u32 4294901760, %v6118_v56  ;;  %v6298_v54 = vsub.f32 %v13890_v3, %v14429_v17 }
 0x652   : > { %10314 = vmatpush3.bf16.msra.mxu1 %v13880_v2  ;;  %v13894_v39 = vpack.c.bf16 %v6165_v10, %v6162_v57  ;;  %v13898_v28 = vsub.f32 %v6118_v56, %v6165_v10  ;;  %v6278_v56 = vand.u32 4294901760, %v6277_v18  ;;  %v14431_v57 = vand.u32 4294901760, %v13886_v22 }
 0x653   : > { %10315 = vmatprep.subr.bf16.mxu1 %v14534_v47  ;;  %v14430_v10 = vand.u32 4294901760, %v13888_v44  ;;  %v6299_v35 = vand.u32 4294901760, %v6298_v54  ;;  %v10358_v54 = vpack.c.bf16 %v13888_v44, %v13886_v22 }
 0x654   : > { %v10331_v23 = vpack.c.bf16 %v6278_v56, %v6271_v14  ;;  %v6284_v52 = vsub.f32 %v13886_v22, %v14431_v57  ;;  %v14426_v33 = vand.u32 4294901760, %v13898_v28  ;;  %v10343_v56 = vpack.c.bf16 %v13827_v0, %v13825_v16 }
 0x655   : > { %v6291_v11 = vsub.f32 %v13888_v44, %v14430_v10  ;;  %v10337_v51 = vpack.c.bf16 %v6306_v48, %v6299_v35  ;;  %v10364_v35 = vpack.c.bf16 %v13898_v28, %v13896_v9  ;;  %v14829_v48 = vld [vmem:[#allocation28_spill] sm:$0xff]  ;;  %v10397_v16 = vpack.c.bf16 %v6248_v40, %v6241_v12 }
 0x656   : > { %10317 = vmatpush3.bf16.msra.mxu1 %v13894_v39  ;;  %v6285_v21 = vand.u32 4294901760, %v6284_v52  ;;  %v6319_v61 = vsub.f32 %v13898_v28, %v14426_v33  ;;  %v10346_v52 = vpack.c.bf16 %v13834_v13, %v13829_v41  ;;  %v10400_v0 = vpack.c.bf16 %v6262_v6, %v6255_v53 }
 0x657   : > { %10318 = vmatprep.subr.bf16.mxu1 %v14534_v47  ;;  %v6292_v31 = vand.u32 4294901760, %v6291_v11  ;;  %v10349_v11 = vpack.c.bf16 %v13839_v42, %v13836_v45  ;;  %v14830_v41 = vand.u32 4294901760, %v13850_v29  ;;  %v14831_v45 = vand.u32 4294901760, %v13886_v22 }
 0x658   : > { %v6320_v18 = vand.u32 4294901760, %v6319_v61  ;;  %v14832_v42 = vand.u32 4294901760, %v13888_v44 }
 0x659   : > { %v10334_v60 = vpack.c.bf16 %v6292_v31, %v6285_v21  ;;  %v10352_v21 = vpack.c.bf16 %v13845_v62, %v13843_v50  ;;  %v10355_v31 = vpack.c.bf16 %v13850_v29, %v13847_v58  ;;  %v10403_v13 = vpack.c.bf16 %v14830_v41, %v6269_v4 }
 0x65a   : > { %v14833_v50 = vand.u32 4294901760, %v13890_v3  ;;  %v14834_v62 = vand.u32 4294901760, %v13892_v5  ;;  %v14835_v58 = vand.u32 4294901760, %v13896_v9  ;;  %v14836_v29 = vand.u32 4294901760, %v13898_v28 }
 0x6b8   : > { %v6763_v55 = vpop.permute.xlu0 %6762 }
 0x6b9   : > { %6765 = vst [vmem:[%s480_s13] sm:$0xff] %v6763_v55  ;;  %v14427_v55 = vand.u32 4294901760, %v13896_v9 }
 0x6bb   : > { %v6312_v46 = vsub.f32 %v13896_v9, %v14427_v55 }
 0x6bd   : > { %v6313_v25 = vand.u32 4294901760, %v6312_v46  ;;  %v6100_v46 = vmul.f32 %v14829_v48, %v14829_v48 }
 0x6bf   : > { %v10340_v14 = vpack.c.bf16 %v6320_v18, %v6313_v25  ;;  %v6101_v18 = vsub.f32 1.0, %v6100_v46 }
 0x722   : > { %v6096_v61 = vpop.f32.mrb[16].mxu0 }
 0x723   : > { %v10442_v25 = vadd.f32 %v6096_v61, %v13869_v38  ;;  %v8943_v33 = vpop.f32.mrb[17].mxu0  ;;  %v10391_v38 = vpack.c.bf16 %v6220_v36, %v6213_v7  ;;  %v10406_v7 = vpack.c.bf16 %v14832_v42, %v14831_v45  ;;  %v10409_v36 = vpack.c.bf16 %v14834_v62, %v14833_v50 }
 0x725   : > { %v6102_v55 = vmul.f32 %v10442_v25, %v6101_v18 }
 0x727   : > { %v13990_v43 = vand.u32 4294901760, %v6102_v55 }
 0x729   : > { %v6201_v17 = vsub.f32 %v6102_v55, %v13990_v43 }
 0x72b   : > { %v6202_v10 = vand.u32 4294901760, %v6201_v17 }
 0x72d   : > { %v6203_v57 = vsub.f32 %v6201_v17, %v6202_v10 }
 0x72f   : > { %v6204_v49 = vand.u32 4294901760, %v6203_v57 }
 0x731   : > { %8977 = vmatmul.mubr.f32.vlgmr.msra.gmra.mrb[8].mxu1 %v6204_v49 }
 0x732   : > { %10320 = vmatpush3.bf16.msra.mxu1 %v13916_v27  ;;  %9011 = vmatprep.mubr.msk.f32.mxu1 %vm10929_vm0, %v14535_v37  ;;  %v10394_v27 = vpack.c.bf16 %v6234_v24, %v6227_v30  ;;  %v10412_v30 = vpack.c.bf16 %v14836_v29, %v14835_v58 }
 0x733   : > { %10321 = vmatprep.subr.bf16.mxu1 %v14534_v47 }
 0x736   : > { %10323 = vmatpush3.bf16.msra.mxu1 %v13920_v1 }
 0x737   : > { %10324 = vmatprep.subr.bf16.mxu1 %v14534_v47 }
 0x73a   : > { %10326 = vmatpush3.bf16.msra.mxu1 %v10325_v26 }
 0x73b   : > { %10327 = vmatprep.subr.bf16.mxu1 %v14534_v47 }
 0x73e   : > { %10329 = vmatpush3.bf16.msra.mxu1 %v10328_v34 }
 0x73f   : > { %10330 = vmatprep.subr.bf16.mxu1 %v14534_v47 }
 0x742   : > { %10332 = vmatpush3.bf16.msra.mxu1 %v10331_v23 }
 0x743   : > { %10333 = vmatprep.subr.bf16.mxu1 %v14534_v47 }
 0x746   : > { %10335 = vmatpush3.bf16.msra.mxu1 %v10334_v60 }
 0x747   : > { %10336 = vmatprep.subr.bf16.mxu1 %v14534_v47 }
 0x74a   : > { %10338 = vmatpush3.bf16.msra.mxu1 %v10337_v51 }
 0x74b   : > { %10339 = vmatprep.subr.bf16.mxu1 %v14534_v47 }
 0x74e   : > { %10341 = vmatpush3.bf16.msra.mxu1 %v10340_v14 }
 0x74f   : > { %10342 = vmatprep.subr.bf16.mxu1 %v14534_v47 }
 0x751   : > { %9012 = vmatmul.mubr.f32.vlgmr.msra.gmra.mrb[8].mxu1 %v13990_v43 }
 0x752   : > { %10344 = vmatpush3.bf16.msra.mxu1 %v10343_v56  ;;  %9046 = vmatprep.mubr.msk.f32.mxu1 %vm10929_vm0, %v14535_v37 }
 0x753   : > { %10345 = vmatprep.subr.bf16.mxu1 %v14534_v47 }
 0x756   : > { %10347 = vmatpush3.bf16.msra.mxu1 %v10346_v52 }
 0x757   : > { %10348 = vmatprep.subr.bf16.mxu1 %v14534_v47 }
 0x75a   : > { %10350 = vmatpush3.bf16.msra.mxu1 %v10349_v11 }
 0x75b   : > { %10351 = vmatprep.subr.bf16.mxu1 %v14534_v47 }
 0x75e   : > { %10353 = vmatpush3.bf16.msra.mxu1 %v10352_v21 }
 0x75f   : > { %10354 = vmatprep.subr.bf16.mxu1 %v14534_v47 }
 0x762   : > { %10356 = vmatpush3.bf16.msra.mxu1 %v10355_v31 }
 0x763   : > { %10357 = vmatprep.subr.bf16.mxu1 %v14534_v47 }
 0x766   : > { %10359 = vmatpush3.bf16.msra.mxu1 %v10358_v54 }
 0x767   : > { %10360 = vmatprep.subr.bf16.mxu1 %v14534_v47 }
 0x76a   : > { %10362 = vmatpush3.bf16.msra.mxu1 %v10361_v59 }
 0x76b   : > { %10363 = vmatprep.subr.bf16.mxu1 %v14534_v47 }
 0x76e   : > { %10365 = vmatpush3.bf16.msra.mxu1 %v10364_v35 }
 0x76f   : > { %10366 = vmatprep.subr.bf16.mxu1 %v14534_v47 }
 0x771   : > { %9047 = vmatmul.mubr.f32.vlgmr.msra.gmra.mrb[8].mxu1 %v6201_v17 }
 0x772   : > { %10368 = vmatpush3.bf16.msra.mxu1 %v13823_v20  ;;  %9081 = vmatprep.mubr.msk.f32.mxu1 %vm10929_vm0, %v14535_v37 }
 0x773   : > { %10369 = vmatprep.subr.bf16.mxu1 %v14534_v47 }
 0x776   : > { %10371 = vmatpush3.bf16.msra.mxu1 %v13832_v8 }
 0x777   : > { %10372 = vmatprep.subr.bf16.mxu1 %v14534_v47 }
 0x77a   : > { %10374 = vmatpush3.bf16.msra.mxu1 %v13853_v19 }
 0x77b   : > { %10375 = vmatprep.subr.bf16.mxu1 %v14534_v47 }
 0x77e   : > { %10377 = vmatpush3.bf16.msra.mxu1 %v13859_v15 }
 0x77f   : > { %10378 = vmatprep.subr.bf16.mxu1 %v14534_v47 }
 0x782   : > { %10380 = vmatpush3.bf16.msra.mxu1 %v13866_v32 }
 0x783   : > { %10381 = vmatprep.subr.bf16.mxu1 %v14534_v47 }
 0x786   : > { %10383 = vmatpush3.bf16.msra.mxu1 %v13876_v63 }
 0x787   : > { %10384 = vmatprep.subr.bf16.mxu1 %v14534_v47 }
 0x78a   : > { %10386 = vmatpush3.bf16.msra.mxu1 %v13880_v2 }
 0x78b   : > { %10387 = vmatprep.subr.bf16.mxu1 %v14534_v47 }
 0x78e   : > { %10389 = vmatpush3.bf16.msra.mxu1 %v13894_v39 }
 0x78f   : > { %10390 = vmatprep.subr.bf16.mxu1 %v14534_v47 }
 0x791   : > { %9082 = vmatmul.mubr.f32.vlgmr.msra.gmra.mrb[8].mxu1 %v6202_v10 }
 0x792   : > { %10392 = vmatpush3.bf16.msra.mxu1 %v10391_v38  ;;  %9116 = vmatprep.mubr.msk.f32.mxu1 %vm10929_vm0, %v14535_v37 }
 0x793   : > { %10393 = vmatprep.subr.bf16.mxu1 %v14534_v47 }
 0x796   : > { %10395 = vmatpush3.bf16.msra.mxu1 %v10394_v27 }
 0x797   : > { %10396 = vmatprep.subr.bf16.mxu1 %v14534_v47 }
 0x79a   : > { %10398 = vmatpush3.bf16.msra.mxu1 %v10397_v16 }
 0x79b   : > { %10399 = vmatprep.subr.bf16.mxu1 %v14534_v47 }
 0x79e   : > { %10401 = vmatpush3.bf16.msra.mxu1 %v10400_v0 }
 0x79f   : > { %10402 = vmatprep.subr.bf16.mxu1 %v14534_v47 }
 0x7a2   : > { %10404 = vmatpush3.bf16.msra.mxu1 %v10403_v13 }
 0x7a3   : > { %10405 = vmatprep.subr.bf16.mxu1 %v14534_v47 }
 0x7a6   : > { %10407 = vmatpush3.bf16.msra.mxu1 %v10406_v7 }
 0x7a7   : > { %10408 = vmatprep.subr.bf16.mxu1 %v14534_v47 }
 0x7aa   : > { %10410 = vmatpush3.bf16.msra.mxu1 %v10409_v36 }
 0x7ab   : > { %10411 = vmatprep.subr.bf16.mxu1 %v14534_v47 }
 0x7ae   : > { %10413 = vmatpush3.bf16.msra.mxu1 %v10412_v30 }
 0x7af   : > { %10414 = vmatprep.subr.bf16.mxu1 %v14534_v47 }
 0x7b1   : > { %9117 = vmatmul.mubr.f32.vlgmr.msra.gmra.mrb[8].mxu1 %v13990_v43 }
 0x7b2   : > { %10416 = vmatpush3.bf16.msra.mxu1 %v13823_v20  ;;  %9151 = vmatprep.mubr.msk.f32.mxu1 %vm10929_vm0, %v14535_v37 }
 0x7b3   : > { %10417 = vmatprep.subr.bf16.mxu1 %v14534_v47 }
 0x7b6   : > { %10419 = vmatpush3.bf16.msra.mxu1 %v13832_v8 }
 0x7b7   : > { %10420 = vmatprep.subr.bf16.mxu1 %v14534_v47 }
 0x7ba   : > { %10422 = vmatpush3.bf16.msra.mxu1 %v13853_v19 }
 0x7bb   : > { %10423 = vmatprep.subr.bf16.mxu1 %v14534_v47 }
 0x7be   : > { %10425 = vmatpush3.bf16.msra.mxu1 %v13859_v15 }
 0x7bf   : > { %10426 = vmatprep.subr.bf16.mxu1 %v14534_v47 }
 0x7c2   : > { %10428 = vmatpush3.bf16.msra.mxu1 %v13866_v32 }
 0x7c3   : > { %10429 = vmatprep.subr.bf16.mxu1 %v14534_v47 }
 0x7c6   : > { %10431 = vmatpush3.bf16.msra.mxu1 %v13876_v63 }
 0x7c7   : > { %10432 = vmatprep.subr.bf16.mxu1 %v14534_v47 }
 0x7ca   : > { %10434 = vmatpush3.bf16.msra.mxu1 %v13880_v2 }
 0x7cb   : > { %10435 = vmatprep.subr.bf16.mxu1 %v14534_v47 }
 0x7ce   : > { %10437 = vmatpush3.bf16.msra.mxu1 %v13894_v39 }
 0x7d1   : > { %9152 = vmatmul.mubr.f32.vlgmr.msra.gmra.mrb[8].mxu1 %v13990_v43 }
 0x7d2   : > { %10819 = shalt.err (!%p10816_p3)
}
 0x7d3   : > { %s10820_s27 = scalar_lea.hbm %s6784_s11, 128  ;;  %s10824_s30 = scalar_lea.hbm %s14837_s10, 256 }
 0x7d4   : > { %p10821_p6 = scmp.ne.s32.totalorder %s6784_s11, %s10820_s27  ;;  %p10825_p8 = scmp.lt.u32.totalorder %s6784_s11, %s14837_s10 }
 0x7d5   : > { %p10826_p5 = scmp.lt.u32.totalorder %s10824_s30, %s10820_s27  ;;  %p10828_p7 = scmp.lt.u32.totalorder %s10820_s27, %s6784_s11 }
 0x7d6   : > { %p10822_p10 = pnand %p10821_p6, %p14838_p4 }
 0x7d7   : > { %p10827_p9 = por %p10826_p5, %p10825_p8 }
 0x7d8   : > { %p10823_p11 = pneg %p10822_p10 }
 0x7d9   : > { %p10829_p12 = por %p10828_p7, %p10827_p9 }
 0x7db   : > { %p10830_p1 = pnand %p10829_p12, %p10823_p11 }
 0x7dd   : > { %10833 = shalt.err (!%p10830_p1)
}
 0x7de   : > { %10545 = dma.vmem_to_hbm [thread:$0]  (%p14838_p4), %s14097_s29, 128, %s6784_s11, %s6768_s25  }
 0x7df   : > { %s487_s23 = scalar_lea.vmem [#allocation15], %s11240_s1  ;;  %s14839_s0 = sshll.u32 %s11018_s24, 7 }
 0x7e0   : > { %s6799_s16 = sshll.u32 %s487_s23, 4  ;;  %s14840_s15 = sld [smem:[#allocation73_spill]]  ;;  %s14123_s16 = int_to_ptr.vmem [resolvable:$true] %s6799_s16 }
 0x7e1   : > { %s6773_s13 = scalar_lea.sflag [#allocation16], %s11237_s28  ;;  %s10834_s7 = scalar_lea.vmem %s14123_s16, 128 }
 0x7e2   : > { %p10835_p13 = scmp.ne.s32.totalorder %s14123_s16, %s10834_s7  ;;  %s10933_s1 = smov [#allocation15]  }
 0x7e3   : > { %s10838_s29 = sshll.u32 %s10933_s1, 4  ;;  %s10839_s29 = int_to_ptr.vmem [resolvable:$false] %s10838_s29 }
 0x7e4   : > { %p10836_p0 = pnand %p10835_p13, %p14838_p4  ;;  %s10840_s24 = scalar_lea.vmem %s10839_s29, 256 }
 0x7e5   : > { %p10841_p3 = scmp.lt.s32.totalorder %s14123_s16, %s10839_s29  ;;  %p10842_p6 = scmp.lt.s32.totalorder %s10840_s24, %s10834_s7 }
 0x7e6   : > { %s14130_s27 = scalar_lea.hbm %s14840_s15, %s14839_s0  ;;  %p10837_p2 = pneg %p10836_p0 }
 0x7e7   : > { %p10843_p10 = por %p10842_p6, %p10841_p3 }
 0x7e9   : > { %p10844_p11 = pnand %p10843_p10, %p10837_p2 }
 0x8a4   : > { %v6756_v37 = vpop.f32.mrb[8].mxu1 }
 0x8a5   : > { %6766 = vst [vmem:[%s487_s23] sm:$0xff] %v6756_v37  ;;  %v9153_v47 = vpop.f32.mrb[9].mxu1 }
 0x8a6   : > { %10847 = shalt.err (!%p10844_p11)
}
 0x8a7   : > { %s10848_s28 = scalar_lea.hbm %s14130_s27, 128  ;;  %s10852_s30 = scalar_lea.hbm %s14840_s15, 256 }
 0x8a8   : > { %p10849_p8 = scmp.ne.s32.totalorder %s14130_s27, %s10848_s28  ;;  %p10853_p7 = scmp.lt.u32.totalorder %s14130_s27, %s14840_s15 }
 0x8a9   : > { %p10854_p12 = scmp.lt.u32.totalorder %s10852_s30, %s10848_s28  ;;  %p10856_p13 = scmp.lt.u32.totalorder %s10848_s28, %s14130_s27 }
 0x8aa   : > { %p10850_p5 = pnand %p10849_p8, %p14838_p4 }
 0x8ab   : > { %p10855_p1 = por %p10854_p12, %p10853_p7 }
 0x8ac   : > { %p10851_p9 = pneg %p10850_p5 }
 0x8ad   : > { %p10857_p0 = por %p10856_p13, %p10855_p1 }
 0x8af   : > { %p10858_p2 = pnand %p10857_p0, %p10851_p9 }
 0x8b1   : > { %10861 = shalt.err (!%p10858_p2)
}
 0x8b2   : > { %10546 = dma.vmem_to_hbm [thread:$0]  (%p14838_p4), %s14123_s16, 128, %s14130_s27, %s6773_s13  }
 0x8b3 PF: > { %s6811_s14 = sand.u32 1, %s10904_s19   ;;  %p14841_p3 = scmp.ne.s32.totalorder %s14449_s12, 0 }
 0x8b4   : > { %p14842_p6 = scmp.ge.s32.totalorder %s10916_s22, 2  ;;  %s6812_s26 = scalar_lea.sflag [#allocation5], %s6811_s14 }
 0x8b6   : > { %p10570_p10 = pnand %p14842_p6, %p14841_p3 }
 0x8b8   : > { %10895 = dma.done.wait (!%p10570_p10), %s6812_s26, 128  }
 0x8b9   : > { %10897 = vsyncadd (!%p10570_p10), %s6812_s26, 4294967168  ;;  %s6821_s7 = scalar_lea.sflag [#allocation16], %s6811_s14 }
 0x8ba   : > { %10899 = dma.done.wait (!%p10570_p10), %s6821_s7, 128  }
 0x8bb   : > { %10901 = vsyncadd (!%p10570_p10), %s6821_s7, 4294967168  ;;  %p33_p4 = scmp.ge.s32.totalorder %s11167_s17, 4   ;;  %s14843_s19 = smov %s10908_s20 }
 0x8bc   : > { %s14844_s20 = smov %s10912_s21  ;;  %s14845_s21 = smov %s11179_s5 }
 0x8bd   : > { %s14846_s22 = smov %s11167_s17  ;;  %35 = sbr.rel (!%p33_p4) target bundleno = 16 (0x10), region = 142 }
 0x8c4   :  { %6826 = vsyncpa [#allocation4], 1 }
 0x8c5   :  { %6828 = vsyncpa [#allocation4 + $0x1], 1 }
 0x8c6   :  { %6829 = vsyncpa [#allocation7], 1 }
 0x8c7   :  { %6830 = vsyncpa [#allocation10], 1 }
 0x8c8   :  { %6831 = vsyncpa [#allocation13], 1 }
 0x8c9   :  { %6832 = vsyncpa [#allocation5], 1 }
 0x8ca   :  { %6834 = vsyncpa [#allocation5 + $0x1], 1 }
 0x8cb   :  { %6835 = vsyncpa [#allocation16], 1 }
 0x8cc   :  { %6837 = vsyncpa [#allocation16 + $0x1], 1 }

</bundles_post_ra>
